<compile_context>
chip_gen: v6e
topology: v6e:2x2x1
jax: 0.10.0
libtpu: 0.0.40
codegen_flags: <defaults>
</compile_context>

<pallas_src>
import functools
import numpy as np
import jax
import jax.numpy as jnp
from jax.experimental import pallas as pl
from jax.experimental.pallas import tpu as pltpu


def _lstm_gates(g, c, H):
    """PyTorch LSTMCell gate order: i, f, g, o."""
    i = jax.nn.sigmoid(g[:, 0 * H:1 * H])
    f = jax.nn.sigmoid(g[:, 1 * H:2 * H])
    z = jnp.tanh(g[:, 2 * H:3 * H])
    o = jax.nn.sigmoid(g[:, 3 * H:4 * H])
    c_new = f * c + i * z
    h_new = o * jnp.tanh(c_new)
    return h_new, c_new


def _decoder_kernel(
    # --- inputs ---
    p_ref,        # (C, B, P)       prenet outputs for this chunk (time-major)
    encf_ref,     # (B*S, E)        encoder outputs, flattened (b*S + s, e)
    mask_ref,     # (B, B*S)        block-diag selector for the context matmul
    v_ref,        # (B, S*A)        precomputed value projection (flat, A minor)
    band_ref,     # (2*S, S*A)      fused banded location conv+proj [align; cum]
    wqr_ref,      # (H0, S*A)       query projection, lane-tiled over S
    wsel_ref,     # (S*A, S)        block-diagonal score projection (wsc folded)
    w0_ref,       # (P+E+H0, 4*H0)  fused attention-LSTMCell weight
    w1_ref,       # (H0+E+H1, 4*H1) fused decoder-LSTMCell weight
    wms_ref,      # (H1+E, M+1)     fused mel+stop generator weight
    vecs_ref,     # (3, LV)         packed bias rows
    # --- output ---
    out_ref,      # (C, B, OW)      [mel | stop | alignment | 0-pad], lane-dense
    # --- scratch (recurrent state, persists across grid steps) ---
    h0_s, c0_s, h1_s, c1_s, align_s, acum_s, ctx_s,
    *, B, M, S, H0, H1, C, OW,
):
    f32 = jnp.float32

    @pl.when(pl.program_id(0) == 0)
    def _init():
        h0_s[...] = jnp.zeros_like(h0_s)
        c0_s[...] = jnp.zeros_like(c0_s)
        h1_s[...] = jnp.zeros_like(h1_s)
        c1_s[...] = jnp.zeros_like(c1_s)
        align_s[...] = jnp.zeros_like(align_s)
        acum_s[...] = jnp.zeros_like(acum_s)
        ctx_s[...] = jnp.zeros_like(ctx_s)

    # Hoist all grid-invariant loads out of the time loop.
    w0 = w0_ref[...]
    w1 = w1_ref[...]
    wms = wms_ref[...]
    wqr = wqr_ref[...]
    wsel = wsel_ref[...]
    band = band_ref[...]
    vflat = v_ref[...]
    encf = encf_ref[...]
    cmask = mask_ref[...]
    b0 = vecs_ref[0:1, :4 * H0]
    b1 = vecs_ref[1:2, :4 * H1]
    bms = vecs_ref[2:3, :M + 1]
    pad_w = OW - (M + 1 + S)
    zpad = jnp.zeros((B, pad_w), f32) if pad_w > 0 else None

    def step(i, carry):
        h0, c0, h1, c1, align, acum, ctx = carry
        p = p_ref[i]                                                   # (B, P)

        # Attention LSTMCell, fused input [prenet_out | context | h0].
        z0 = jnp.concatenate([p, ctx, h0], axis=-1)
        g0 = jnp.dot(z0, w0, preferred_element_type=f32) + b0
        h0, c0 = _lstm_gates(g0, c0, H0)

        # Location-sensitive attention, fully vectorized over the batch.
        # Single fused banded matmul for both location features (align + cum).
        loc = jnp.dot(jnp.concatenate([align, acum], axis=-1), band,
                      preferred_element_type=f32)                      # (B, S*A)
        q = jnp.dot(h0, wqr, preferred_element_type=f32)               # (B, S*A)
        pre = jnp.tanh(q + vflat + loc)
        e = jnp.dot(pre, wsel, preferred_element_type=f32)             # (B, S)
        e = e - jnp.max(e, axis=-1, keepdims=True)
        pexp = jnp.exp(e)
        ssum = jnp.sum(pexp, axis=-1, keepdims=True)
        inv = pl.reciprocal(ssum, approx=True)
        inv = inv * (2.0 - ssum * inv)        # one Newton step: no error compounding
        align = pexp * inv                                             # (B, S)
        acum = acum + align

        # Context as one block-diagonal matmul (no per-batch loop / concat).
        abd = jnp.concatenate([align] * B, axis=-1) * cmask            # (B, B*S)
        ctx = jnp.dot(abd, encf, preferred_element_type=f32)           # (B, E)

        # Decoder LSTMCell, fused input [h0 | context | h1].
        z1 = jnp.concatenate([h0, ctx, h1], axis=-1)
        g1 = jnp.dot(z1, w1, preferred_element_type=f32) + b1
        h1, c1 = _lstm_gates(g1, c1, H1)

        # mel + stop generators fused; input = cat(CELL state c1, context),
        # exactly as the PyTorch reference (lstm_hiddens[1] is the cell state).
        proj = jnp.dot(jnp.concatenate([c1, ctx], axis=-1), wms,
                       preferred_element_type=f32) + bms               # (B, M+1)
        pieces = [proj, align] + ([zpad] if zpad is not None else [])
        out_ref[i] = jnp.concatenate(pieces, axis=-1)                  # dense (B, OW)
        return (h0, c0, h1, c1, align, acum, ctx)

    carry = (h0_s[...], c0_s[...], h1_s[...], c1_s[...],
             align_s[...], acum_s[...], ctx_s[...])
    if C <= 16:                      # small static chunk: fully unroll
        for i in range(C):
            carry = step(i, carry)
    else:                            # partial unroll for scheduler visibility
        carry = jax.lax.fori_loop(0, C, step, carry, unroll=8)
    (h0_s[...], c0_s[...], h1_s[...], c1_s[...],
     align_s[...], acum_s[...], ctx_s[...]) = carry


def _const_spec(shape):
    # TODO(synk): on v7x use pipeline_mode=pl.Buffered(1) here (and bf16 storage)
    # to halve the VMEM footprint of the grid-invariant constants.
    zeros = (0,) * len(shape)
    return pl.BlockSpec(shape, lambda t, _z=zeros: _z)


def init_params(key, *, M=16, P=16, E=32, H0=32, H1=32, A=16, F=8, K=7):
    ks = jax.random.split(key, 32)
    w = lambda k, shape, s=0.1: s * jax.random.normal(k, shape, jnp.float32)
    return dict(
        pw1=w(ks[0], (M, P)), pb1=jnp.zeros((1, P), jnp.float32),
        pw2=w(ks[1], (P, P)), pb2=jnp.zeros((1, P), jnp.float32),
        l0_wx=w(ks[2], (P, 4 * H0)), l0_wc=w(ks[3], (E, 4 * H0)),
        l0_wh=w(ks[4], (H0, 4 * H0)), l0_b=w(ks[5], (1, 4 * H0)),
        l1_wx=w(ks[6], (H0, 4 * H1)), l1_wc=w(ks[7], (E, 4 * H1)),
        l1_wh=w(ks[8], (H1, 4 * H1)), l1_b=w(ks[9], (1, 4 * H1)),
        wq=w(ks[10], (H0, A)),            # query_proj
        wvT=w(ks[11], (A, E)),            # value_proj weight (torch shape (A, E))
        waT=w(ks[12], (F, K)),            # location conv, channel 0 (alignment)
        wcT=w(ks[13], (F, K)),            # location conv, channel 1 (cum)
        wpT=w(ks[14], (A, F)),            # location_proj weight (torch shape (A, F))
        wsc=w(ks[15], (1, A)), scb=jnp.zeros((1, 1), jnp.float32),   # score_proj
        mel_wc=w(ks[16], (H1, M)), mel_wx=w(ks[17], (E, M)),
        mel_b=jnp.zeros((1, M), jnp.float32),
        stop_wc=w(ks[18], (H1, 1)), stop_wx=w(ks[19], (E, 1)),
        stop_b=jnp.zeros((1, 1), jnp.float32),
    )


def decoder_forward(params, encoder_outputs, mel_targets, *, chunk=None):
    """Teacher-forcing Decoder.forward; returns the same dict as PyTorch."""
    B, S, E = encoder_outputs.shape
    _, T, M = mel_targets.shape
    P = params["pw1"].shape[1]
    H0 = params["l0_wh"].shape[0]
    H1 = params["l1_wh"].shape[0]
    A = params["wq"].shape[1]
    K = params["waT"].shape[1]

    # Chunk the decode loop: C steps per grid iteration (amortizes per-step
    # pipeline overhead; larger default per review).
    C = chunk if chunk is not None else min(T, 128)
    n_chunks = -(-T // C)
    T_pad = n_chunks * C

    # validate_args: prepend go frame; decode T steps using frames 0..T-1.
    go = jnp.zeros((B, 1, M), jnp.float32)
    dec_in = jnp.concatenate([go, mel_targets], axis=1)[:, :T, :]      # (B, T, M)

    # ---------- PreNet hoisted out of the recurrent chain ----------
    # Teacher forcing applies the prenet to all frames up front in PyTorch
    # (`inputs = self.prenet(inputs)`), so compute it here as two well-shaped
    # matmuls instead of 2*T tiny ones inside the serial per-step chain.
    # TODO(synk): prenet dropout (p=0.5) omitted (deterministic path).
    pn = jnp.maximum(dec_in @ params["pw1"] + params["pb1"], 0.0)
    pn = jnp.maximum(pn @ params["pw2"] + params["pb2"], 0.0)          # (B, T, P)
    p_seq = jnp.transpose(pn, (1, 0, 2))                               # (T, B, P)
    if T_pad > T:
        p_seq = jnp.pad(p_seq, ((0, T_pad - T), (0, 0), (0, 0)))

    # ---------- loop-invariant precomputation (hoisted out of the kernel) ----------
    # Value projection.
    v_flat = jnp.einsum("bse,ae->bsa", encoder_outputs,
                        params["wvT"]).reshape(B, S * A)               # (B, S*A)
    # Location conv folded with location_proj into banded matrices, stacked so
    # a single [align | acum] @ band matmul covers both channels:
    wa2 = params["wpT"] @ params["waT"]                                # (A, K)
    wc2 = params["wpT"] @ params["wcT"]                                # (A, K)
    pad = (K - 1) // 2
    kk = jnp.arange(S)[:, None] - jnp.arange(S)[None, :] + pad         # (s2, s)
    valid = (kk >= 0) & (kk < K)
    kc = jnp.clip(kk, 0, K - 1)
    bandA = jnp.where(valid[:, :, None], wa2.T[kc], 0.0).reshape(S, S * A)
    bandC = jnp.where(valid[:, :, None], wc2.T[kc], 0.0).reshape(S, S * A)
    band = jnp.concatenate([bandA, bandC], axis=0)                     # (2S, S*A)
    # Query proj tiled over S so q-broadcast is a single matmul in-kernel.
    wq_rep = jnp.tile(params["wq"], (1, S))                            # (H0, S*A)
    # Score proj as a block-diagonal matrix (contracts the A dim on the MXU).
    wsel = (jnp.eye(S, dtype=jnp.float32)[:, None, :]
            * params["wsc"][0][None, :, None]).reshape(S * A, S)       # (S*A, S)
    # Flattened encoder + block-diag selector for the single context matmul.
    enc_flat = encoder_outputs.reshape(B * S, E)                       # (B*S, E)
    ctx_mask = jnp.kron(jnp.eye(B, dtype=jnp.float32),
                        jnp.ones((1, S), jnp.float32))                 # (B, B*S)

    # Fused / packed weights.
    w0 = jnp.concatenate([params["l0_wx"], params["l0_wc"], params["l0_wh"]], axis=0)
    w1 = jnp.concatenate([params["l1_wx"], params["l1_wc"], params["l1_wh"]], axis=0)
    wms = jnp.concatenate([
        jnp.concatenate([params["mel_wc"], params["stop_wc"]], axis=1),
        jnp.concatenate([params["mel_wx"], params["stop_wx"]], axis=1)], axis=0)
    LV = max(4 * H0, 4 * H1, M + 1)

    def _row(vv):
        vv = vv.reshape(1, -1)
        return jnp.pad(vv, ((0, 0), (0, LV - vv.shape[1])))

    vecs = jnp.concatenate([
        _row(params["l0_b"]), _row(params["l1_b"]),
        _row(jnp.concatenate([params["mel_b"], params["stop_b"]], axis=1)),
    ], axis=0)                                                         # (3, LV)

    # Lane-padded packed output width (dense vst per step).
    OW = ((M + 1 + S + 127) // 128) * 128

    consts = [enc_flat, ctx_mask, v_flat, band, wq_rep, wsel, w0, w1, wms, vecs]
    kernel = functools.partial(_decoder_kernel, B=B, M=M, S=S,
                               H0=H0, H1=H1, C=C, OW=OW)

    in_specs = ([pl.BlockSpec((C, B, P), lambda t: (t, 0, 0))]
                + [_const_spec(c.shape) for c in consts])
    out_specs = pl.BlockSpec((C, B, OW), lambda t: (t, 0, 0))
    out_shape = jax.ShapeDtypeStruct((T_pad, B, OW), jnp.float32)
    scratch_shapes = [
        pltpu.VMEM((B, H0), jnp.float32), pltpu.VMEM((B, H0), jnp.float32),
        pltpu.VMEM((B, H1), jnp.float32), pltpu.VMEM((B, H1), jnp.float32),
        pltpu.VMEM((B, S), jnp.float32), pltpu.VMEM((B, S), jnp.float32),
        pltpu.VMEM((B, E), jnp.float32),
    ]

    packed = pl.pallas_call(
        kernel,
        out_shape=out_shape,
        grid_spec=pltpu.PrefetchScalarGridSpec(
            num_scalar_prefetch=0,
            grid=(n_chunks,),
            in_specs=in_specs,
            out_specs=out_specs,
            scratch_shapes=scratch_shapes),
        # TODO(synk): v7x — add a leading parallel batch grid axis
        # (("parallel", "arbitrary")) so both TensorCores are used.
        compiler_params=pltpu.CompilerParams(
            dimension_semantics=("arbitrary",),
            vmem_limit_bytes=32 * 1024 * 1024),
    )(p_seq, *consts)

    packed = packed[:T]                                  # drop chunk padding
    mel_tbm = packed[:, :, :M]
    stop_tb1 = packed[:, :, M:M + 1]
    align_tbs = packed[:, :, M + 1:M + 1 + S]
    # parse_decoder_outputs
    return {
        "mel_outputs": jnp.transpose(mel_tbm, (1, 2, 0)),     # (B, M, T)
        "stop_outputs": jnp.transpose(stop_tb1, (1, 0, 2)),   # (B, T, 1)
        "alignments": jnp.transpose(align_tbs, (1, 0, 2)),    # (B, T, S)
    }


def decoder_forward_ref(params, enc, mel_targets):
    """Pure-JAX reference with the original per-step math (no Pallas)."""
    B, S, E = enc.shape
    _, T, M = mel_targets.shape
    H0 = params["l0_wh"].shape[0]
    H1 = params["l1_wh"].shape[0]
    K = params["waT"].shape[1]
    pad = (K - 1) // 2

    go = jnp.zeros((B, 1, M), jnp.float32)
    dec_in = jnp.concatenate([go, mel_targets], axis=1)[:, :T, :]

    h0 = jnp.zeros((B, H0)); c0 = jnp.zeros((B, H0))
    h1 = jnp.zeros((B, H1)); c1 = jnp.zeros((B, H1))
    align = jnp.zeros((B, S)); acum = jnp.zeros((B, S)); ctx = jnp.zeros((B, E))
    mels, stops, aligns = [], [], []
    for t in range(T):
        x = dec_in[:, t, :]
        p = jnp.maximum(x @ params["pw1"] + params["pb1"], 0.0)
        p = jnp.maximum(p @ params["pw2"] + params["pb2"], 0.0)
        g0 = p @ params["l0_wx"] + ctx @ params["l0_wc"] + h0 @ params["l0_wh"] + params["l0_b"]
        h0, c0 = _lstm_gates(g0, c0, H0)

        apad = jnp.pad(align, ((0, 0), (pad, pad)))
        cpad = jnp.pad(acum, ((0, 0), (pad, pad)))
        Ua = jnp.stack([apad[:, k:k + S] for k in range(K)], axis=1)   # (B, K, S)
        Uc = jnp.stack([cpad[:, k:k + S] for k in range(K)], axis=1)
        conv = (jnp.einsum("fk,bks->bfs", params["waT"], Ua)
                + jnp.einsum("fk,bks->bfs", params["wcT"], Uc))
        locT = jnp.einsum("af,bfs->bas", params["wpT"], conv)
        vT = jnp.einsum("ae,bse->bas", params["wvT"], enc)
        q = h0 @ params["wq"]
        pre = jnp.tanh(q[:, :, None] + vT + locT)
        e = jnp.einsum("a,bas->bs", params["wsc"][0], pre) + params["scb"][0, 0]
        e = jnp.exp(e - jnp.max(e, axis=1, keepdims=True))
        align = e / jnp.sum(e, axis=1, keepdims=True)
        acum = acum + align
        ctx = jnp.einsum("bs,bse->be", align, enc)

        g1 = h0 @ params["l1_wx"] + ctx @ params["l1_wc"] + h1 @ params["l1_wh"] + params["l1_b"]
        h1, c1 = _lstm_gates(g1, c1, H1)
        mels.append(c1 @ params["mel_wc"] + ctx @ params["mel_wx"] + params["mel_b"])
        stops.append(c1 @ params["stop_wc"] + ctx @ params["stop_wx"] + params["stop_b"])
        aligns.append(align)

    return {
        "mel_outputs": jnp.transpose(jnp.stack(mels, 0), (1, 2, 0)),
        "stop_outputs": jnp.transpose(jnp.stack(stops, 0), (1, 0, 2)),
        "alignments": jnp.transpose(jnp.stack(aligns, 0), (1, 0, 2)),
    }


if __name__ == "__main__":
    B, S, E, M, T = 2, 8, 32, 16, 6
    key = jax.random.PRNGKey(0)
    kp, ke, km = jax.random.split(key, 3)
    params = init_params(kp, M=M, E=E)
    encoder_outputs = jax.random.normal(ke, (B, S, E), jnp.float32)
    mel_targets = jax.random.normal(km, (B, T, M), jnp.float32)

    out = decoder_forward(params, encoder_outputs, mel_targets)
    out = jax.block_until_ready(out)

    ref = decoder_forward_ref(params, encoder_outputs, mel_targets)
    for k in ("mel_outputs", "stop_outputs", "alignments"):
        np.testing.assert_allclose(np.asarray(out[k]), np.asarray(ref[k]),
                                   rtol=5e-3, atol=5e-3)

    print("KERNEL_OK")
</pallas_src>

<mosaic_0001>
module attributes {stable_mosaic.version = 11 : i64} {
  func.func @_decoder_kernel(%arg0: i32, %arg1: memref<6x2x16xf32, #tpu.memory_space<vmem>>, %arg2: memref<16x32xf32, #tpu.memory_space<vmem>>, %arg3: memref<2x16xf32, #tpu.memory_space<vmem>>, %arg4: memref<2x128xf32, #tpu.memory_space<vmem>>, %arg5: memref<16x128xf32, #tpu.memory_space<vmem>>, %arg6: memref<32x128xf32, #tpu.memory_space<vmem>>, %arg7: memref<128x8xf32, #tpu.memory_space<vmem>>, %arg8: memref<80x128xf32, #tpu.memory_space<vmem>>, %arg9: memref<96x128xf32, #tpu.memory_space<vmem>>, %arg10: memref<64x17xf32, #tpu.memory_space<vmem>>, %arg11: memref<3x128xf32, #tpu.memory_space<vmem>>, %arg12: memref<6x2x128xf32, #tpu.memory_space<vmem>>, %arg13: memref<2x32xf32, #tpu.memory_space<vmem>>, %arg14: memref<2x32xf32, #tpu.memory_space<vmem>>, %arg15: memref<2x32xf32, #tpu.memory_space<vmem>>, %arg16: memref<2x32xf32, #tpu.memory_space<vmem>>, %arg17: memref<2x8xf32, #tpu.memory_space<vmem>>, %arg18: memref<2x8xf32, #tpu.memory_space<vmem>>, %arg19: memref<2x32xf32, #tpu.memory_space<vmem>>) attributes {dimension_semantics = [#tpu.dimension_semantics<arbitrary>], iteration_bounds = array<i64: 1>, scalar_prefetch = 0 : i64, scratch_operands = 7 : i64, tpu.core_type = #tpu.core_type<tc>, window_params = [{transform_indices = @transform_0, window_bounds = array<i64: 6, 2, 16>}, {pipeline_mode = #tpu.pipeline_mode<synchronous>, transform_indices = @transform_1, window_bounds = array<i64: 16, 32>}, {pipeline_mode = #tpu.pipeline_mode<synchronous>, transform_indices = @transform_2, window_bounds = array<i64: 2, 16>}, {pipeline_mode = #tpu.pipeline_mode<synchronous>, transform_indices = @transform_3, window_bounds = array<i64: 2, 128>}, {pipeline_mode = #tpu.pipeline_mode<synchronous>, transform_indices = @transform_4, window_bounds = array<i64: 16, 128>}, {pipeline_mode = #tpu.pipeline_mode<synchronous>, transform_indices = @transform_5, window_bounds = array<i64: 32, 128>}, {pipeline_mode = #tpu.pipeline_mode<synchronous>, transform_indices = @transform_6, window_bounds = array<i64: 128, 8>}, {pipeline_mode = #tpu.pipeline_mode<synchronous>, transform_indices = @transform_7, window_bounds = array<i64: 80, 128>}, {pipeline_mode = #tpu.pipeline_mode<synchronous>, transform_indices = @transform_8, window_bounds = array<i64: 96, 128>}, {pipeline_mode = #tpu.pipeline_mode<synchronous>, transform_indices = @transform_9, window_bounds = array<i64: 64, 17>}, {pipeline_mode = #tpu.pipeline_mode<synchronous>, transform_indices = @transform_10, window_bounds = array<i64: 3, 128>}, {transform_indices = @transform_11, window_bounds = array<i64: 6, 2, 128>}]} {
    %c0_i32 = arith.constant 0 : i32
    %0 = arith.cmpi eq, %arg0, %c0_i32 : i32
    %1 = arith.extui %0 : i1 to i32
    %c0_i32_0 = arith.constant 0 : i32
    %2 = arith.cmpi ne, %1, %c0_i32_0 : i32
    scf.if %2 {
      %cst_179 = arith.constant 0.000000e+00 : f32
      %588 = vector.broadcast %cst_179 : f32 to vector<2x32xf32>
      %c0_180 = arith.constant 0 : index
      %c0_181 = arith.constant 0 : index
      %589 = vector.load %arg13[%c0_180, %c0_181] : memref<2x32xf32, #tpu.memory_space<vmem>>, vector<2x32xf32>
      tpu.vector_store %arg13[%c0_180, %c0_181], %588 {strides = array<i32>} : memref<2x32xf32, #tpu.memory_space<vmem>>, vector<2x32xf32>,
      %cst_182 = arith.constant 0.000000e+00 : f32
      %590 = vector.broadcast %cst_182 : f32 to vector<2x32xf32>
      %c0_183 = arith.constant 0 : index
      %c0_184 = arith.constant 0 : index
      %591 = vector.load %arg14[%c0_183, %c0_184] : memref<2x32xf32, #tpu.memory_space<vmem>>, vector<2x32xf32>
      tpu.vector_store %arg14[%c0_183, %c0_184], %590 {strides = array<i32>} : memref<2x32xf32, #tpu.memory_space<vmem>>, vector<2x32xf32>,
      %cst_185 = arith.constant 0.000000e+00 : f32
      %592 = vector.broadcast %cst_185 : f32 to vector<2x32xf32>
      %c0_186 = arith.constant 0 : index
      %c0_187 = arith.constant 0 : index
      %593 = vector.load %arg15[%c0_186, %c0_187] : memref<2x32xf32, #tpu.memory_space<vmem>>, vector<2x32xf32>
      tpu.vector_store %arg15[%c0_186, %c0_187], %592 {strides = array<i32>} : memref<2x32xf32, #tpu.memory_space<vmem>>, vector<2x32xf32>,
      %cst_188 = arith.constant 0.000000e+00 : f32
      %594 = vector.broadcast %cst_188 : f32 to vector<2x32xf32>
      %c0_189 = arith.constant 0 : index
      %c0_190 = arith.constant 0 : index
      %595 = vector.load %arg16[%c0_189, %c0_190] : memref<2x32xf32, #tpu.memory_space<vmem>>, vector<2x32xf32>
      tpu.vector_store %arg16[%c0_189, %c0_190], %594 {strides = array<i32>} : memref<2x32xf32, #tpu.memory_space<vmem>>, vector<2x32xf32>,
      %cst_191 = arith.constant 0.000000e+00 : f32
      %596 = vector.broadcast %cst_191 : f32 to vector<2x8xf32>
      %c0_192 = arith.constant 0 : index
      %c0_193 = arith.constant 0 : index
      %597 = vector.load %arg17[%c0_192, %c0_193] : memref<2x8xf32, #tpu.memory_space<vmem>>, vector<2x8xf32>
      tpu.vector_store %arg17[%c0_192, %c0_193], %596 {strides = array<i32>} : memref<2x8xf32, #tpu.memory_space<vmem>>, vector<2x8xf32>,
      %cst_194 = arith.constant 0.000000e+00 : f32
      %598 = vector.broadcast %cst_194 : f32 to vector<2x8xf32>
      %c0_195 = arith.constant 0 : index
      %c0_196 = arith.constant 0 : index
      %599 = vector.load %arg18[%c0_195, %c0_196] : memref<2x8xf32, #tpu.memory_space<vmem>>, vector<2x8xf32>
      tpu.vector_store %arg18[%c0_195, %c0_196], %598 {strides = array<i32>} : memref<2x8xf32, #tpu.memory_space<vmem>>, vector<2x8xf32>,
      %cst_197 = arith.constant 0.000000e+00 : f32
      %600 = vector.broadcast %cst_197 : f32 to vector<2x32xf32>
      %c0_198 = arith.constant 0 : index
      %c0_199 = arith.constant 0 : index
      %601 = vector.load %arg19[%c0_198, %c0_199] : memref<2x32xf32, #tpu.memory_space<vmem>>, vector<2x32xf32>
      tpu.vector_store %arg19[%c0_198, %c0_199], %600 {strides = array<i32>} : memref<2x32xf32, #tpu.memory_space<vmem>>, vector<2x32xf32>,
    } else {
    }
    %c0 = arith.constant 0 : index
    %c0_1 = arith.constant 0 : index
    %3 = vector.load %arg8[%c0, %c0_1] : memref<80x128xf32, #tpu.memory_space<vmem>>, vector<80x128xf32>
    %c0_2 = arith.constant 0 : index
    %c0_3 = arith.constant 0 : index
    %4 = vector.load %arg9[%c0_2, %c0_3] : memref<96x128xf32, #tpu.memory_space<vmem>>, vector<96x128xf32>
    %c0_4 = arith.constant 0 : index
    %c0_5 = arith.constant 0 : index
    %5 = vector.load %arg10[%c0_4, %c0_5] : memref<64x17xf32, #tpu.memory_space<vmem>>, vector<64x17xf32>
    %c0_6 = arith.constant 0 : index
    %c0_7 = arith.constant 0 : index
    %6 = vector.load %arg6[%c0_6, %c0_7] : memref<32x128xf32, #tpu.memory_space<vmem>>, vector<32x128xf32>
    %c0_8 = arith.constant 0 : index
    %c0_9 = arith.constant 0 : index
    %7 = vector.load %arg7[%c0_8, %c0_9] : memref<128x8xf32, #tpu.memory_space<vmem>>, vector<128x8xf32>
    %c0_10 = arith.constant 0 : index
    %c0_11 = arith.constant 0 : index
    %8 = vector.load %arg5[%c0_10, %c0_11] : memref<16x128xf32, #tpu.memory_space<vmem>>, vector<16x128xf32>
    %c0_12 = arith.constant 0 : index
    %c0_13 = arith.constant 0 : index
    %9 = vector.load %arg4[%c0_12, %c0_13] : memref<2x128xf32, #tpu.memory_space<vmem>>, vector<2x128xf32>
    %c0_14 = arith.constant 0 : index
    %c0_15 = arith.constant 0 : index
    %10 = vector.load %arg2[%c0_14, %c0_15] : memref<16x32xf32, #tpu.memory_space<vmem>>, vector<16x32xf32>
    %c0_16 = arith.constant 0 : index
    %c0_17 = arith.constant 0 : index
    %11 = vector.load %arg3[%c0_16, %c0_17] : memref<2x16xf32, #tpu.memory_space<vmem>>, vector<2x16xf32>
    %c0_18 = arith.constant 0 : index
    %c0_19 = arith.constant 0 : index
    %12 = vector.load %arg11[%c0_18, %c0_19] : memref<3x128xf32, #tpu.memory_space<vmem>>, vector<1x128xf32>
    %c1 = arith.constant 1 : index
    %c0_20 = arith.constant 0 : index
    %13 = vector.load %arg11[%c1, %c0_20] : memref<3x128xf32, #tpu.memory_space<vmem>>, vector<1x128xf32>
    %c2 = arith.constant 2 : index
    %c0_21 = arith.constant 0 : index
    %14 = vector.load %arg11[%c2, %c0_21] : memref<3x128xf32, #tpu.memory_space<vmem>>, vector<1x17xf32>
    %cst = arith.constant 0.000000e+00 : f32
    %15 = vector.broadcast %cst : f32 to vector<2x103xf32>
    %c0_22 = arith.constant 0 : index
    %c0_23 = arith.constant 0 : index
    %16 = vector.load %arg13[%c0_22, %c0_23] : memref<2x32xf32, #tpu.memory_space<vmem>>, vector<2x32xf32>
    %c0_24 = arith.constant 0 : index
    %c0_25 = arith.constant 0 : index
    %17 = vector.load %arg14[%c0_24, %c0_25] : memref<2x32xf32, #tpu.memory_space<vmem>>, vector<2x32xf32>
    %c0_26 = arith.constant 0 : index
    %c0_27 = arith.constant 0 : index
    %18 = vector.load %arg15[%c0_26, %c0_27] : memref<2x32xf32, #tpu.memory_space<vmem>>, vector<2x32xf32>
    %c0_28 = arith.constant 0 : index
    %c0_29 = arith.constant 0 : index
    %19 = vector.load %arg16[%c0_28, %c0_29] : memref<2x32xf32, #tpu.memory_space<vmem>>, vector<2x32xf32>
    %c0_30 = arith.constant 0 : index
    %c0_31 = arith.constant 0 : index
    %20 = vector.load %arg17[%c0_30, %c0_31] : memref<2x8xf32, #tpu.memory_space<vmem>>, vector<2x8xf32>
    %c0_32 = arith.constant 0 : index
    %c0_33 = arith.constant 0 : index
    %21 = vector.load %arg18[%c0_32, %c0_33] : memref<2x8xf32, #tpu.memory_space<vmem>>, vector<2x8xf32>
    %c0_34 = arith.constant 0 : index
    %c0_35 = arith.constant 0 : index
    %22 = vector.load %arg19[%c0_34, %c0_35] : memref<2x32xf32, #tpu.memory_space<vmem>>, vector<2x32xf32>
    %c0_36 = arith.constant 0 : index
    %c0_37 = arith.constant 0 : index
    %c0_38 = arith.constant 0 : index
    %23 = vector.load %arg1[%c0_36, %c0_37, %c0_38] : memref<6x2x16xf32, #tpu.memory_space<vmem>>, vector<1x2x16xf32>
    %24 = vector.shape_cast %23 : vector<1x2x16xf32> to vector<2x16xf32>
    %25 = tpu.concatenate %24, %22, %16 in 1 : vector<2x16xf32>, vector<2x32xf32>, vector<2x32xf32> -> vector<2x80xf32>
    %cst_39 = arith.constant dense<0.000000e+00> : vector<2x128xf32>
    %26 = tpu.matmul %25, %3, %cst_39 {dimension_numbers = #tpu.dot_dimension_numbers<[1], [0], [0], [1], [0, 0, 1, 1], [], []>} : vector<2x80xf32>, vector<80x128xf32>, vector<2x128xf32> -> vector<2x128xf32>
    %27 = vector.broadcast %12 : vector<1x128xf32> to vector<2x128xf32>
    %28 = arith.addf %26, %27 : vector<2x128xf32>
    %29 = vector.extract_strided_slice %28 {offsets = [0, 0], sizes = [2, 32], strides = [1, 1]} : vector<2x128xf32> to vector<2x32xf32>
    %30 = arith.negf %29 : vector<2x32xf32>
    %31 = math.exp %30 : vector<2x32xf32>
    %cst_40 = arith.constant 1.000000e+00 : f32
    %32 = vector.broadcast %cst_40 : f32 to vector<2x32xf32>
    %33 = arith.addf %32, %31 : vector<2x32xf32>
    %34 = arith.divf %32, %33 : vector<2x32xf32>
    %35 = vector.extract_strided_slice %28 {offsets = [0, 32], sizes = [2, 32], strides = [1, 1]} : vector<2x128xf32> to vector<2x32xf32>
    %36 = arith.negf %35 : vector<2x32xf32>
    %37 = math.exp %36 : vector<2x32xf32>
    %cst_41 = arith.constant 1.000000e+00 : f32
    %38 = vector.broadcast %cst_41 : f32 to vector<2x32xf32>
    %39 = arith.addf %38, %37 : vector<2x32xf32>
    %40 = arith.divf %38, %39 : vector<2x32xf32>
    %41 = vector.extract_strided_slice %28 {offsets = [0, 64], sizes = [2, 32], strides = [1, 1]} : vector<2x128xf32> to vector<2x32xf32>
    %42 = math.tanh %41 : vector<2x32xf32>
    %43 = vector.extract_strided_slice %28 {offsets = [0, 96], sizes = [2, 32], strides = [1, 1]} : vector<2x128xf32> to vector<2x32xf32>
    %44 = arith.negf %43 : vector<2x32xf32>
    %45 = math.exp %44 : vector<2x32xf32>
    %cst_42 = arith.constant 1.000000e+00 : f32
    %46 = vector.broadcast %cst_42 : f32 to vector<2x32xf32>
    %47 = arith.addf %46, %45 : vector<2x32xf32>
    %48 = arith.divf %46, %47 : vector<2x32xf32>
    %49 = arith.mulf %40, %17 : vector<2x32xf32>
    %50 = arith.mulf %34, %42 : vector<2x32xf32>
    %51 = arith.addf %49, %50 : vector<2x32xf32>
    %52 = math.tanh %51 : vector<2x32xf32>
    %53 = arith.mulf %48, %52 : vector<2x32xf32>
    %54 = tpu.concatenate %20, %21 in 1 : vector<2x8xf32>, vector<2x8xf32> -> vector<2x16xf32>
    %cst_43 = arith.constant dense<0.000000e+00> : vector<2x128xf32>
    %55 = tpu.matmul %54, %8, %cst_43 {dimension_numbers = #tpu.dot_dimension_numbers<[1], [0], [0], [1], [0, 0, 1, 1], [], []>} : vector<2x16xf32>, vector<16x128xf32>, vector<2x128xf32> -> vector<2x128xf32>
    %cst_44 = arith.constant dense<0.000000e+00> : vector<2x128xf32>
    %56 = tpu.matmul %53, %6, %cst_44 {dimension_numbers = #tpu.dot_dimension_numbers<[1], [0], [0], [1], [0, 0, 1, 1], [], []>} : vector<2x32xf32>, vector<32x128xf32>, vector<2x128xf32> -> vector<2x128xf32>
    %57 = arith.addf %56, %9 : vector<2x128xf32>
    %58 = arith.addf %57, %55 : vector<2x128xf32>
    %59 = math.tanh %58 : vector<2x128xf32>
    %cst_45 = arith.constant dense<0.000000e+00> : vector<2x8xf32>
    %60 = tpu.matmul %59, %7, %cst_45 {dimension_numbers = #tpu.dot_dimension_numbers<[1], [0], [0], [1], [0, 0, 1, 1], [], []>} : vector<2x128xf32>, vector<128x8xf32>, vector<2x8xf32> -> vector<2x8xf32>
    %cst_46 = arith.constant dense<0xFF800000> : vector<2xf32>
    %61 = vector.multi_reduction <maximumf>, %60, %cst_46 [1] : vector<2x8xf32> to vector<2xf32>
    %62 = vector.shape_cast %61 : vector<2xf32> to vector<2x1xf32>
    %63 = vector.broadcast %62 : vector<2x1xf32> to vector<2x8xf32>
    %64 = arith.subf %60, %63 : vector<2x8xf32>
    %65 = math.exp %64 : vector<2x8xf32>
    %cst_47 = arith.constant dense<0.000000e+00> : vector<2xf32>
    %66 = vector.multi_reduction <add>, %65, %cst_47 [1] : vector<2x8xf32> to vector<2xf32>
    %67 = vector.shape_cast %66 : vector<2xf32> to vector<2x1xf32>
    %68 = tpu.reciprocal %67 {approx = true} : vector<2x1xf32> -> vector<2x1xf32>
    %69 = arith.mulf %67, %68 : vector<2x1xf32>
    %cst_48 = arith.constant 2.000000e+00 : f32
    %70 = vector.broadcast %cst_48 : f32 to vector<2x1xf32>
    %71 = arith.subf %70, %69 : vector<2x1xf32>
    %72 = arith.mulf %68, %71 : vector<2x1xf32>
    %73 = vector.broadcast %72 : vector<2x1xf32> to vector<2x8xf32>
    %74 = arith.mulf %65, %73 : vector<2x8xf32>
    %75 = arith.addf %21, %74 : vector<2x8xf32>
    %76 = tpu.concatenate %74, %74 in 1 : vector<2x8xf32>, vector<2x8xf32> -> vector<2x16xf32>
    %77 = arith.mulf %76, %11 : vector<2x16xf32>
    %cst_49 = arith.constant dense<0.000000e+00> : vector<2x32xf32>
    %78 = tpu.matmul %77, %10, %cst_49 {dimension_numbers = #tpu.dot_dimension_numbers<[1], [0], [0], [1], [0, 0, 1, 1], [], []>} : vector<2x16xf32>, vector<16x32xf32>, vector<2x32xf32> -> vector<2x32xf32>
    %79 = tpu.concatenate %53, %78, %18 in 1 : vector<2x32xf32>, vector<2x32xf32>, vector<2x32xf32> -> vector<2x96xf32>
    %cst_50 = arith.constant dense<0.000000e+00> : vector<2x128xf32>
    %80 = tpu.matmul %79, %4, %cst_50 {dimension_numbers = #tpu.dot_dimension_numbers<[1], [0], [0], [1], [0, 0, 1, 1], [], []>} : vector<2x96xf32>, vector<96x128xf32>, vector<2x128xf32> -> vector<2x128xf32>
    %81 = vector.broadcast %13 : vector<1x128xf32> to vector<2x128xf32>
    %82 = arith.addf %80, %81 : vector<2x128xf32>
    %83 = vector.extract_strided_slice %82 {offsets = [0, 0], sizes = [2, 32], strides = [1, 1]} : vector<2x128xf32> to vector<2x32xf32>
    %84 = arith.negf %83 : vector<2x32xf32>
    %85 = math.exp %84 : vector<2x32xf32>
    %cst_51 = arith.constant 1.000000e+00 : f32
    %86 = vector.broadcast %cst_51 : f32 to vector<2x32xf32>
    %87 = arith.addf %86, %85 : vector<2x32xf32>
    %88 = arith.divf %86, %87 : vector<2x32xf32>
    %89 = vector.extract_strided_slice %82 {offsets = [0, 32], sizes = [2, 32], strides = [1, 1]} : vector<2x128xf32> to vector<2x32xf32>
    %90 = arith.negf %89 : vector<2x32xf32>
    %91 = math.exp %90 : vector<2x32xf32>
    %cst_52 = arith.constant 1.000000e+00 : f32
    %92 = vector.broadcast %cst_52 : f32 to vector<2x32xf32>
    %93 = arith.addf %92, %91 : vector<2x32xf32>
    %94 = arith.divf %92, %93 : vector<2x32xf32>
    %95 = vector.extract_strided_slice %82 {offsets = [0, 64], sizes = [2, 32], strides = [1, 1]} : vector<2x128xf32> to vector<2x32xf32>
    %96 = math.tanh %95 : vector<2x32xf32>
    %97 = vector.extract_strided_slice %82 {offsets = [0, 96], sizes = [2, 32], strides = [1, 1]} : vector<2x128xf32> to vector<2x32xf32>
    %98 = arith.negf %97 : vector<2x32xf32>
    %99 = math.exp %98 : vector<2x32xf32>
    %cst_53 = arith.constant 1.000000e+00 : f32
    %100 = vector.broadcast %cst_53 : f32 to vector<2x32xf32>
    %101 = arith.addf %100, %99 : vector<2x32xf32>
    %102 = arith.divf %100, %101 : vector<2x32xf32>
    %103 = arith.mulf %94, %19 : vector<2x32xf32>
    %104 = arith.mulf %88, %96 : vector<2x32xf32>
    %105 = arith.addf %103, %104 : vector<2x32xf32>
    %106 = math.tanh %105 : vector<2x32xf32>
    %107 = arith.mulf %102, %106 : vector<2x32xf32>
    %108 = tpu.concatenate %105, %78 in 1 : vector<2x32xf32>, vector<2x32xf32> -> vector<2x64xf32>
    %cst_54 = arith.constant dense<0.000000e+00> : vector<2x17xf32>
    %109 = tpu.matmul %108, %5, %cst_54 {dimension_numbers = #tpu.dot_dimension_numbers<[1], [0], [0], [1], [0, 0, 1, 1], [], []>} : vector<2x64xf32>, vector<64x17xf32>, vector<2x17xf32> -> vector<2x17xf32>
    %110 = vector.broadcast %14 : vector<1x17xf32> to vector<2x17xf32>
    %111 = arith.addf %109, %110 : vector<2x17xf32>
    %112 = tpu.concatenate %111, %74, %15 in 1 : vector<2x17xf32>, vector<2x8xf32>, vector<2x103xf32> -> vector<2x128xf32>
    %c0_55 = arith.constant 0 : index
    %c0_56 = arith.constant 0 : index
    %c0_57 = arith.constant 0 : index
    %113 = vector.load %arg12[%c0_55, %c0_56, %c0_57] : memref<6x2x128xf32, #tpu.memory_space<vmem>>, vector<1x2x128xf32>
    %114 = vector.shape_cast %113 : vector<1x2x128xf32> to vector<2x128xf32>
    %115 = vector.shape_cast %112 : vector<2x128xf32> to vector<1x2x128xf32>
    tpu.vector_store %arg12[%c0_55, %c0_56, %c0_57], %115 {strides = array<i32>} : memref<6x2x128xf32, #tpu.memory_space<vmem>>, vector<1x2x128xf32>,
    %c1_58 = arith.constant 1 : index
    %c0_59 = arith.constant 0 : index
    %c0_60 = arith.constant 0 : index
    %116 = vector.load %arg1[%c1_58, %c0_59, %c0_60] : memref<6x2x16xf32, #tpu.memory_space<vmem>>, vector<1x2x16xf32>
    %117 = vector.shape_cast %116 : vector<1x2x16xf32> to vector<2x16xf32>
    %118 = tpu.concatenate %117, %78, %53 in 1 : vector<2x16xf32>, vector<2x32xf32>, vector<2x32xf32> -> vector<2x80xf32>
    %cst_61 = arith.constant dense<0.000000e+00> : vector<2x128xf32>
    %119 = tpu.matmul %118, %3, %cst_61 {dimension_numbers = #tpu.dot_dimension_numbers<[1], [0], [0], [1], [0, 0, 1, 1], [], []>} : vector<2x80xf32>, vector<80x128xf32>, vector<2x128xf32> -> vector<2x128xf32>
    %120 = vector.broadcast %12 : vector<1x128xf32> to vector<2x128xf32>
    %121 = arith.addf %119, %120 : vector<2x128xf32>
    %122 = vector.extract_strided_slice %121 {offsets = [0, 0], sizes = [2, 32], strides = [1, 1]} : vector<2x128xf32> to vector<2x32xf32>
    %123 = arith.negf %122 : vector<2x32xf32>
    %124 = math.exp %123 : vector<2x32xf32>
    %cst_62 = arith.constant 1.000000e+00 : f32
    %125 = vector.broadcast %cst_62 : f32 to vector<2x32xf32>
    %126 = arith.addf %125, %124 : vector<2x32xf32>
    %127 = arith.divf %125, %126 : vector<2x32xf32>
    %128 = vector.extract_strided_slice %121 {offsets = [0, 32], sizes = [2, 32], strides = [1, 1]} : vector<2x128xf32> to vector<2x32xf32>
    %129 = arith.negf %128 : vector<2x32xf32>
    %130 = math.exp %129 : vector<2x32xf32>
    %cst_63 = arith.constant 1.000000e+00 : f32
    %131 = vector.broadcast %cst_63 : f32 to vector<2x32xf32>
    %132 = arith.addf %131, %130 : vector<2x32xf32>
    %133 = arith.divf %131, %132 : vector<2x32xf32>
    %134 = vector.extract_strided_slice %121 {offsets = [0, 64], sizes = [2, 32], strides = [1, 1]} : vector<2x128xf32> to vector<2x32xf32>
    %135 = math.tanh %134 : vector<2x32xf32>
    %136 = vector.extract_strided_slice %121 {offsets = [0, 96], sizes = [2, 32], strides = [1, 1]} : vector<2x128xf32> to vector<2x32xf32>
    %137 = arith.negf %136 : vector<2x32xf32>
    %138 = math.exp %137 : vector<2x32xf32>
    %cst_64 = arith.constant 1.000000e+00 : f32
    %139 = vector.broadcast %cst_64 : f32 to vector<2x32xf32>
    %140 = arith.addf %139, %138 : vector<2x32xf32>
    %141 = arith.divf %139, %140 : vector<2x32xf32>
    %142 = arith.mulf %133, %51 : vector<2x32xf32>
    %143 = arith.mulf %127, %135 : vector<2x32xf32>
    %144 = arith.addf %142, %143 : vector<2x32xf32>
    %145 = math.tanh %144 : vector<2x32xf32>
    %146 = arith.mulf %141, %145 : vector<2x32xf32>
    %147 = tpu.concatenate %74, %75 in 1 : vector<2x8xf32>, vector<2x8xf32> -> vector<2x16xf32>
    %cst_65 = arith.constant dense<0.000000e+00> : vector<2x128xf32>
    %148 = tpu.matmul %147, %8, %cst_65 {dimension_numbers = #tpu.dot_dimension_numbers<[1], [0], [0], [1], [0, 0, 1, 1], [], []>} : vector<2x16xf32>, vector<16x128xf32>, vector<2x128xf32> -> vector<2x128xf32>
    %cst_66 = arith.constant dense<0.000000e+00> : vector<2x128xf32>
    %149 = tpu.matmul %146, %6, %cst_66 {dimension_numbers = #tpu.dot_dimension_numbers<[1], [0], [0], [1], [0, 0, 1, 1], [], []>} : vector<2x32xf32>, vector<32x128xf32>, vector<2x128xf32> -> vector<2x128xf32>
    %150 = arith.addf %149, %9 : vector<2x128xf32>
    %151 = arith.addf %150, %148 : vector<2x128xf32>
    %152 = math.tanh %151 : vector<2x128xf32>
    %cst_67 = arith.constant dense<0.000000e+00> : vector<2x8xf32>
    %153 = tpu.matmul %152, %7, %cst_67 {dimension_numbers = #tpu.dot_dimension_numbers<[1], [0], [0], [1], [0, 0, 1, 1], [], []>} : vector<2x128xf32>, vector<128x8xf32>, vector<2x8xf32> -> vector<2x8xf32>
    %cst_68 = arith.constant dense<0xFF800000> : vector<2xf32>
    %154 = vector.multi_reduction <maximumf>, %153, %cst_68 [1] : vector<2x8xf32> to vector<2xf32>
    %155 = vector.shape_cast %154 : vector<2xf32> to vector<2x1xf32>
    %156 = vector.broadcast %155 : vector<2x1xf32> to vector<2x8xf32>
    %157 = arith.subf %153, %156 : vector<2x8xf32>
    %158 = math.exp %157 : vector<2x8xf32>
    %cst_69 = arith.constant dense<0.000000e+00> : vector<2xf32>
    %159 = vector.multi_reduction <add>, %158, %cst_69 [1] : vector<2x8xf32> to vector<2xf32>
    %160 = vector.shape_cast %159 : vector<2xf32> to vector<2x1xf32>
    %161 = tpu.reciprocal %160 {approx = true} : vector<2x1xf32> -> vector<2x1xf32>
    %162 = arith.mulf %160, %161 : vector<2x1xf32>
    %cst_70 = arith.constant 2.000000e+00 : f32
    %163 = vector.broadcast %cst_70 : f32 to vector<2x1xf32>
    %164 = arith.subf %163, %162 : vector<2x1xf32>
    %165 = arith.mulf %161, %164 : vector<2x1xf32>
    %166 = vector.broadcast %165 : vector<2x1xf32> to vector<2x8xf32>
    %167 = arith.mulf %158, %166 : vector<2x8xf32>
    %168 = arith.addf %75, %167 : vector<2x8xf32>
    %169 = tpu.concatenate %167, %167 in 1 : vector<2x8xf32>, vector<2x8xf32> -> vector<2x16xf32>
    %170 = arith.mulf %169, %11 : vector<2x16xf32>
    %cst_71 = arith.constant dense<0.000000e+00> : vector<2x32xf32>
    %171 = tpu.matmul %170, %10, %cst_71 {dimension_numbers = #tpu.dot_dimension_numbers<[1], [0], [0], [1], [0, 0, 1, 1], [], []>} : vector<2x16xf32>, vector<16x32xf32>, vector<2x32xf32> -> vector<2x32xf32>
    %172 = tpu.concatenate %146, %171, %107 in 1 : vector<2x32xf32>, vector<2x32xf32>, vector<2x32xf32> -> vector<2x96xf32>
    %cst_72 = arith.constant dense<0.000000e+00> : vector<2x128xf32>
    %173 = tpu.matmul %172, %4, %cst_72 {dimension_numbers = #tpu.dot_dimension_numbers<[1], [0], [0], [1], [0, 0, 1, 1], [], []>} : vector<2x96xf32>, vector<96x128xf32>, vector<2x128xf32> -> vector<2x128xf32>
    %174 = vector.broadcast %13 : vector<1x128xf32> to vector<2x128xf32>
    %175 = arith.addf %173, %174 : vector<2x128xf32>
    %176 = vector.extract_strided_slice %175 {offsets = [0, 0], sizes = [2, 32], strides = [1, 1]} : vector<2x128xf32> to vector<2x32xf32>
    %177 = arith.negf %176 : vector<2x32xf32>
    %178 = math.exp %177 : vector<2x32xf32>
    %cst_73 = arith.constant 1.000000e+00 : f32
    %179 = vector.broadcast %cst_73 : f32 to vector<2x32xf32>
    %180 = arith.addf %179, %178 : vector<2x32xf32>
    %181 = arith.divf %179, %180 : vector<2x32xf32>
    %182 = vector.extract_strided_slice %175 {offsets = [0, 32], sizes = [2, 32], strides = [1, 1]} : vector<2x128xf32> to vector<2x32xf32>
    %183 = arith.negf %182 : vector<2x32xf32>
    %184 = math.exp %183 : vector<2x32xf32>
    %cst_74 = arith.constant 1.000000e+00 : f32
    %185 = vector.broadcast %cst_74 : f32 to vector<2x32xf32>
    %186 = arith.addf %185, %184 : vector<2x32xf32>
    %187 = arith.divf %185, %186 : vector<2x32xf32>
    %188 = vector.extract_strided_slice %175 {offsets = [0, 64], sizes = [2, 32], strides = [1, 1]} : vector<2x128xf32> to vector<2x32xf32>
    %189 = math.tanh %188 : vector<2x32xf32>
    %190 = vector.extract_strided_slice %175 {offsets = [0, 96], sizes = [2, 32], strides = [1, 1]} : vector<2x128xf32> to vector<2x32xf32>
    %191 = arith.negf %190 : vector<2x32xf32>
    %192 = math.exp %191 : vector<2x32xf32>
    %cst_75 = arith.constant 1.000000e+00 : f32
    %193 = vector.broadcast %cst_75 : f32 to vector<2x32xf32>
    %194 = arith.addf %193, %192 : vector<2x32xf32>
    %195 = arith.divf %193, %194 : vector<2x32xf32>
    %196 = arith.mulf %187, %105 : vector<2x32xf32>
    %197 = arith.mulf %181, %189 : vector<2x32xf32>
    %198 = arith.addf %196, %197 : vector<2x32xf32>
    %199 = math.tanh %198 : vector<2x32xf32>
    %200 = arith.mulf %195, %199 : vector<2x32xf32>
    %201 = tpu.concatenate %198, %171 in 1 : vector<2x32xf32>, vector<2x32xf32> -> vector<2x64xf32>
    %cst_76 = arith.constant dense<0.000000e+00> : vector<2x17xf32>
    %202 = tpu.matmul %201, %5, %cst_76 {dimension_numbers = #tpu.dot_dimension_numbers<[1], [0], [0], [1], [0, 0, 1, 1], [], []>} : vector<2x64xf32>, vector<64x17xf32>, vector<2x17xf32> -> vector<2x17xf32>
    %203 = vector.broadcast %14 : vector<1x17xf32> to vector<2x17xf32>
    %204 = arith.addf %202, %203 : vector<2x17xf32>
    %205 = tpu.concatenate %204, %167, %15 in 1 : vector<2x17xf32>, vector<2x8xf32>, vector<2x103xf32> -> vector<2x128xf32>
    %c1_77 = arith.constant 1 : index
    %c0_78 = arith.constant 0 : index
    %c0_79 = arith.constant 0 : index
    %206 = vector.load %arg12[%c1_77, %c0_78, %c0_79] : memref<6x2x128xf32, #tpu.memory_space<vmem>>, vector<1x2x128xf32>
    %207 = vector.shape_cast %206 : vector<1x2x128xf32> to vector<2x128xf32>
    %208 = vector.shape_cast %205 : vector<2x128xf32> to vector<1x2x128xf32>
    tpu.vector_store %arg12[%c1_77, %c0_78, %c0_79], %208 {strides = array<i32>} : memref<6x2x128xf32, #tpu.memory_space<vmem>>, vector<1x2x128xf32>,
    %c2_80 = arith.constant 2 : index
    %c0_81 = arith.constant 0 : index
    %c0_82 = arith.constant 0 : index
    %209 = vector.load %arg1[%c2_80, %c0_81, %c0_82] : memref<6x2x16xf32, #tpu.memory_space<vmem>>, vector<1x2x16xf32>
    %210 = vector.shape_cast %209 : vector<1x2x16xf32> to vector<2x16xf32>
    %211 = tpu.concatenate %210, %171, %146 in 1 : vector<2x16xf32>, vector<2x32xf32>, vector<2x32xf32> -> vector<2x80xf32>
    %cst_83 = arith.constant dense<0.000000e+00> : vector<2x128xf32>
    %212 = tpu.matmul %211, %3, %cst_83 {dimension_numbers = #tpu.dot_dimension_numbers<[1], [0], [0], [1], [0, 0, 1, 1], [], []>} : vector<2x80xf32>, vector<80x128xf32>, vector<2x128xf32> -> vector<2x128xf32>
    %213 = vector.broadcast %12 : vector<1x128xf32> to vector<2x128xf32>
    %214 = arith.addf %212, %213 : vector<2x128xf32>
    %215 = vector.extract_strided_slice %214 {offsets = [0, 0], sizes = [2, 32], strides = [1, 1]} : vector<2x128xf32> to vector<2x32xf32>
    %216 = arith.negf %215 : vector<2x32xf32>
    %217 = math.exp %216 : vector<2x32xf32>
    %cst_84 = arith.constant 1.000000e+00 : f32
    %218 = vector.broadcast %cst_84 : f32 to vector<2x32xf32>
    %219 = arith.addf %218, %217 : vector<2x32xf32>
    %220 = arith.divf %218, %219 : vector<2x32xf32>
    %221 = vector.extract_strided_slice %214 {offsets = [0, 32], sizes = [2, 32], strides = [1, 1]} : vector<2x128xf32> to vector<2x32xf32>
    %222 = arith.negf %221 : vector<2x32xf32>
    %223 = math.exp %222 : vector<2x32xf32>
    %cst_85 = arith.constant 1.000000e+00 : f32
    %224 = vector.broadcast %cst_85 : f32 to vector<2x32xf32>
    %225 = arith.addf %224, %223 : vector<2x32xf32>
    %226 = arith.divf %224, %225 : vector<2x32xf32>
    %227 = vector.extract_strided_slice %214 {offsets = [0, 64], sizes = [2, 32], strides = [1, 1]} : vector<2x128xf32> to vector<2x32xf32>
    %228 = math.tanh %227 : vector<2x32xf32>
    %229 = vector.extract_strided_slice %214 {offsets = [0, 96], sizes = [2, 32], strides = [1, 1]} : vector<2x128xf32> to vector<2x32xf32>
    %230 = arith.negf %229 : vector<2x32xf32>
    %231 = math.exp %230 : vector<2x32xf32>
    %cst_86 = arith.constant 1.000000e+00 : f32
    %232 = vector.broadcast %cst_86 : f32 to vector<2x32xf32>
    %233 = arith.addf %232, %231 : vector<2x32xf32>
    %234 = arith.divf %232, %233 : vector<2x32xf32>
    %235 = arith.mulf %226, %144 : vector<2x32xf32>
    %236 = arith.mulf %220, %228 : vector<2x32xf32>
    %237 = arith.addf %235, %236 : vector<2x32xf32>
    %238 = math.tanh %237 : vector<2x32xf32>
    %239 = arith.mulf %234, %238 : vector<2x32xf32>
    %240 = tpu.concatenate %167, %168 in 1 : vector<2x8xf32>, vector<2x8xf32> -> vector<2x16xf32>
    %cst_87 = arith.constant dense<0.000000e+00> : vector<2x128xf32>
    %241 = tpu.matmul %240, %8, %cst_87 {dimension_numbers = #tpu.dot_dimension_numbers<[1], [0], [0], [1], [0, 0, 1, 1], [], []>} : vector<2x16xf32>, vector<16x128xf32>, vector<2x128xf32> -> vector<2x128xf32>
    %cst_88 = arith.constant dense<0.000000e+00> : vector<2x128xf32>
    %242 = tpu.matmul %239, %6, %cst_88 {dimension_numbers = #tpu.dot_dimension_numbers<[1], [0], [0], [1], [0, 0, 1, 1], [], []>} : vector<2x32xf32>, vector<32x128xf32>, vector<2x128xf32> -> vector<2x128xf32>
    %243 = arith.addf %242, %9 : vector<2x128xf32>
    %244 = arith.addf %243, %241 : vector<2x128xf32>
    %245 = math.tanh %244 : vector<2x128xf32>
    %cst_89 = arith.constant dense<0.000000e+00> : vector<2x8xf32>
    %246 = tpu.matmul %245, %7, %cst_89 {dimension_numbers = #tpu.dot_dimension_numbers<[1], [0], [0], [1], [0, 0, 1, 1], [], []>} : vector<2x128xf32>, vector<128x8xf32>, vector<2x8xf32> -> vector<2x8xf32>
    %cst_90 = arith.constant dense<0xFF800000> : vector<2xf32>
    %247 = vector.multi_reduction <maximumf>, %246, %cst_90 [1] : vector<2x8xf32> to vector<2xf32>
    %248 = vector.shape_cast %247 : vector<2xf32> to vector<2x1xf32>
    %249 = vector.broadcast %248 : vector<2x1xf32> to vector<2x8xf32>
    %250 = arith.subf %246, %249 : vector<2x8xf32>
    %251 = math.exp %250 : vector<2x8xf32>
    %cst_91 = arith.constant dense<0.000000e+00> : vector<2xf32>
    %252 = vector.multi_reduction <add>, %251, %cst_91 [1] : vector<2x8xf32> to vector<2xf32>
    %253 = vector.shape_cast %252 : vector<2xf32> to vector<2x1xf32>
    %254 = tpu.reciprocal %253 {approx = true} : vector<2x1xf32> -> vector<2x1xf32>
    %255 = arith.mulf %253, %254 : vector<2x1xf32>
    %cst_92 = arith.constant 2.000000e+00 : f32
    %256 = vector.broadcast %cst_92 : f32 to vector<2x1xf32>
    %257 = arith.subf %256, %255 : vector<2x1xf32>
    %258 = arith.mulf %254, %257 : vector<2x1xf32>
    %259 = vector.broadcast %258 : vector<2x1xf32> to vector<2x8xf32>
    %260 = arith.mulf %251, %259 : vector<2x8xf32>
    %261 = arith.addf %168, %260 : vector<2x8xf32>
    %262 = tpu.concatenate %260, %260 in 1 : vector<2x8xf32>, vector<2x8xf32> -> vector<2x16xf32>
    %263 = arith.mulf %262, %11 : vector<2x16xf32>
    %cst_93 = arith.constant dense<0.000000e+00> : vector<2x32xf32>
    %264 = tpu.matmul %263, %10, %cst_93 {dimension_numbers = #tpu.dot_dimension_numbers<[1], [0], [0], [1], [0, 0, 1, 1], [], []>} : vector<2x16xf32>, vector<16x32xf32>, vector<2x32xf32> -> vector<2x32xf32>
    %265 = tpu.concatenate %239, %264, %200 in 1 : vector<2x32xf32>, vector<2x32xf32>, vector<2x32xf32> -> vector<2x96xf32>
    %cst_94 = arith.constant dense<0.000000e+00> : vector<2x128xf32>
    %266 = tpu.matmul %265, %4, %cst_94 {dimension_numbers = #tpu.dot_dimension_numbers<[1], [0], [0], [1], [0, 0, 1, 1], [], []>} : vector<2x96xf32>, vector<96x128xf32>, vector<2x128xf32> -> vector<2x128xf32>
    %267 = vector.broadcast %13 : vector<1x128xf32> to vector<2x128xf32>
    %268 = arith.addf %266, %267 : vector<2x128xf32>
    %269 = vector.extract_strided_slice %268 {offsets = [0, 0], sizes = [2, 32], strides = [1, 1]} : vector<2x128xf32> to vector<2x32xf32>
    %270 = arith.negf %269 : vector<2x32xf32>
    %271 = math.exp %270 : vector<2x32xf32>
    %cst_95 = arith.constant 1.000000e+00 : f32
    %272 = vector.broadcast %cst_95 : f32 to vector<2x32xf32>
    %273 = arith.addf %272, %271 : vector<2x32xf32>
    %274 = arith.divf %272, %273 : vector<2x32xf32>
    %275 = vector.extract_strided_slice %268 {offsets = [0, 32], sizes = [2, 32], strides = [1, 1]} : vector<2x128xf32> to vector<2x32xf32>
    %276 = arith.negf %275 : vector<2x32xf32>
    %277 = math.exp %276 : vector<2x32xf32>
    %cst_96 = arith.constant 1.000000e+00 : f32
    %278 = vector.broadcast %cst_96 : f32 to vector<2x32xf32>
    %279 = arith.addf %278, %277 : vector<2x32xf32>
    %280 = arith.divf %278, %279 : vector<2x32xf32>
    %281 = vector.extract_strided_slice %268 {offsets = [0, 64], sizes = [2, 32], strides = [1, 1]} : vector<2x128xf32> to vector<2x32xf32>
    %282 = math.tanh %281 : vector<2x32xf32>
    %283 = vector.extract_strided_slice %268 {offsets = [0, 96], sizes = [2, 32], strides = [1, 1]} : vector<2x128xf32> to vector<2x32xf32>
    %284 = arith.negf %283 : vector<2x32xf32>
    %285 = math.exp %284 : vector<2x32xf32>
    %cst_97 = arith.constant 1.000000e+00 : f32
    %286 = vector.broadcast %cst_97 : f32 to vector<2x32xf32>
    %287 = arith.addf %286, %285 : vector<2x32xf32>
    %288 = arith.divf %286, %287 : vector<2x32xf32>
    %289 = arith.mulf %280, %198 : vector<2x32xf32>
    %290 = arith.mulf %274, %282 : vector<2x32xf32>
    %291 = arith.addf %289, %290 : vector<2x32xf32>
    %292 = math.tanh %291 : vector<2x32xf32>
    %293 = arith.mulf %288, %292 : vector<2x32xf32>
    %294 = tpu.concatenate %291, %264 in 1 : vector<2x32xf32>, vector<2x32xf32> -> vector<2x64xf32>
    %cst_98 = arith.constant dense<0.000000e+00> : vector<2x17xf32>
    %295 = tpu.matmul %294, %5, %cst_98 {dimension_numbers = #tpu.dot_dimension_numbers<[1], [0], [0], [1], [0, 0, 1, 1], [], []>} : vector<2x64xf32>, vector<64x17xf32>, vector<2x17xf32> -> vector<2x17xf32>
    %296 = vector.broadcast %14 : vector<1x17xf32> to vector<2x17xf32>
    %297 = arith.addf %295, %296 : vector<2x17xf32>
    %298 = tpu.concatenate %297, %260, %15 in 1 : vector<2x17xf32>, vector<2x8xf32>, vector<2x103xf32> -> vector<2x128xf32>
    %c2_99 = arith.constant 2 : index
    %c0_100 = arith.constant 0 : index
    %c0_101 = arith.constant 0 : index
    %299 = vector.load %arg12[%c2_99, %c0_100, %c0_101] : memref<6x2x128xf32, #tpu.memory_space<vmem>>, vector<1x2x128xf32>
    %300 = vector.shape_cast %299 : vector<1x2x128xf32> to vector<2x128xf32>
    %301 = vector.shape_cast %298 : vector<2x128xf32> to vector<1x2x128xf32>
    tpu.vector_store %arg12[%c2_99, %c0_100, %c0_101], %301 {strides = array<i32>} : memref<6x2x128xf32, #tpu.memory_space<vmem>>, vector<1x2x128xf32>,
    %c3 = arith.constant 3 : index
    %c0_102 = arith.constant 0 : index
    %c0_103 = arith.constant 0 : index
    %302 = vector.load %arg1[%c3, %c0_102, %c0_103] : memref<6x2x16xf32, #tpu.memory_space<vmem>>, vector<1x2x16xf32>
    %303 = vector.shape_cast %302 : vector<1x2x16xf32> to vector<2x16xf32>
    %304 = tpu.concatenate %303, %264, %239 in 1 : vector<2x16xf32>, vector<2x32xf32>, vector<2x32xf32> -> vector<2x80xf32>
    %cst_104 = arith.constant dense<0.000000e+00> : vector<2x128xf32>
    %305 = tpu.matmul %304, %3, %cst_104 {dimension_numbers = #tpu.dot_dimension_numbers<[1], [0], [0], [1], [0, 0, 1, 1], [], []>} : vector<2x80xf32>, vector<80x128xf32>, vector<2x128xf32> -> vector<2x128xf32>
    %306 = vector.broadcast %12 : vector<1x128xf32> to vector<2x128xf32>
    %307 = arith.addf %305, %306 : vector<2x128xf32>
    %308 = vector.extract_strided_slice %307 {offsets = [0, 0], sizes = [2, 32], strides = [1, 1]} : vector<2x128xf32> to vector<2x32xf32>
    %309 = arith.negf %308 : vector<2x32xf32>
    %310 = math.exp %309 : vector<2x32xf32>
    %cst_105 = arith.constant 1.000000e+00 : f32
    %311 = vector.broadcast %cst_105 : f32 to vector<2x32xf32>
    %312 = arith.addf %311, %310 : vector<2x32xf32>
    %313 = arith.divf %311, %312 : vector<2x32xf32>
    %314 = vector.extract_strided_slice %307 {offsets = [0, 32], sizes = [2, 32], strides = [1, 1]} : vector<2x128xf32> to vector<2x32xf32>
    %315 = arith.negf %314 : vector<2x32xf32>
    %316 = math.exp %315 : vector<2x32xf32>
    %cst_106 = arith.constant 1.000000e+00 : f32
    %317 = vector.broadcast %cst_106 : f32 to vector<2x32xf32>
    %318 = arith.addf %317, %316 : vector<2x32xf32>
    %319 = arith.divf %317, %318 : vector<2x32xf32>
    %320 = vector.extract_strided_slice %307 {offsets = [0, 64], sizes = [2, 32], strides = [1, 1]} : vector<2x128xf32> to vector<2x32xf32>
    %321 = math.tanh %320 : vector<2x32xf32>
    %322 = vector.extract_strided_slice %307 {offsets = [0, 96], sizes = [2, 32], strides = [1, 1]} : vector<2x128xf32> to vector<2x32xf32>
    %323 = arith.negf %322 : vector<2x32xf32>
    %324 = math.exp %323 : vector<2x32xf32>
    %cst_107 = arith.constant 1.000000e+00 : f32
    %325 = vector.broadcast %cst_107 : f32 to vector<2x32xf32>
    %326 = arith.addf %325, %324 : vector<2x32xf32>
    %327 = arith.divf %325, %326 : vector<2x32xf32>
    %328 = arith.mulf %319, %237 : vector<2x32xf32>
    %329 = arith.mulf %313, %321 : vector<2x32xf32>
    %330 = arith.addf %328, %329 : vector<2x32xf32>
    %331 = math.tanh %330 : vector<2x32xf32>
    %332 = arith.mulf %327, %331 : vector<2x32xf32>
    %333 = tpu.concatenate %260, %261 in 1 : vector<2x8xf32>, vector<2x8xf32> -> vector<2x16xf32>
    %cst_108 = arith.constant dense<0.000000e+00> : vector<2x128xf32>
    %334 = tpu.matmul %333, %8, %cst_108 {dimension_numbers = #tpu.dot_dimension_numbers<[1], [0], [0], [1], [0, 0, 1, 1], [], []>} : vector<2x16xf32>, vector<16x128xf32>, vector<2x128xf32> -> vector<2x128xf32>
    %cst_109 = arith.constant dense<0.000000e+00> : vector<2x128xf32>
    %335 = tpu.matmul %332, %6, %cst_109 {dimension_numbers = #tpu.dot_dimension_numbers<[1], [0], [0], [1], [0, 0, 1, 1], [], []>} : vector<2x32xf32>, vector<32x128xf32>, vector<2x128xf32> -> vector<2x128xf32>
    %336 = arith.addf %335, %9 : vector<2x128xf32>
    %337 = arith.addf %336, %334 : vector<2x128xf32>
    %338 = math.tanh %337 : vector<2x128xf32>
    %cst_110 = arith.constant dense<0.000000e+00> : vector<2x8xf32>
    %339 = tpu.matmul %338, %7, %cst_110 {dimension_numbers = #tpu.dot_dimension_numbers<[1], [0], [0], [1], [0, 0, 1, 1], [], []>} : vector<2x128xf32>, vector<128x8xf32>, vector<2x8xf32> -> vector<2x8xf32>
    %cst_111 = arith.constant dense<0xFF800000> : vector<2xf32>
    %340 = vector.multi_reduction <maximumf>, %339, %cst_111 [1] : vector<2x8xf32> to vector<2xf32>
    %341 = vector.shape_cast %340 : vector<2xf32> to vector<2x1xf32>
    %342 = vector.broadcast %341 : vector<2x1xf32> to vector<2x8xf32>
    %343 = arith.subf %339, %342 : vector<2x8xf32>
    %344 = math.exp %343 : vector<2x8xf32>
    %cst_112 = arith.constant dense<0.000000e+00> : vector<2xf32>
    %345 = vector.multi_reduction <add>, %344, %cst_112 [1] : vector<2x8xf32> to vector<2xf32>
    %346 = vector.shape_cast %345 : vector<2xf32> to vector<2x1xf32>
    %347 = tpu.reciprocal %346 {approx = true} : vector<2x1xf32> -> vector<2x1xf32>
    %348 = arith.mulf %346, %347 : vector<2x1xf32>
    %cst_113 = arith.constant 2.000000e+00 : f32
    %349 = vector.broadcast %cst_113 : f32 to vector<2x1xf32>
    %350 = arith.subf %349, %348 : vector<2x1xf32>
    %351 = arith.mulf %347, %350 : vector<2x1xf32>
    %352 = vector.broadcast %351 : vector<2x1xf32> to vector<2x8xf32>
    %353 = arith.mulf %344, %352 : vector<2x8xf32>
    %354 = arith.addf %261, %353 : vector<2x8xf32>
    %355 = tpu.concatenate %353, %353 in 1 : vector<2x8xf32>, vector<2x8xf32> -> vector<2x16xf32>
    %356 = arith.mulf %355, %11 : vector<2x16xf32>
    %cst_114 = arith.constant dense<0.000000e+00> : vector<2x32xf32>
    %357 = tpu.matmul %356, %10, %cst_114 {dimension_numbers = #tpu.dot_dimension_numbers<[1], [0], [0], [1], [0, 0, 1, 1], [], []>} : vector<2x16xf32>, vector<16x32xf32>, vector<2x32xf32> -> vector<2x32xf32>
    %358 = tpu.concatenate %332, %357, %293 in 1 : vector<2x32xf32>, vector<2x32xf32>, vector<2x32xf32> -> vector<2x96xf32>
    %cst_115 = arith.constant dense<0.000000e+00> : vector<2x128xf32>
    %359 = tpu.matmul %358, %4, %cst_115 {dimension_numbers = #tpu.dot_dimension_numbers<[1], [0], [0], [1], [0, 0, 1, 1], [], []>} : vector<2x96xf32>, vector<96x128xf32>, vector<2x128xf32> -> vector<2x128xf32>
    %360 = vector.broadcast %13 : vector<1x128xf32> to vector<2x128xf32>
    %361 = arith.addf %359, %360 : vector<2x128xf32>
    %362 = vector.extract_strided_slice %361 {offsets = [0, 0], sizes = [2, 32], strides = [1, 1]} : vector<2x128xf32> to vector<2x32xf32>
    %363 = arith.negf %362 : vector<2x32xf32>
    %364 = math.exp %363 : vector<2x32xf32>
    %cst_116 = arith.constant 1.000000e+00 : f32
    %365 = vector.broadcast %cst_116 : f32 to vector<2x32xf32>
    %366 = arith.addf %365, %364 : vector<2x32xf32>
    %367 = arith.divf %365, %366 : vector<2x32xf32>
    %368 = vector.extract_strided_slice %361 {offsets = [0, 32], sizes = [2, 32], strides = [1, 1]} : vector<2x128xf32> to vector<2x32xf32>
    %369 = arith.negf %368 : vector<2x32xf32>
    %370 = math.exp %369 : vector<2x32xf32>
    %cst_117 = arith.constant 1.000000e+00 : f32
    %371 = vector.broadcast %cst_117 : f32 to vector<2x32xf32>
    %372 = arith.addf %371, %370 : vector<2x32xf32>
    %373 = arith.divf %371, %372 : vector<2x32xf32>
    %374 = vector.extract_strided_slice %361 {offsets = [0, 64], sizes = [2, 32], strides = [1, 1]} : vector<2x128xf32> to vector<2x32xf32>
    %375 = math.tanh %374 : vector<2x32xf32>
    %376 = vector.extract_strided_slice %361 {offsets = [0, 96], sizes = [2, 32], strides = [1, 1]} : vector<2x128xf32> to vector<2x32xf32>
    %377 = arith.negf %376 : vector<2x32xf32>
    %378 = math.exp %377 : vector<2x32xf32>
    %cst_118 = arith.constant 1.000000e+00 : f32
    %379 = vector.broadcast %cst_118 : f32 to vector<2x32xf32>
    %380 = arith.addf %379, %378 : vector<2x32xf32>
    %381 = arith.divf %379, %380 : vector<2x32xf32>
    %382 = arith.mulf %373, %291 : vector<2x32xf32>
    %383 = arith.mulf %367, %375 : vector<2x32xf32>
    %384 = arith.addf %382, %383 : vector<2x32xf32>
    %385 = math.tanh %384 : vector<2x32xf32>
    %386 = arith.mulf %381, %385 : vector<2x32xf32>
    %387 = tpu.concatenate %384, %357 in 1 : vector<2x32xf32>, vector<2x32xf32> -> vector<2x64xf32>
    %cst_119 = arith.constant dense<0.000000e+00> : vector<2x17xf32>
    %388 = tpu.matmul %387, %5, %cst_119 {dimension_numbers = #tpu.dot_dimension_numbers<[1], [0], [0], [1], [0, 0, 1, 1], [], []>} : vector<2x64xf32>, vector<64x17xf32>, vector<2x17xf32> -> vector<2x17xf32>
    %389 = vector.broadcast %14 : vector<1x17xf32> to vector<2x17xf32>
    %390 = arith.addf %388, %389 : vector<2x17xf32>
    %391 = tpu.concatenate %390, %353, %15 in 1 : vector<2x17xf32>, vector<2x8xf32>, vector<2x103xf32> -> vector<2x128xf32>
    %c3_120 = arith.constant 3 : index
    %c0_121 = arith.constant 0 : index
    %c0_122 = arith.constant 0 : index
    %392 = vector.load %arg12[%c3_120, %c0_121, %c0_122] : memref<6x2x128xf32, #tpu.memory_space<vmem>>, vector<1x2x128xf32>
    %393 = vector.shape_cast %392 : vector<1x2x128xf32> to vector<2x128xf32>
    %394 = vector.shape_cast %391 : vector<2x128xf32> to vector<1x2x128xf32>
    tpu.vector_store %arg12[%c3_120, %c0_121, %c0_122], %394 {strides = array<i32>} : memref<6x2x128xf32, #tpu.memory_space<vmem>>, vector<1x2x128xf32>,
    %c4 = arith.constant 4 : index
    %c0_123 = arith.constant 0 : index
    %c0_124 = arith.constant 0 : index
    %395 = vector.load %arg1[%c4, %c0_123, %c0_124] : memref<6x2x16xf32, #tpu.memory_space<vmem>>, vector<1x2x16xf32>
    %396 = vector.shape_cast %395 : vector<1x2x16xf32> to vector<2x16xf32>
    %397 = tpu.concatenate %396, %357, %332 in 1 : vector<2x16xf32>, vector<2x32xf32>, vector<2x32xf32> -> vector<2x80xf32>
    %cst_125 = arith.constant dense<0.000000e+00> : vector<2x128xf32>
    %398 = tpu.matmul %397, %3, %cst_125 {dimension_numbers = #tpu.dot_dimension_numbers<[1], [0], [0], [1], [0, 0, 1, 1], [], []>} : vector<2x80xf32>, vector<80x128xf32>, vector<2x128xf32> -> vector<2x128xf32>
    %399 = vector.broadcast %12 : vector<1x128xf32> to vector<2x128xf32>
    %400 = arith.addf %398, %399 : vector<2x128xf32>
    %401 = vector.extract_strided_slice %400 {offsets = [0, 0], sizes = [2, 32], strides = [1, 1]} : vector<2x128xf32> to vector<2x32xf32>
    %402 = arith.negf %401 : vector<2x32xf32>
    %403 = math.exp %402 : vector<2x32xf32>
    %cst_126 = arith.constant 1.000000e+00 : f32
    %404 = vector.broadcast %cst_126 : f32 to vector<2x32xf32>
    %405 = arith.addf %404, %403 : vector<2x32xf32>
    %406 = arith.divf %404, %405 : vector<2x32xf32>
    %407 = vector.extract_strided_slice %400 {offsets = [0, 32], sizes = [2, 32], strides = [1, 1]} : vector<2x128xf32> to vector<2x32xf32>
    %408 = arith.negf %407 : vector<2x32xf32>
    %409 = math.exp %408 : vector<2x32xf32>
    %cst_127 = arith.constant 1.000000e+00 : f32
    %410 = vector.broadcast %cst_127 : f32 to vector<2x32xf32>
    %411 = arith.addf %410, %409 : vector<2x32xf32>
    %412 = arith.divf %410, %411 : vector<2x32xf32>
    %413 = vector.extract_strided_slice %400 {offsets = [0, 64], sizes = [2, 32], strides = [1, 1]} : vector<2x128xf32> to vector<2x32xf32>
    %414 = math.tanh %413 : vector<2x32xf32>
    %415 = vector.extract_strided_slice %400 {offsets = [0, 96], sizes = [2, 32], strides = [1, 1]} : vector<2x128xf32> to vector<2x32xf32>
    %416 = arith.negf %415 : vector<2x32xf32>
    %417 = math.exp %416 : vector<2x32xf32>
    %cst_128 = arith.constant 1.000000e+00 : f32
    %418 = vector.broadcast %cst_128 : f32 to vector<2x32xf32>
    %419 = arith.addf %418, %417 : vector<2x32xf32>
    %420 = arith.divf %418, %419 : vector<2x32xf32>
    %421 = arith.mulf %412, %330 : vector<2x32xf32>
    %422 = arith.mulf %406, %414 : vector<2x32xf32>
    %423 = arith.addf %421, %422 : vector<2x32xf32>
    %424 = math.tanh %423 : vector<2x32xf32>
    %425 = arith.mulf %420, %424 : vector<2x32xf32>
    %426 = tpu.concatenate %353, %354 in 1 : vector<2x8xf32>, vector<2x8xf32> -> vector<2x16xf32>
    %cst_129 = arith.constant dense<0.000000e+00> : vector<2x128xf32>
    %427 = tpu.matmul %426, %8, %cst_129 {dimension_numbers = #tpu.dot_dimension_numbers<[1], [0], [0], [1], [0, 0, 1, 1], [], []>} : vector<2x16xf32>, vector<16x128xf32>, vector<2x128xf32> -> vector<2x128xf32>
    %cst_130 = arith.constant dense<0.000000e+00> : vector<2x128xf32>
    %428 = tpu.matmul %425, %6, %cst_130 {dimension_numbers = #tpu.dot_dimension_numbers<[1], [0], [0], [1], [0, 0, 1, 1], [], []>} : vector<2x32xf32>, vector<32x128xf32>, vector<2x128xf32> -> vector<2x128xf32>
    %429 = arith.addf %428, %9 : vector<2x128xf32>
    %430 = arith.addf %429, %427 : vector<2x128xf32>
    %431 = math.tanh %430 : vector<2x128xf32>
    %cst_131 = arith.constant dense<0.000000e+00> : vector<2x8xf32>
    %432 = tpu.matmul %431, %7, %cst_131 {dimension_numbers = #tpu.dot_dimension_numbers<[1], [0], [0], [1], [0, 0, 1, 1], [], []>} : vector<2x128xf32>, vector<128x8xf32>, vector<2x8xf32> -> vector<2x8xf32>
    %cst_132 = arith.constant dense<0xFF800000> : vector<2xf32>
    %433 = vector.multi_reduction <maximumf>, %432, %cst_132 [1] : vector<2x8xf32> to vector<2xf32>
    %434 = vector.shape_cast %433 : vector<2xf32> to vector<2x1xf32>
    %435 = vector.broadcast %434 : vector<2x1xf32> to vector<2x8xf32>
    %436 = arith.subf %432, %435 : vector<2x8xf32>
    %437 = math.exp %436 : vector<2x8xf32>
    %cst_133 = arith.constant dense<0.000000e+00> : vector<2xf32>
    %438 = vector.multi_reduction <add>, %437, %cst_133 [1] : vector<2x8xf32> to vector<2xf32>
    %439 = vector.shape_cast %438 : vector<2xf32> to vector<2x1xf32>
    %440 = tpu.reciprocal %439 {approx = true} : vector<2x1xf32> -> vector<2x1xf32>
    %441 = arith.mulf %439, %440 : vector<2x1xf32>
    %cst_134 = arith.constant 2.000000e+00 : f32
    %442 = vector.broadcast %cst_134 : f32 to vector<2x1xf32>
    %443 = arith.subf %442, %441 : vector<2x1xf32>
    %444 = arith.mulf %440, %443 : vector<2x1xf32>
    %445 = vector.broadcast %444 : vector<2x1xf32> to vector<2x8xf32>
    %446 = arith.mulf %437, %445 : vector<2x8xf32>
    %447 = arith.addf %354, %446 : vector<2x8xf32>
    %448 = tpu.concatenate %446, %446 in 1 : vector<2x8xf32>, vector<2x8xf32> -> vector<2x16xf32>
    %449 = arith.mulf %448, %11 : vector<2x16xf32>
    %cst_135 = arith.constant dense<0.000000e+00> : vector<2x32xf32>
    %450 = tpu.matmul %449, %10, %cst_135 {dimension_numbers = #tpu.dot_dimension_numbers<[1], [0], [0], [1], [0, 0, 1, 1], [], []>} : vector<2x16xf32>, vector<16x32xf32>, vector<2x32xf32> -> vector<2x32xf32>
    %451 = tpu.concatenate %425, %450, %386 in 1 : vector<2x32xf32>, vector<2x32xf32>, vector<2x32xf32> -> vector<2x96xf32>
    %cst_136 = arith.constant dense<0.000000e+00> : vector<2x128xf32>
    %452 = tpu.matmul %451, %4, %cst_136 {dimension_numbers = #tpu.dot_dimension_numbers<[1], [0], [0], [1], [0, 0, 1, 1], [], []>} : vector<2x96xf32>, vector<96x128xf32>, vector<2x128xf32> -> vector<2x128xf32>
    %453 = vector.broadcast %13 : vector<1x128xf32> to vector<2x128xf32>
    %454 = arith.addf %452, %453 : vector<2x128xf32>
    %455 = vector.extract_strided_slice %454 {offsets = [0, 0], sizes = [2, 32], strides = [1, 1]} : vector<2x128xf32> to vector<2x32xf32>
    %456 = arith.negf %455 : vector<2x32xf32>
    %457 = math.exp %456 : vector<2x32xf32>
    %cst_137 = arith.constant 1.000000e+00 : f32
    %458 = vector.broadcast %cst_137 : f32 to vector<2x32xf32>
    %459 = arith.addf %458, %457 : vector<2x32xf32>
    %460 = arith.divf %458, %459 : vector<2x32xf32>
    %461 = vector.extract_strided_slice %454 {offsets = [0, 32], sizes = [2, 32], strides = [1, 1]} : vector<2x128xf32> to vector<2x32xf32>
    %462 = arith.negf %461 : vector<2x32xf32>
    %463 = math.exp %462 : vector<2x32xf32>
    %cst_138 = arith.constant 1.000000e+00 : f32
    %464 = vector.broadcast %cst_138 : f32 to vector<2x32xf32>
    %465 = arith.addf %464, %463 : vector<2x32xf32>
    %466 = arith.divf %464, %465 : vector<2x32xf32>
    %467 = vector.extract_strided_slice %454 {offsets = [0, 64], sizes = [2, 32], strides = [1, 1]} : vector<2x128xf32> to vector<2x32xf32>
    %468 = math.tanh %467 : vector<2x32xf32>
    %469 = vector.extract_strided_slice %454 {offsets = [0, 96], sizes = [2, 32], strides = [1, 1]} : vector<2x128xf32> to vector<2x32xf32>
    %470 = arith.negf %469 : vector<2x32xf32>
    %471 = math.exp %470 : vector<2x32xf32>
    %cst_139 = arith.constant 1.000000e+00 : f32
    %472 = vector.broadcast %cst_139 : f32 to vector<2x32xf32>
    %473 = arith.addf %472, %471 : vector<2x32xf32>
    %474 = arith.divf %472, %473 : vector<2x32xf32>
    %475 = arith.mulf %466, %384 : vector<2x32xf32>
    %476 = arith.mulf %460, %468 : vector<2x32xf32>
    %477 = arith.addf %475, %476 : vector<2x32xf32>
    %478 = math.tanh %477 : vector<2x32xf32>
    %479 = arith.mulf %474, %478 : vector<2x32xf32>
    %480 = tpu.concatenate %477, %450 in 1 : vector<2x32xf32>, vector<2x32xf32> -> vector<2x64xf32>
    %cst_140 = arith.constant dense<0.000000e+00> : vector<2x17xf32>
    %481 = tpu.matmul %480, %5, %cst_140 {dimension_numbers = #tpu.dot_dimension_numbers<[1], [0], [0], [1], [0, 0, 1, 1], [], []>} : vector<2x64xf32>, vector<64x17xf32>, vector<2x17xf32> -> vector<2x17xf32>
    %482 = vector.broadcast %14 : vector<1x17xf32> to vector<2x17xf32>
    %483 = arith.addf %481, %482 : vector<2x17xf32>
    %484 = tpu.concatenate %483, %446, %15 in 1 : vector<2x17xf32>, vector<2x8xf32>, vector<2x103xf32> -> vector<2x128xf32>
    %c4_141 = arith.constant 4 : index
    %c0_142 = arith.constant 0 : index
    %c0_143 = arith.constant 0 : index
    %485 = vector.load %arg12[%c4_141, %c0_142, %c0_143] : memref<6x2x128xf32, #tpu.memory_space<vmem>>, vector<1x2x128xf32>
    %486 = vector.shape_cast %485 : vector<1x2x128xf32> to vector<2x128xf32>
    %487 = vector.shape_cast %484 : vector<2x128xf32> to vector<1x2x128xf32>
    tpu.vector_store %arg12[%c4_141, %c0_142, %c0_143], %487 {strides = array<i32>} : memref<6x2x128xf32, #tpu.memory_space<vmem>>, vector<1x2x128xf32>,
    %c5 = arith.constant 5 : index
    %c0_144 = arith.constant 0 : index
    %c0_145 = arith.constant 0 : index
    %488 = vector.load %arg1[%c5, %c0_144, %c0_145] : memref<6x2x16xf32, #tpu.memory_space<vmem>>, vector<1x2x16xf32>
    %489 = vector.shape_cast %488 : vector<1x2x16xf32> to vector<2x16xf32>
    %490 = tpu.concatenate %489, %450, %425 in 1 : vector<2x16xf32>, vector<2x32xf32>, vector<2x32xf32> -> vector<2x80xf32>
    %cst_146 = arith.constant dense<0.000000e+00> : vector<2x128xf32>
    %491 = tpu.matmul %490, %3, %cst_146 {dimension_numbers = #tpu.dot_dimension_numbers<[1], [0], [0], [1], [0, 0, 1, 1], [], []>} : vector<2x80xf32>, vector<80x128xf32>, vector<2x128xf32> -> vector<2x128xf32>
    %492 = vector.broadcast %12 : vector<1x128xf32> to vector<2x128xf32>
    %493 = arith.addf %491, %492 : vector<2x128xf32>
    %494 = vector.extract_strided_slice %493 {offsets = [0, 0], sizes = [2, 32], strides = [1, 1]} : vector<2x128xf32> to vector<2x32xf32>
    %495 = arith.negf %494 : vector<2x32xf32>
    %496 = math.exp %495 : vector<2x32xf32>
    %cst_147 = arith.constant 1.000000e+00 : f32
    %497 = vector.broadcast %cst_147 : f32 to vector<2x32xf32>
    %498 = arith.addf %497, %496 : vector<2x32xf32>
    %499 = arith.divf %497, %498 : vector<2x32xf32>
    %500 = vector.extract_strided_slice %493 {offsets = [0, 32], sizes = [2, 32], strides = [1, 1]} : vector<2x128xf32> to vector<2x32xf32>
    %501 = arith.negf %500 : vector<2x32xf32>
    %502 = math.exp %501 : vector<2x32xf32>
    %cst_148 = arith.constant 1.000000e+00 : f32
    %503 = vector.broadcast %cst_148 : f32 to vector<2x32xf32>
    %504 = arith.addf %503, %502 : vector<2x32xf32>
    %505 = arith.divf %503, %504 : vector<2x32xf32>
    %506 = vector.extract_strided_slice %493 {offsets = [0, 64], sizes = [2, 32], strides = [1, 1]} : vector<2x128xf32> to vector<2x32xf32>
    %507 = math.tanh %506 : vector<2x32xf32>
    %508 = vector.extract_strided_slice %493 {offsets = [0, 96], sizes = [2, 32], strides = [1, 1]} : vector<2x128xf32> to vector<2x32xf32>
    %509 = arith.negf %508 : vector<2x32xf32>
    %510 = math.exp %509 : vector<2x32xf32>
    %cst_149 = arith.constant 1.000000e+00 : f32
    %511 = vector.broadcast %cst_149 : f32 to vector<2x32xf32>
    %512 = arith.addf %511, %510 : vector<2x32xf32>
    %513 = arith.divf %511, %512 : vector<2x32xf32>
    %514 = arith.mulf %505, %423 : vector<2x32xf32>
    %515 = arith.mulf %499, %507 : vector<2x32xf32>
    %516 = arith.addf %514, %515 : vector<2x32xf32>
    %517 = math.tanh %516 : vector<2x32xf32>
    %518 = arith.mulf %513, %517 : vector<2x32xf32>
    %519 = tpu.concatenate %446, %447 in 1 : vector<2x8xf32>, vector<2x8xf32> -> vector<2x16xf32>
    %cst_150 = arith.constant dense<0.000000e+00> : vector<2x128xf32>
    %520 = tpu.matmul %519, %8, %cst_150 {dimension_numbers = #tpu.dot_dimension_numbers<[1], [0], [0], [1], [0, 0, 1, 1], [], []>} : vector<2x16xf32>, vector<16x128xf32>, vector<2x128xf32> -> vector<2x128xf32>
    %cst_151 = arith.constant dense<0.000000e+00> : vector<2x128xf32>
    %521 = tpu.matmul %518, %6, %cst_151 {dimension_numbers = #tpu.dot_dimension_numbers<[1], [0], [0], [1], [0, 0, 1, 1], [], []>} : vector<2x32xf32>, vector<32x128xf32>, vector<2x128xf32> -> vector<2x128xf32>
    %522 = arith.addf %521, %9 : vector<2x128xf32>
    %523 = arith.addf %522, %520 : vector<2x128xf32>
    %524 = math.tanh %523 : vector<2x128xf32>
    %cst_152 = arith.constant dense<0.000000e+00> : vector<2x8xf32>
    %525 = tpu.matmul %524, %7, %cst_152 {dimension_numbers = #tpu.dot_dimension_numbers<[1], [0], [0], [1], [0, 0, 1, 1], [], []>} : vector<2x128xf32>, vector<128x8xf32>, vector<2x8xf32> -> vector<2x8xf32>
    %cst_153 = arith.constant dense<0xFF800000> : vector<2xf32>
    %526 = vector.multi_reduction <maximumf>, %525, %cst_153 [1] : vector<2x8xf32> to vector<2xf32>
    %527 = vector.shape_cast %526 : vector<2xf32> to vector<2x1xf32>
    %528 = vector.broadcast %527 : vector<2x1xf32> to vector<2x8xf32>
    %529 = arith.subf %525, %528 : vector<2x8xf32>
    %530 = math.exp %529 : vector<2x8xf32>
    %cst_154 = arith.constant dense<0.000000e+00> : vector<2xf32>
    %531 = vector.multi_reduction <add>, %530, %cst_154 [1] : vector<2x8xf32> to vector<2xf32>
    %532 = vector.shape_cast %531 : vector<2xf32> to vector<2x1xf32>
    %533 = tpu.reciprocal %532 {approx = true} : vector<2x1xf32> -> vector<2x1xf32>
    %534 = arith.mulf %532, %533 : vector<2x1xf32>
    %cst_155 = arith.constant 2.000000e+00 : f32
    %535 = vector.broadcast %cst_155 : f32 to vector<2x1xf32>
    %536 = arith.subf %535, %534 : vector<2x1xf32>
    %537 = arith.mulf %533, %536 : vector<2x1xf32>
    %538 = vector.broadcast %537 : vector<2x1xf32> to vector<2x8xf32>
    %539 = arith.mulf %530, %538 : vector<2x8xf32>
    %540 = arith.addf %447, %539 : vector<2x8xf32>
    %541 = tpu.concatenate %539, %539 in 1 : vector<2x8xf32>, vector<2x8xf32> -> vector<2x16xf32>
    %542 = arith.mulf %541, %11 : vector<2x16xf32>
    %cst_156 = arith.constant dense<0.000000e+00> : vector<2x32xf32>
    %543 = tpu.matmul %542, %10, %cst_156 {dimension_numbers = #tpu.dot_dimension_numbers<[1], [0], [0], [1], [0, 0, 1, 1], [], []>} : vector<2x16xf32>, vector<16x32xf32>, vector<2x32xf32> -> vector<2x32xf32>
    %544 = tpu.concatenate %518, %543, %479 in 1 : vector<2x32xf32>, vector<2x32xf32>, vector<2x32xf32> -> vector<2x96xf32>
    %cst_157 = arith.constant dense<0.000000e+00> : vector<2x128xf32>
    %545 = tpu.matmul %544, %4, %cst_157 {dimension_numbers = #tpu.dot_dimension_numbers<[1], [0], [0], [1], [0, 0, 1, 1], [], []>} : vector<2x96xf32>, vector<96x128xf32>, vector<2x128xf32> -> vector<2x128xf32>
    %546 = vector.broadcast %13 : vector<1x128xf32> to vector<2x128xf32>
    %547 = arith.addf %545, %546 : vector<2x128xf32>
    %548 = vector.extract_strided_slice %547 {offsets = [0, 0], sizes = [2, 32], strides = [1, 1]} : vector<2x128xf32> to vector<2x32xf32>
    %549 = arith.negf %548 : vector<2x32xf32>
    %550 = math.exp %549 : vector<2x32xf32>
    %cst_158 = arith.constant 1.000000e+00 : f32
    %551 = vector.broadcast %cst_158 : f32 to vector<2x32xf32>
    %552 = arith.addf %551, %550 : vector<2x32xf32>
    %553 = arith.divf %551, %552 : vector<2x32xf32>
    %554 = vector.extract_strided_slice %547 {offsets = [0, 32], sizes = [2, 32], strides = [1, 1]} : vector<2x128xf32> to vector<2x32xf32>
    %555 = arith.negf %554 : vector<2x32xf32>
    %556 = math.exp %555 : vector<2x32xf32>
    %cst_159 = arith.constant 1.000000e+00 : f32
    %557 = vector.broadcast %cst_159 : f32 to vector<2x32xf32>
    %558 = arith.addf %557, %556 : vector<2x32xf32>
    %559 = arith.divf %557, %558 : vector<2x32xf32>
    %560 = vector.extract_strided_slice %547 {offsets = [0, 64], sizes = [2, 32], strides = [1, 1]} : vector<2x128xf32> to vector<2x32xf32>
    %561 = math.tanh %560 : vector<2x32xf32>
    %562 = vector.extract_strided_slice %547 {offsets = [0, 96], sizes = [2, 32], strides = [1, 1]} : vector<2x128xf32> to vector<2x32xf32>
    %563 = arith.negf %562 : vector<2x32xf32>
    %564 = math.exp %563 : vector<2x32xf32>
    %cst_160 = arith.constant 1.000000e+00 : f32
    %565 = vector.broadcast %cst_160 : f32 to vector<2x32xf32>
    %566 = arith.addf %565, %564 : vector<2x32xf32>
    %567 = arith.divf %565, %566 : vector<2x32xf32>
    %568 = arith.mulf %559, %477 : vector<2x32xf32>
    %569 = arith.mulf %553, %561 : vector<2x32xf32>
    %570 = arith.addf %568, %569 : vector<2x32xf32>
    %571 = math.tanh %570 : vector<2x32xf32>
    %572 = arith.mulf %567, %571 : vector<2x32xf32>
    %573 = tpu.concatenate %570, %543 in 1 : vector<2x32xf32>, vector<2x32xf32> -> vector<2x64xf32>
    %cst_161 = arith.constant dense<0.000000e+00> : vector<2x17xf32>
    %574 = tpu.matmul %573, %5, %cst_161 {dimension_numbers = #tpu.dot_dimension_numbers<[1], [0], [0], [1], [0, 0, 1, 1], [], []>} : vector<2x64xf32>, vector<64x17xf32>, vector<2x17xf32> -> vector<2x17xf32>
    %575 = vector.broadcast %14 : vector<1x17xf32> to vector<2x17xf32>
    %576 = arith.addf %574, %575 : vector<2x17xf32>
    %577 = tpu.concatenate %576, %539, %15 in 1 : vector<2x17xf32>, vector<2x8xf32>, vector<2x103xf32> -> vector<2x128xf32>
    %c5_162 = arith.constant 5 : index
    %c0_163 = arith.constant 0 : index
    %c0_164 = arith.constant 0 : index
    %578 = vector.load %arg12[%c5_162, %c0_163, %c0_164] : memref<6x2x128xf32, #tpu.memory_space<vmem>>, vector<1x2x128xf32>
    %579 = vector.shape_cast %578 : vector<1x2x128xf32> to vector<2x128xf32>
    %580 = vector.shape_cast %577 : vector<2x128xf32> to vector<1x2x128xf32>
    tpu.vector_store %arg12[%c5_162, %c0_163, %c0_164], %580 {strides = array<i32>} : memref<6x2x128xf32, #tpu.memory_space<vmem>>, vector<1x2x128xf32>,
    %c0_165 = arith.constant 0 : index
    %c0_166 = arith.constant 0 : index
    %581 = vector.load %arg13[%c0_165, %c0_166] : memref<2x32xf32, #tpu.memory_space<vmem>>, vector<2x32xf32>
    tpu.vector_store %arg13[%c0_165, %c0_166], %518 {strides = array<i32>} : memref<2x32xf32, #tpu.memory_space<vmem>>, vector<2x32xf32>,
    %c0_167 = arith.constant 0 : index
    %c0_168 = arith.constant 0 : index
    %582 = vector.load %arg14[%c0_167, %c0_168] : memref<2x32xf32, #tpu.memory_space<vmem>>, vector<2x32xf32>
    tpu.vector_store %arg14[%c0_167, %c0_168], %516 {strides = array<i32>} : memref<2x32xf32, #tpu.memory_space<vmem>>, vector<2x32xf32>,
    %c0_169 = arith.constant 0 : index
    %c0_170 = arith.constant 0 : index
    %583 = vector.load %arg15[%c0_169, %c0_170] : memref<2x32xf32, #tpu.memory_space<vmem>>, vector<2x32xf32>
    tpu.vector_store %arg15[%c0_169, %c0_170], %572 {strides = array<i32>} : memref<2x32xf32, #tpu.memory_space<vmem>>, vector<2x32xf32>,
    %c0_171 = arith.constant 0 : index
    %c0_172 = arith.constant 0 : index
    %584 = vector.load %arg16[%c0_171, %c0_172] : memref<2x32xf32, #tpu.memory_space<vmem>>, vector<2x32xf32>
    tpu.vector_store %arg16[%c0_171, %c0_172], %570 {strides = array<i32>} : memref<2x32xf32, #tpu.memory_space<vmem>>, vector<2x32xf32>,
    %c0_173 = arith.constant 0 : index
    %c0_174 = arith.constant 0 : index
    %585 = vector.load %arg17[%c0_173, %c0_174] : memref<2x8xf32, #tpu.memory_space<vmem>>, vector<2x8xf32>
    tpu.vector_store %arg17[%c0_173, %c0_174], %539 {strides = array<i32>} : memref<2x8xf32, #tpu.memory_space<vmem>>, vector<2x8xf32>,
    %c0_175 = arith.constant 0 : index
    %c0_176 = arith.constant 0 : index
    %586 = vector.load %arg18[%c0_175, %c0_176] : memref<2x8xf32, #tpu.memory_space<vmem>>, vector<2x8xf32>
    tpu.vector_store %arg18[%c0_175, %c0_176], %540 {strides = array<i32>} : memref<2x8xf32, #tpu.memory_space<vmem>>, vector<2x8xf32>,
    %c0_177 = arith.constant 0 : index
    %c0_178 = arith.constant 0 : index
    %587 = vector.load %arg19[%c0_177, %c0_178] : memref<2x32xf32, #tpu.memory_space<vmem>>, vector<2x32xf32>
    tpu.vector_store %arg19[%c0_177, %c0_178], %543 {strides = array<i32>} : memref<2x32xf32, #tpu.memory_space<vmem>>, vector<2x32xf32>,
    return
  }
  func.func @transform_0(%arg0: i32) -> (i32, i32, i32) {
    %c0_i32 = arith.constant 0 : i32
    %c0_i32_0 = arith.constant 0 : i32
    %c0_i32_1 = arith.constant 0 : i32
    return %arg0, %c0_i32, %c0_i32_0 : i32, i32, i32
  }
  func.func @transform_1(%arg0: i32) -> (i32, i32) {
    %c0_i32 = arith.constant 0 : i32
    %c0_i32_0 = arith.constant 0 : i32
    %c0_i32_1 = arith.constant 0 : i32
    return %c0_i32, %c0_i32_0 : i32, i32
  }
  func.func @transform_2(%arg0: i32) -> (i32, i32) {
    %c0_i32 = arith.constant 0 : i32
    %c0_i32_0 = arith.constant 0 : i32
    %c0_i32_1 = arith.constant 0 : i32
    return %c0_i32, %c0_i32_0 : i32, i32
  }
  func.func @transform_3(%arg0: i32) -> (i32, i32) {
    %c0_i32 = arith.constant 0 : i32
    %c0_i32_0 = arith.constant 0 : i32
    %c0_i32_1 = arith.constant 0 : i32
    return %c0_i32, %c0_i32_0 : i32, i32
  }
  func.func @transform_4(%arg0: i32) -> (i32, i32) {
    %c0_i32 = arith.constant 0 : i32
    %c0_i32_0 = arith.constant 0 : i32
    %c0_i32_1 = arith.constant 0 : i32
    return %c0_i32, %c0_i32_0 : i32, i32
  }
  func.func @transform_5(%arg0: i32) -> (i32, i32) {
    %c0_i32 = arith.constant 0 : i32
    %c0_i32_0 = arith.constant 0 : i32
    %c0_i32_1 = arith.constant 0 : i32
    return %c0_i32, %c0_i32_0 : i32, i32
  }
  func.func @transform_6(%arg0: i32) -> (i32, i32) {
    %c0_i32 = arith.constant 0 : i32
    %c0_i32_0 = arith.constant 0 : i32
    %c0_i32_1 = arith.constant 0 : i32
    return %c0_i32, %c0_i32_0 : i32, i32
  }
  func.func @transform_7(%arg0: i32) -> (i32, i32) {
    %c0_i32 = arith.constant 0 : i32
    %c0_i32_0 = arith.constant 0 : i32
    %c0_i32_1 = arith.constant 0 : i32
    return %c0_i32, %c0_i32_0 : i32, i32
  }
  func.func @transform_8(%arg0: i32) -> (i32, i32) {
    %c0_i32 = arith.constant 0 : i32
    %c0_i32_0 = arith.constant 0 : i32
    %c0_i32_1 = arith.constant 0 : i32
    return %c0_i32, %c0_i32_0 : i32, i32
  }
  func.func @transform_9(%arg0: i32) -> (i32, i32) {
    %c0_i32 = arith.constant 0 : i32
    %c0_i32_0 = arith.constant 0 : i32
    %c0_i32_1 = arith.constant 0 : i32
    return %c0_i32, %c0_i32_0 : i32, i32
  }
  func.func @transform_10(%arg0: i32) -> (i32, i32) {
    %c0_i32 = arith.constant 0 : i32
    %c0_i32_0 = arith.constant 0 : i32
    %c0_i32_1 = arith.constant 0 : i32
    return %c0_i32, %c0_i32_0 : i32, i32
  }
  func.func @transform_11(%arg0: i32) -> (i32, i32, i32) {
    %c0_i32 = arith.constant 0 : i32
    %c0_i32_0 = arith.constant 0 : i32
    %c0_i32_1 = arith.constant 0 : i32
    return %arg0, %c0_i32, %c0_i32_0 : i32, i32, i32
  }
}

</mosaic_0001>

<bundles_post_ra>
// kernel: tpu_custom_call.1
= control target key start
LH: loop header
LB: loop body
LE: loop exit
PB: predicated region body
PF: predicated region fallthrough
CT: control target
= control target key end

     0   :  { %16 = vsyncpa [#allocation10], 0  ;;  %s7298_s0 = inlined_call_operand.hbm [shape: f32[6,2,16], index: 0, kind: input, shape index: {}]   ;;  %s7299_s1 = inlined_call_operand.vmem [shape: f32[16,32], index: 1, kind: input, shape index: {}]   ;;  %s7300_s2 = inlined_call_operand.hbm [shape: f32[2,16], index: 2, kind: input, shape index: {}]   ;;  %s7301_s3 = inlined_call_operand.hbm [shape: f32[2,128], index: 3, kind: input, shape index: {}]   ;;  %s7302_s4 = inlined_call_operand.hbm [shape: f32[16,128], index: 4, kind: input, shape index: {}]   ;;  %s7303_s5 = inlined_call_operand.vmem [shape: f32[32,128], index: 5, kind: input, shape index: {}]   ;;  %s7304_s6 = inlined_call_operand.vmem [shape: f32[128,8], index: 6, kind: input, shape index: {}]   ;;  %s7305_s7 = inlined_call_operand.vmem [shape: f32[80,128], index: 7, kind: input, shape index: {}]   ;;  %s7306_s8 = inlined_call_operand.vmem [shape: f32[96,128], index: 8, kind: input, shape index: {}]   ;;  %s7307_s9 = inlined_call_operand.vmem [shape: f32[64,17], index: 9, kind: input, shape index: {}]   ;;  %s7308_s10 = inlined_call_operand.vmem [shape: f32[3,128], index: 10, kind: input, shape index: {}]   ;;  %s7309_s11 = inlined_call_operand.hbm [shape: f32[6,2,128], index: 11, kind: output, shape index: {}]  }
   0x1   :  { %17 = vsyncpa [#allocation13], 0 }
   0x2   :  { %18 = vsyncpa [#allocation16], 0 }
   0x3   :  { %19 = vsyncpa [#allocation11], 0  ;;  %s5455_s17 = smov [#allocation12]   ;;  %s5456_s19 = smov [#allocation9]  }
   0x4   :  { %s40_s18 = sshll.u32 %s5455_s17, 4  ;;  %s25_s20 = sshll.u32 %s5456_s19, 4  ;;  %s41_s18 = int_to_ptr.vmem [resolvable:$true] %s40_s18  ;;  %s26_s20 = int_to_ptr.vmem [resolvable:$true] %s25_s20 }
   0x5   :  { %s5355_s21 = scalar_lea.vmem %s41_s18, 32  ;;  %p5360_p1 = scmp.lt.s32.totalorder %s41_s18, %s41_s18 }
   0x6   :  { %p5356_p0 = scmp.ne.s32.totalorder %s41_s18, %s5355_s21  ;;  %p5361_p2 = scmp.lt.s32.totalorder %s5355_s21, %s5355_s21 }
   0x8   :  { %p5362_p3 = por %p5361_p2, %p5360_p1 }
   0xa   :  { %p5363_p4 = pnand %p5362_p3, %p5356_p0 }
   0xc   :  { %5366 = shalt.err (!%p5363_p4)
}
   0xd   :  { %43 = dma.hbm_to_vmem [thread:$0]  %s7300_s2, 32, %s41_s18, [#allocation13]  }
   0xe   :  { %s5375_s24 = scalar_lea.vmem %s26_s20, 192  ;;  %p5380_p6 = scmp.lt.s32.totalorder %s26_s20, %s26_s20 }
   0xf   :  { %p5376_p5 = scmp.ne.s32.totalorder %s26_s20, %s5375_s24  ;;  %p5381_p7 = scmp.lt.s32.totalorder %s5375_s24, %s5375_s24 }
  0x11   :  { %p5382_p8 = por %p5381_p7, %p5380_p6 }
  0x13   :  { %p5383_p9 = pnand %p5382_p8, %p5376_p5 }
  0x15   :  { %5386 = shalt.err (!%p5383_p9)
}
  0x16   :  { %s5457_s25 = smov 32   ;;  %s5458_s26 = smov 2  }
  0x17   :  { %31 = dma.hbm_to_vmem [thread:$0]  %s7298_s0, 192, %s26_s20, [#allocation10], %s5457_s25, %s5457_s25, %s5458_s26  }
  0x18   :  { %s5459_s29 = smov [#allocation14]   ;;  %s5460_s12 = smov [#allocation15]  }
  0x19   :  { %s50_s30 = sshll.u32 %s5459_s29, 4  ;;  %s59_s2 = sshll.u32 %s5460_s12, 4  ;;  %s51_s30 = int_to_ptr.vmem [resolvable:$true] %s50_s30  ;;  %s60_s2 = int_to_ptr.vmem [resolvable:$true] %s59_s2 }
  0x1a   :  { %s5395_s13 = scalar_lea.vmem %s51_s30, 32  ;;  %p5400_p11 = scmp.lt.s32.totalorder %s51_s30, %s51_s30 }
  0x1b   :  { %p5396_p10 = scmp.ne.s32.totalorder %s51_s30, %s5395_s13  ;;  %p5401_p12 = scmp.lt.s32.totalorder %s5395_s13, %s5395_s13 }
  0x1d   :  { %p5402_p13 = por %p5401_p12, %p5400_p11 }
  0x1f   :  { %p5403_p0 = pnand %p5402_p13, %p5396_p10 }
  0x21   :  { %5406 = shalt.err (!%p5403_p0)
}
  0x22   :  { %53 = dma.hbm_to_vmem [thread:$0]  %s7301_s3, 32, %s51_s30, [#allocation13]  }
  0x23   :  { %s5415_s16 = scalar_lea.vmem %s60_s2, 256  ;;  %p5420_p2 = scmp.lt.s32.totalorder %s60_s2, %s60_s2 }
  0x24   :  { %p5416_p1 = scmp.ne.s32.totalorder %s60_s2, %s5415_s16  ;;  %p5421_p3 = scmp.lt.s32.totalorder %s5415_s16, %s5415_s16 }
  0x26   :  { %p5422_p4 = por %p5421_p3, %p5420_p2 }
  0x28   :  { %p5423_p5 = pnand %p5422_p4, %p5416_p1 }
  0x2a   :  { %5426 = shalt.err (!%p5423_p5)
}
  0x2b   :  { %s5461_s0 = smov 128   ;;  %s5462_s17 = smov 8  }
  0x2c   :  { %65 = dma.hbm_to_vmem [thread:$0]  %s7302_s4, 256, %s60_s2, [#allocation16], %s5461_s0, %s5461_s0, %s5462_s17  }
  0x2d   :  { %5447 = dma.done.wait [#allocation10], 192  }
  0x2e   :  { %5448 = vsyncadd [#allocation10], 4294967104 }
  0x2f   :  { %5449 = dma.done.wait [#allocation13], 64  }
  0x30   :  { %5450 = vsyncadd [#allocation13], 4294967232 }
  0x31   :  { %5451 = dma.done.wait [#allocation16], 256  }
  0x32   :  { %5452 = vsyncadd [#allocation16], 4294967040  ;;  %vm94_vm0 = vcmask 254976   ;;  %v7310_v0 = vmov 0.0   ;;  %vm5464_vm1 = vmmov 0   ;;  %v5567_v1 = vld [vmem:[%s7305_s7 + $0x48] sm:$0xff] }
  0x33   :  { %102 = vst.msk [vmem:[#allocation8] sm:$0x3] %vm94_vm0, %v7310_v0  ;;  %95 = vst.msk [vmem:[#allocation2] sm:$0x3] %vm94_vm0, %v7310_v0  ;;  %4365 = vmatprep.subr.mxu0 %v7310_v0  ;;  %4388 = vmatprep.subr.mxu1 %v7310_v0  ;;  %v5572_v2 = vld [vmem:[%s7305_s7 + $0x40] sm:$0xff]  ;;  %s5465_s22 = smov 16  }
  0x34   :  { %96 = vst.msk [vmem:[#allocation3] sm:$0x3] %vm94_vm0, %v7310_v0  ;;  %97 = vst.msk [vmem:[#allocation4] sm:$0x3] %vm94_vm0, %v7310_v0  ;;  %4385 = vmatprep.mubr.msk.f32.mxu0 %vm5464_vm1, %v7310_v0  ;;  %4392 = vmatprep.mubr.msk.f32.mxu1 %vm5464_vm1, %v7310_v0  ;;  %v5580_v4 = vld [vmem:[%s7305_s7 + $0x38] sm:$0xff]  ;;  %v5587_v6 = vld [vmem:[%s7305_s7 + $0x30] sm:$0xff] }
  0x35   :  { %98 = vst.msk [vmem:[#allocation5] sm:$0x3] %vm94_vm0, %v7310_v0  ;;  %4366 = vmatpush3.msra.mxu0 %v5567_v1  ;;  %s5466_s29 = smov 48   ;;  %v5594_v7 = vld [vmem:[%s7305_s7 + $0x28] sm:$0xff]  ;;  %v5601_v8 = vld [vmem:[%s7305_s7 + $0x20] sm:$0xff]  ;;  %v5608_v9 = vld [vmem:[%s7305_s7 + $0x18] sm:$0xff] }
  0x36   :  { %4367 = vmatprep.subr.mxu0 %v7310_v0  ;;  %v5615_v10 = vld [vmem:[%s7305_s7 + $0x10] sm:$0xff]  ;;  %v5622_v11 = vld [vmem:[%s7305_s7 + $0x8] sm:$0xff]  ;;  %v5629_v12 = vld [vmem:[%s7305_s7] sm:$0xff]  ;;  %vm178_vm2 = vcmask 130048   ;;  %vm180_vm3 = vcmask 392192   ;;  %vm186_vm4 = vcmask 654336  }
  0x37   :  { %4368 = vmatpush3.msra.mxu0 %v5572_v2  ;;  %v169_v14 = vld [vmem:[#allocation9] sm:$0x3]  ;;  %v5643_v18 = vld [vmem:[%s7308_s10] ss:$0 sm:$0xff]  ;;  %s5467_s23 = smov 64   ;;  %vm99_vm5 = vcmask 58368  }
  0x38   :  { %4369 = vmatprep.subr.mxu0 %v7310_v0  ;;  %101 = vst.msk [vmem:[#allocation7] sm:$0x3] %vm99_vm5, %v7310_v0  ;;  %100 = vst.msk [vmem:[#allocation6] sm:$0x3] %vm99_vm5, %v7310_v0  ;;  %v5660_v35 = vld [vmem:[#allocation15 + $0x8] sm:$0xff]  ;;  %v5662_v36 = vld [vmem:[#allocation15] sm:$0xff] }
  0x39   :  { %4370 = vmatpush3.msra.mxu0 %v5580_v4  ;;  %4389 = vmatpush3.msra.mxu1 %v5660_v35  ;;  %vm292_vm6 = vcmask 64512   ;;  %v5671_v39 = vld [vmem:[%s7303_s5 + $0x18] sm:$0xff]  ;;  %v5678_v41 = vld [vmem:[%s7303_s5 + $0x10] sm:$0xff]  ;;  %v5687_v43 = vld [vmem:[%s7303_s5 + $0x8] sm:$0xff]  ;;  %vm370_vm7 = vcmask 261120   ;;  %s5468_s14 = smov 80  }
  0x3a   :  { %v168_v3 = vld [vmem:[#allocation8] sm:$0x3]  ;;  %v162_v5 = vld [vmem:[#allocation2] sm:$0x3]  ;;  %4371 = vmatprep.subr.mxu0 %v7310_v0  ;;  %4390 = vmatprep.subr.mxu1 %v7310_v0  ;;  %v5708_v49 = vld [vmem:[%s7304_s6 + $0x78] sm:$0xff]  ;;  %vm620_vm8 = vcmask 523264  }
  0x3b   :  { %171 = vrot.lane.b32.xlu0 %v168_v3, %s5465_s22  ;;  %4372 = vmatpush3.msra.mxu0 %v5587_v6  ;;  %v163_v23 = vld [vmem:[#allocation3] sm:$0x3]  ;;  %v5717_v51 = vld [vmem:[%s7304_s6 + $0x70] sm:$0xff]  ;;  %v5726_v52 = vld [vmem:[%s7304_s6 + $0x68] sm:$0xff]  ;;  %vm626_vm9 = vcmask 785408   ;;  %s5469_s21 = smov 96  }
  0x3c   :  { %4373 = vmatprep.subr.mxu0 %v7310_v0  ;;  %4391 = vmatpush3.msra.mxu1 %v5662_v36  ;;  %v5695_v44 = vld [vmem:[%s7303_s5] sm:$0xff]  ;;  %v5740_v54 = vld [vmem:[%s7304_s6 + $0x58] sm:$0xff]  ;;  %v5747_v55 = vld [vmem:[%s7304_s6 + $0x50] sm:$0xff]  ;;  %vm813_vm10 = vcmask 138240   ;;  %vm815_vm11 = vcmask 203776  }
  0x3d   :  { %4374 = vmatpush3.msra.mxu0 %v5594_v7  ;;  %4395 = vmatprep.subr.mxu1 %v7310_v0  ;;  %v5733_v53 = vld [vmem:[%s7304_s6 + $0x60] sm:$0xff]  ;;  %v5756_v56 = vld [vmem:[%s7304_s6 + $0x48] sm:$0xff]  ;;  %v5770_v58 = vld [vmem:[%s7304_s6 + $0x38] sm:$0xff] }
  0x3e   :  { %4375 = vmatprep.subr.mxu0 %v7310_v0  ;;  %v5763_v57 = vld [vmem:[%s7304_s6 + $0x40] sm:$0xff]  ;;  %7348 = vst [vmem:[#allocation23_spill] sm:$0xff] %v5770_v58  ;;  %v5777_v59 = vld [vmem:[%s7304_s6 + $0x30] sm:$0xff]  ;;  %v5782_v60 = vld [vmem:[%s7304_s6 + $0x28] sm:$0xff] }
  0x3f   :  { %175 = vrot.lane.b32.xlu0 %v162_v5, %s5466_s29  ;;  %4376 = vmatpush3.msra.mxu0 %v5601_v8  ;;  %v5653_v30 = vld [vmem:[#allocation7] sm:$0x3]  ;;  %v166_v37 = vld [vmem:[#allocation6] sm:$0x3]  ;;  %7347 = vst [vmem:[#allocation22_spill] sm:$0xff] %v5763_v57  ;;  %7349 = vst [vmem:[#allocation24_spill] sm:$0xff] %v5777_v59 }
  0x40   :  { %4377 = vmatprep.subr.mxu0 %v7310_v0  ;;  %7350 = vst [vmem:[#allocation25_spill] sm:$0xff] %v5782_v60  ;;  %v5789_v61 = vld [vmem:[%s7304_s6 + $0x20] sm:$0xff]  ;;  %v5796_v62 = vld [vmem:[%s7304_s6 + $0x18] sm:$0xff]  ;;  %v5803_v63 = vld [vmem:[%s7304_s6 + $0x10] sm:$0xff] }
  0x41   :  { %4378 = vmatpush3.msra.mxu0 %v5608_v9  ;;  %7351 = vst [vmem:[#allocation26_spill] sm:$0xff] %v5789_v61  ;;  %7352 = vst [vmem:[#allocation27_spill] sm:$0xff] %v5796_v62  ;;  %v5810_v3 = vld [vmem:[%s7304_s6 + $0x8] sm:$0xff]  ;;  %v5817_v5 = vld [vmem:[%s7304_s6] sm:$0xff] }
  0x42   :  { %4379 = vmatprep.subr.mxu0 %v7310_v0  ;;  %7353 = vst [vmem:[#allocation28_spill] sm:$0xff] %v5803_v63  ;;  %7354 = vst [vmem:[#allocation29_spill] sm:$0xff] %v5810_v3 }
  0x43   :  { %4380 = vmatpush3.msra.mxu0 %v5615_v10  ;;  %7355 = vst [vmem:[#allocation30_spill] sm:$0xff] %v5817_v5 }
  0x44   :  { %4381 = vmatprep.subr.mxu0 %v7310_v0 }
  0x45   :  { %4382 = vmatpush3.msra.mxu0 %v5622_v11 }
  0x46   :  { %4383 = vmatprep.subr.mxu0 %v7310_v0 }
  0x47   :  { %4384 = vmatpush3.msra.mxu0 %v5629_v12 }
  0x48   :  { %4441 = vmatprep.subr.mxu0 %v7310_v0 }
  0xad   :  { %v172_v13 = vpop.permute.xlu0 %171 }
  0xae   :  { %v179_v15 = vsel %vm178_vm2, %v169_v14, %v172_v13  ;;  %v5823_v13 = vld [vmem:[#allocation14] sm:$0x3] }
  0xb1   :  { %v176_v16 = vpop.permute.xlu0 %175 }
  0xb2   :  { %v181_v17 = vsel %vm180_vm3, %v179_v15, %v176_v16 }
  0xb3   :  { %4386 = vmatmul.mubr.msk.f32.vlgmr.msra.gmra.mxu0 %vm186_vm4, %v181_v17 }
  0xb4   :  { %4445 = vmatprep.mubr.msk.f32.mxu0 %vm5464_vm1, %v7310_v0 }
 0x173   :  { %v256_v19 = vpop.f32.mrf.mxu0 }
 0x174   :  { %v257_v20 = vadd.f32 %v5643_v18, %v256_v19 }
 0x175   :  { %v4387_v21 = vpop.f32.mrf.mxu0 }
 0x176   :  { %5156 = vtanh.f32 %v257_v20  ;;  %v3950_v24 = vmul.f32 -1.442695, %v257_v20 }
 0x178   :  { %5158 = vpow2.f32 %v3950_v24 }
 0x183   :  { %v5157_v22 = vpop.eup %5156 }
 0x184   :  { %273 = vrot.lane.b32.xlu1 %v5157_v22, %s5467_s23 }
 0x185   :  { %v5159_v25 = vpop.eup %5158 }
 0x186   :  { %v263_v26 = vadd.f32 1.0, %v5159_v25 }
 0x188   :  { %268 = vrot.lane.b32.xlu1 %v163_v23, %s5457_s25  ;;  %5160 = vrcp.f32 %v263_v26 }
 0x195   :  { %v5161_v27 = vpop.eup %5160 }
 0x1f6   :  { %v274_v28 = vpop.permute.xlu1 %273 }
 0x1f7   :  { %v276_v29 = vmul.f32 %v5161_v27, %v274_v28  ;;  %v5833_v28 = vld [vmem:[%s7299_s1 + $0x8] sm:$0xff] }
 0x1f8   :  { %4442 = vmatpush3.msra.mxu0 %v5833_v28 }
 0x1f9   :  { %278 = vrot.lane.b32.xlu0 %v276_v29, %s5457_s25  ;;  %4443 = vmatprep.subr.mxu0 %v7310_v0 }
 0x1fa   :  { %v269_v31 = vpop.permute.xlu1 %268 }
 0x1fb   :  { %v271_v32 = vmul.f32 %v5161_v27, %v269_v31  ;;  %v5840_v31 = vld [vmem:[%s7299_s1] sm:$0xff] }
 0x1fc   :  { %4444 = vmatpush3.msra.mxu0 %v5840_v31 }
 0x1fd   :  { %289 = vrot.lane.b32.xlu0 %v5653_v30, %s5462_s17  ;;  %4448 = vmatprep.subr.mxu0 %v7310_v0 }
 0x26b   :  { %v279_v33 = vpop.permute.xlu0 %278 }
 0x26c   :  { %v5657_v34 = vadd.f32 %v279_v33, %v271_v32 }
 0x26e   :  { %5162 = vtanh.f32 %v5657_v34 }
 0x26f   :  { %v290_v38 = vpop.permute.xlu0 %289 }
 0x270   :  { %v293_v40 = vsel %vm292_vm6, %v166_v37, %v290_v38 }
 0x271   :  { %4393 = vmatmul.mubr.msk.f32.vlgmr.msra.gmra.mxu1 %vm178_vm2, %v293_v40 }
 0x272   :  { %4396 = vmatpush3.msra.mxu1 %v5671_v39  ;;  %4403 = vmatprep.mubr.msk.f32.mxu1 %vm5464_vm1, %v7310_v0 }
 0x273   :  { %4397 = vmatprep.subr.mxu1 %v7310_v0 }
 0x274   :  { %4398 = vmatpush3.msra.mxu1 %v5678_v41 }
 0x275   :  { %4399 = vmatprep.subr.mxu1 %v7310_v0 }
 0x276   :  { %4400 = vmatpush3.msra.mxu1 %v5687_v43 }
 0x277   :  { %4401 = vmatprep.subr.mxu1 %v7310_v0 }
 0x278   :  { %4402 = vmatpush3.msra.mxu1 %v5695_v44 }
 0x279   :  { %4406 = vmatprep.subr.mxu1 %v7310_v0 }
 0x27b   :  { %v5163_v42 = vpop.eup %5162 }
 0x27c   :  { %284 = vrot.lane.b32.xlu1 %v5163_v42, %s5467_s23  ;;  %v164_v42 = vld [vmem:[#allocation4] sm:$0x3] }
 0x2ee   :  { %v285_v45 = vpop.permute.xlu1 %284 }
 0x2ef   :  { %v5701_v46 = vmul.f32 %v5161_v27, %v285_v45  ;;  %v5851_v45 = vld [vmem:[#allocation12] sm:$0x3] }
 0x2f1   :  { %368 = vrot.lane.b32.xlu1 %v5701_v46, %s5457_s25 }
 0x331   :  { %v363_v47 = vpop.f32.mrf.mxu1 }
 0x333   :  { %v4394_v48 = vpop.f32.mrf.mxu1 }
 0x363   :  { %v5710_v50 = vpop.permute.xlu1 %368 }
 0x364   :  { %4404 = vmatmul.mubr.msk.f32.vlgmr.msra.gmra.mxu1 %vm370_vm7, %v5710_v50 }
 0x365   :  { %4407 = vmatpush3.msra.mxu1 %v5708_v49  ;;  %4438 = vmatprep.mubr.msk.f32.mxu1 %vm5464_vm1, %v7310_v0 }
 0x366   :  { %4408 = vmatprep.subr.mxu1 %v7310_v0 }
 0x367   :  { %4409 = vmatpush3.msra.mxu1 %v5717_v51 }
 0x368   :  { %4410 = vmatprep.subr.mxu1 %v7310_v0 }
 0x369   :  { %4411 = vmatpush3.msra.mxu1 %v5726_v52 }
 0x36a   :  { %4412 = vmatprep.subr.mxu1 %v7310_v0 }
 0x36b   :  { %4413 = vmatpush3.msra.mxu1 %v5733_v53 }
 0x36c   :  { %4414 = vmatprep.subr.mxu1 %v7310_v0 }
 0x36d   :  { %4415 = vmatpush3.msra.mxu1 %v5740_v54 }
 0x36e   :  { %4416 = vmatprep.subr.mxu1 %v7310_v0 }
 0x36f   :  { %4417 = vmatpush3.msra.mxu1 %v5747_v55 }
 0x370   :  { %4418 = vmatprep.subr.mxu1 %v7310_v0 }
 0x371   :  { %4419 = vmatpush3.msra.mxu1 %v5756_v56 }
 0x372   :  { %4420 = vmatprep.subr.mxu1 %v7310_v0 }
 0x373   :  { %4421 = vmatpush3.msra.mxu1 %v5763_v57 }
 0x374   :  { %4422 = vmatprep.subr.mxu1 %v7310_v0 }
 0x375   :  { %4423 = vmatpush3.msra.mxu1 %v5770_v58 }
 0x376   :  { %4424 = vmatprep.subr.mxu1 %v7310_v0 }
 0x377   :  { %4425 = vmatpush3.msra.mxu1 %v5777_v59 }
 0x378   :  { %4426 = vmatprep.subr.mxu1 %v7310_v0 }
 0x379   :  { %4427 = vmatpush3.msra.mxu1 %v5782_v60 }
 0x37a   :  { %4428 = vmatprep.subr.mxu1 %v7310_v0 }
 0x37b   :  { %4429 = vmatpush3.msra.mxu1 %v5789_v61 }
 0x37c   :  { %4430 = vmatprep.subr.mxu1 %v7310_v0 }
 0x37d   :  { %4431 = vmatpush3.msra.mxu1 %v5796_v62 }
 0x37e   :  { %4432 = vmatprep.subr.mxu1 %v7310_v0 }
 0x37f   :  { %4433 = vmatpush3.msra.mxu1 %v5803_v63 }
 0x380   :  { %4434 = vmatprep.subr.mxu1 %v7310_v0 }
 0x381   :  { %4435 = vmatpush3.msra.mxu1 %v5810_v3 }
 0x382   :  { %4436 = vmatprep.subr.mxu1 %v7310_v0 }
 0x383   :  { %4437 = vmatpush3.msra.mxu1 %v5817_v5 }
 0x384   :  { %4475 = vmatprep.subr.mxu1 %v7310_v0 }
 0x424   :  { %v439_v14 = vpop.f32.mrf.mxu1 }
 0x425   :  { %v440_v15 = vadd.f32 %v439_v14, %v5823_v13 }
 0x426   :  { %v4405_v16 = vpop.f32.mrf.mxu1 }
 0x427   :  { %v443_v17 = vadd.f32 %v440_v15, %v363_v47  ;;  %v5862_v15 = vld [vmem:[%s7306_s8 + $0x58] sm:$0xff]  ;;  %v5874_v16 = vld [vmem:[%s7306_s8 + $0x48] sm:$0xff] }
 0x429   :  { %5164 = vtanh.f32 %v443_v17  ;;  %v5881_v17 = vld [vmem:[%s7306_s8 + $0x40] sm:$0xff] }
 0x436   :  { %v5165_v19 = vpop.eup %5164 }
 0x437   :  { %4439 = vmatmul.mubr.f32.vlgmr.msra.gmra.mxu1 %v5165_v19  ;;  %v5888_v19 = vld [vmem:[%s7306_s8 + $0x38] sm:$0xff] }
 0x438   :  { %4491 = vmatprep.mubr.msk.f32.mxu1 %vm5464_vm1, %v7310_v0 }
 0x4f7   :  { %v511_v20 = vpop.f32.mrf.mxu1 }
 0x4f8   :  { %v516_v21 = vsel %vm99_vm5, %v511_v20, -inf }
 0x4f9   :  { %517 = vmax.xlane.f32.xlu0 %v516_v21  ;;  %v4440_v22 = vpop.f32.mrf.mxu1  ;;  %v5902_v21 = vld [vmem:[%s7306_s8 + $0x28] sm:$0xff] }
 0x4fa   :  { %v5909_v22 = vld [vmem:[%s7306_s8 + $0x20] sm:$0xff] }
 0x582   :  { %v518_v23 = vpop.xlane.xlu0 %517 }
 0x583   :  { %v519_v24 = vsub.f32 %v511_v20, %v518_v23  ;;  %v5895_v20 = vld [vmem:[%s7306_s8 + $0x30] sm:$0xff]  ;;  %v5916_v23 = vld [vmem:[%s7306_s8 + $0x18] sm:$0xff] }
 0x585   :  { %v520_v25 = vmul.f32 1.442695, %v519_v24  ;;  %v5923_v24 = vld [vmem:[%s7306_s8 + $0x10] sm:$0xff] }
 0x587   :  { %5166 = vpow2.f32 %v520_v25  ;;  %v5930_v25 = vld [vmem:[%s7306_s8 + $0x8] sm:$0xff] }
 0x594   :  { %v5167_v26 = vpop.eup %5166 }
 0x595   :  { %v522_v27 = vsel %vm99_vm5, %v5167_v26, 0.0 }
 0x596   :  { %523 = vadd.xlane.f32.xlu1 %v522_v27 }
 0x61f   :  { %v524_v29 = vpop.xlane.xlu1 %523 }
 0x620   :  { %5168 = vrcp.f32 %v524_v29 }
 0x62d   :  { %v5169_v32 = vpop.eup %5168 }
 0x62e   :  { %v526_v33 = vmul.f32 %v5169_v32, %v524_v29 }
 0x630   :  { %v527_v37 = vsub.f32 2.0, %v526_v33 }
 0x632   :  { %v528_v38 = vmul.f32 %v5169_v32, %v527_v37 }
 0x634   :  { %v5844_v40 = vmul.f32 %v5167_v26, %v528_v38  ;;  %v5939_v26 = vld [vmem:[%s7306_s8] sm:$0xff] }
 0x636   :  { %7356 = vst [vmem:[#allocation31_spill] sm:$0xff] %v5844_v40  ;;  %532 = vrot.lane.b32.xlu0 %v5844_v40, %s5462_s17 }
 0x63a   :  { %616 = vrot.lane.b32.xlu0 %v164_v42, %s5467_s23 }
 0x63e   :  { %823 = vrot.lane.b32.xlu0 %v5701_v46, %s5468_s14  ;;  %v5867_v46 = vld [vmem:[%s7306_s8 + $0x50] sm:$0xff] }
 0x6a8   :  { %v533_v47 = vpop.permute.xlu0 %532 }
 0x6a9   :  { %v535_v48 = vsel %vm292_vm6, %v5844_v40, %v533_v47 }
 0x6aa   :  { %v536_v14 = vmul.f32 %v535_v48, %v5851_v45 }
 0x6ac   :  { %4446 = vmatmul.mubr.msk.f32.vlgmr.msra.gmra.mxu0 %vm178_vm2, %v536_v14  ;;  %v617_v33 = vpop.permute.xlu0 %616 }
 0x6ad   :  { %4472 = vmatprep.mubr.msk.f32.mxu0 %vm5464_vm1, %v7310_v0  ;;  %4449 = vmatpush3.msra.mxu0 %v5862_v15 }
 0x6ae   :  { %4450 = vmatprep.subr.mxu0 %v7310_v0 }
 0x6af   :  { %4451 = vmatpush3.msra.mxu0 %v5867_v46 }
 0x6b0   :  { %4452 = vmatprep.subr.mxu0 %v7310_v0  ;;  %v824_v48 = vpop.permute.xlu0 %823 }
 0x6b1   :  { %4453 = vmatpush3.msra.mxu0 %v5874_v16 }
 0x6b2   :  { %4454 = vmatprep.subr.mxu0 %v7310_v0 }
 0x6b3   :  { %4455 = vmatpush3.msra.mxu0 %v5881_v17 }
 0x6b4   :  { %4456 = vmatprep.subr.mxu0 %v7310_v0 }
 0x6b5   :  { %4457 = vmatpush3.msra.mxu0 %v5888_v19 }
 0x6b6   :  { %4458 = vmatprep.subr.mxu0 %v7310_v0 }
 0x6b7   :  { %4459 = vmatpush3.msra.mxu0 %v5895_v20 }
 0x6b8   :  { %4460 = vmatprep.subr.mxu0 %v7310_v0 }
 0x6b9   :  { %4461 = vmatpush3.msra.mxu0 %v5902_v21 }
 0x6ba   :  { %4462 = vmatprep.subr.mxu0 %v7310_v0 }
 0x6bb   :  { %4463 = vmatpush3.msra.mxu0 %v5909_v22 }
 0x6bc   :  { %4464 = vmatprep.subr.mxu0 %v7310_v0 }
 0x6bd   :  { %4465 = vmatpush3.msra.mxu0 %v5916_v23 }
 0x6be   :  { %4466 = vmatprep.subr.mxu0 %v7310_v0 }
 0x6bf   :  { %4467 = vmatpush3.msra.mxu0 %v5923_v24 }
 0x6c0   :  { %4468 = vmatprep.subr.mxu0 %v7310_v0 }
 0x6c1   :  { %4469 = vmatpush3.msra.mxu0 %v5930_v25 }
 0x6c2   :  { %4470 = vmatprep.subr.mxu0 %v7310_v0 }
 0x6c3   :  { %4471 = vmatpush3.msra.mxu0 %v5939_v26 }
 0x6c4   :  { %4494 = vmatprep.subr.mxu0 %v7310_v0 }
 0x76c   :  { %v606_v27 = vpop.f32.mrf.mxu0 }
 0x76d   :  { %612 = vrot.lane.b32.xlu1 %v606_v27, %s5457_s25 }
 0x76e   :  { %v4447_v29 = vpop.f32.mrf.mxu0 }
 0x771   :  { %820 = vrot.lane.b32.xlu1 %v606_v27, %s5465_s22 }
 0x7df   :  { %v5945_v32 = vpop.permute.xlu1 %612 }
 0x7e0   :  { %v619_v37 = vsel %vm370_vm7, %v5710_v50, %v5945_v32  ;;  %v819_v50 = vld [vmem:[#allocation9 + $0x2] sm:$0x3] }
 0x7e1   :  { %v621_v38 = vsel %vm620_vm8, %v619_v37, %v617_v33  ;;  %v6014_v33 = vld [vmem:[%s7308_s10 + $0x1] ss:$0 sm:$0xff] }
 0x7e2   :  { %4473 = vmatmul.mubr.msk.f32.vlgmr.msra.gmra.mxu0 %vm626_vm9, %v621_v38 }
 0x7e3   :  { %4495 = vmatpush3.msra.mxu0 %v5567_v1  ;;  %4514 = vmatprep.mubr.msk.f32.mxu0 %vm5464_vm1, %v7310_v0  ;;  %v821_v42 = vpop.permute.xlu1 %820 }
 0x7e4   :  { %4496 = vmatprep.subr.mxu0 %v7310_v0  ;;  %v826_v47 = vsel %vm178_vm2, %v819_v50, %v821_v42 }
 0x7e5   :  { %4497 = vmatpush3.msra.mxu0 %v5572_v2  ;;  %v827_v14 = vsel %vm180_vm3, %v826_v47, %v824_v48 }
 0x7e6   :  { %4498 = vmatprep.subr.mxu0 %v7310_v0 }
 0x7e7   :  { %4499 = vmatpush3.msra.mxu0 %v5580_v4 }
 0x7e8   :  { %4500 = vmatprep.subr.mxu0 %v7310_v0 }
 0x7e9   :  { %4501 = vmatpush3.msra.mxu0 %v5587_v6 }
 0x7ea   :  { %4502 = vmatprep.subr.mxu0 %v7310_v0 }
 0x7eb   :  { %4503 = vmatpush3.msra.mxu0 %v5594_v7 }
 0x7ec   :  { %4504 = vmatprep.subr.mxu0 %v7310_v0 }
 0x7ed   :  { %4505 = vmatpush3.msra.mxu0 %v5601_v8 }
 0x7ee   :  { %4506 = vmatprep.subr.mxu0 %v7310_v0 }
 0x7ef   :  { %4507 = vmatpush3.msra.mxu0 %v5608_v9 }
 0x7f0   :  { %4508 = vmatprep.subr.mxu0 %v7310_v0 }
 0x7f1   :  { %4509 = vmatpush3.msra.mxu0 %v5615_v10 }
 0x7f2   :  { %4510 = vmatprep.subr.mxu0 %v7310_v0 }
 0x7f3   :  { %4511 = vmatpush3.msra.mxu0 %v5622_v11 }
 0x7f4   :  { %4512 = vmatprep.subr.mxu0 %v7310_v0 }
 0x7f5   :  { %4513 = vmatpush3.msra.mxu0 %v5629_v12 }
 0x7f6   :  { %4515 = vmatmul.mubr.msk.f32.vlgmr.msra.gmra.mxu0 %vm186_vm4, %v827_v14  ;;  %4535 = vmatprep.subr.mxu0 %v7310_v0 }
 0x7f7   :  { %4536 = vmatpush3.msra.mxu0 %v5708_v49  ;;  %4567 = vmatprep.mubr.msk.f32.mxu0 %vm5464_vm1, %v7310_v0 }
 0x7f8   :  { %4537 = vmatprep.subr.mxu0 %v7310_v0 }
 0x7f9   :  { %4538 = vmatpush3.msra.mxu0 %v5717_v51 }
 0x7fa   :  { %4539 = vmatprep.subr.mxu0 %v7310_v0 }
 0x7fb   :  { %4540 = vmatpush3.msra.mxu0 %v5726_v52 }
 0x7fc   :  { %4541 = vmatprep.subr.mxu0 %v7310_v0 }
 0x7fd   :  { %4542 = vmatpush3.msra.mxu0 %v5733_v53 }
 0x7fe   :  { %4543 = vmatprep.subr.mxu0 %v7310_v0 }
 0x7ff   :  { %4544 = vmatpush3.msra.mxu0 %v5740_v54 }
 0x800   :  { %4545 = vmatprep.subr.mxu0 %v7310_v0 }
 0x801   :  { %4546 = vmatpush3.msra.mxu0 %v5747_v55 }
 0x802   :  { %4547 = vmatprep.subr.mxu0 %v7310_v0 }
 0x803   :  { %4548 = vmatpush3.msra.mxu0 %v5756_v56 }
 0x804   :  { %4549 = vmatprep.subr.mxu0 %v7310_v0 }
 0x805   :  { %4550 = vmatpush3.msra.mxu0 %v5763_v57 }
 0x806   :  { %4551 = vmatprep.subr.mxu0 %v7310_v0 }
 0x807   :  { %4552 = vmatpush3.msra.mxu0 %v5770_v58 }
 0x808   :  { %4553 = vmatprep.subr.mxu0 %v7310_v0 }
 0x809   :  { %4554 = vmatpush3.msra.mxu0 %v5777_v59 }
 0x80a   :  { %4555 = vmatprep.subr.mxu0 %v7310_v0 }
 0x80b   :  { %4556 = vmatpush3.msra.mxu0 %v5782_v60 }
 0x80c   :  { %4557 = vmatprep.subr.mxu0 %v7310_v0 }
 0x80d   :  { %4558 = vmatpush3.msra.mxu0 %v5789_v61  ;;  %v165_v61 = vld [vmem:[#allocation5] sm:$0x3] }
 0x80e   :  { %4559 = vmatprep.subr.mxu0 %v7310_v0 }
 0x80f   :  { %4560 = vmatpush3.msra.mxu0 %v5796_v62 }
 0x810   :  { %4561 = vmatprep.subr.mxu0 %v7310_v0 }
 0x811   :  { %4562 = vmatpush3.msra.mxu0 %v5803_v63 }
 0x812   :  { %4563 = vmatprep.subr.mxu0 %v7310_v0 }
 0x813   :  { %4564 = vmatpush3.msra.mxu0 %v5810_v3 }
 0x814   :  { %4565 = vmatprep.subr.mxu0 %v7310_v0 }
 0x815   :  { %4566 = vmatpush3.msra.mxu0 %v5817_v5 }
 0x816   :  { %4604 = vmatprep.subr.mxu0 %v7310_v0 }
 0x8a2   :  { %v696_v27 = vpop.f32.mrf.mxu0 }
 0x8a3   :  { %v697_v42 = vadd.f32 %v6014_v33, %v696_v27 }
 0x8a4   :  { %v4474_v29 = vpop.f32.mrf.mxu0 }
 0x8a5   :  { %v3956_v29 = vmul.f32 -1.442695, %v697_v42 }
 0x8b6   :  { %v897_v37 = vpop.f32.mrf.mxu0 }
 0x8b7   :  { %v898_v38 = vadd.f32 %v5643_v18, %v897_v37 }
 0x8b8   :  { %v4516_v50 = vpop.f32.mrf.mxu0 }
 0x8b9   :  { %5170 = vtanh.f32 %v898_v38  ;;  %v3960_v14 = vmul.f32 -1.442695, %v898_v38 }
 0x8ba   :  { %5172 = vtanh.f32 %v697_v42  ;;  %v6055_v42 = vld [vmem:[%s7307_s9 + $0x18] sm:$0xff] }
 0x8bb   :  { %5174 = vpow2.f32 %v3960_v14  ;;  %v6069_v14 = vld [vmem:[%s7307_s9 + $0x8] sm:$0xff] }
 0x8bc   :  { %5176 = vpow2.f32 %v3956_v29  ;;  %7359 = vst [vmem:[#allocation33_spill] sm:$0xff] %v6069_v14  ;;  %v6078_v29 = vld [vmem:[%s7307_s9] sm:$0xff] }
 0x8bd   :  { %7360 = vst [vmem:[#allocation34_spill] sm:$0xff] %v6078_v29 }
 0x8c6   :  { %v5171_v47 = vpop.eup %5170 }
 0x8c7   :  { %910 = vrot.lane.b32.xlu1 %v5171_v47, %s5467_s23  ;;  %v5173_v48 = vpop.eup %5172 }
 0x8c8   :  { %v5175_v0 = vpop.eup %5174 }
 0x8c9   :  { %v904_v5 = vadd.f32 1.0, %v5175_v0  ;;  %v5177_v3 = vpop.eup %5176  ;;  %v6029_v0 = vld [vmem:[%s7307_s9 + $0x38] sm:$0xff] }
 0x8ca   :  { %v703_v63 = vadd.f32 1.0, %v5177_v3  ;;  %4476 = vmatpush3.msra.mxu1 %v6029_v0  ;;  %v7357_v3 = vmov 0.0  }
 0x8cb   :  { %713 = vrot.lane.b32.xlu1 %v5173_v48, %s5467_s23  ;;  %5178 = vrcp.f32 %v904_v5  ;;  %4477 = vmatprep.subr.mxu1 %v7357_v3  ;;  %v6041_v5 = vld [vmem:[%s7307_s9 + $0x28] sm:$0xff]  ;;  %v6062_v48 = vld [vmem:[%s7307_s9 + $0x10] sm:$0xff] }
 0x8cc   :  { %5180 = vrcp.f32 %v703_v63  ;;  %v6034_v63 = vld [vmem:[%s7307_s9 + $0x30] sm:$0xff]  ;;  %7358 = vst [vmem:[#allocation32_spill] sm:$0xff] %v6062_v48 }
 0x8cd   :  { %4478 = vmatpush3.msra.mxu1 %v6034_v63 }
 0x8ce   :  { %4479 = vmatprep.subr.mxu1 %v7357_v3 }
 0x8cf   :  { %4480 = vmatpush3.msra.mxu1 %v6041_v5 }
 0x8d0   :  { %4481 = vmatprep.subr.mxu1 %v7357_v3 }
 0x8d8   :  { %v5179_v37 = vpop.eup %5178 }
 0x8d9   :  { %v6021_v62 = vpop.eup %5180 }
 0x939   :  { %v911_v27 = vpop.permute.xlu1 %910 }
 0x93a   :  { %v913_v50 = vmul.f32 %v5179_v37, %v911_v27  ;;  %v908_v27 = vmul.f32 %v5179_v37, %v5657_v34  ;;  %v6094_v34 = vadd.f32 %v5844_v40, %v5653_v30 }
 0x93c   :  { %915 = vrot.lane.b32.xlu0 %v913_v50, %s5457_s25 }
 0x93d   :  { %v714_v47 = vpop.permute.xlu1 %713 }
 0x93e   :  { %v716_v38 = vmul.f32 %v6021_v62, %v714_v47 }
 0x940   :  { %718 = vrot.lane.b32.xlu1 %v716_v38, %s5457_s25  ;;  %708 = vrot.lane.b32.xlu0 %v165_v61, %s5457_s25  ;;  %v6048_v61 = vld [vmem:[%s7307_s9 + $0x20] sm:$0xff] }
 0x941   :  { %4482 = vmatpush3.msra.mxu1 %v6048_v61 }
 0x942   :  { %4483 = vmatprep.subr.mxu1 %v7357_v3 }
 0x943   :  { %4484 = vmatpush3.msra.mxu1 %v6055_v42 }
 0x944   :  { %4485 = vmatprep.subr.mxu1 %v7357_v3 }
 0x945   :  { %4486 = vmatpush3.msra.mxu1 %v6062_v48 }
 0x946   :  { %4487 = vmatprep.subr.mxu1 %v7357_v3 }
 0x947   :  { %4488 = vmatpush3.msra.mxu1 %v6069_v14 }
 0x948   :  { %4489 = vmatprep.subr.mxu1 %v7357_v3 }
 0x949   :  { %4490 = vmatpush3.msra.mxu1 %v6078_v29 }
 0x94a   :  { %4517 = vmatprep.subr.mxu1 %v7357_v3 }
 0x9ae   :  { %v916_v50 = vpop.permute.xlu0 %915 }
 0x9af   :  { %v6083_v47 = vadd.f32 %v916_v50, %v908_v27 }
 0x9b1   :  { %5182 = vtanh.f32 %v6083_v47 }
 0x9b2   :  { %v709_v38 = vpop.permute.xlu0 %708  ;;  %v719_v59 = vpop.permute.xlu1 %718 }
 0x9b3   :  { %v711_v60 = vmul.f32 %v6021_v62, %v709_v38 }
 0x9b5   :  { %v6087_v58 = vadd.f32 %v719_v59, %v711_v60 }
 0x9b7   :  { %729 = vrot.lane.b32.xlu1 %v6087_v58, %s5469_s21 }
 0x9be   :  { %v5183_v57 = vpop.eup %5182 }
 0x9bf   :  { %921 = vrot.lane.b32.xlu0 %v5183_v57, %s5467_s23 }
 0x9c3   :  { %926 = vrot.lane.b32.xlu0 %v6094_v34, %s5462_s17 }
 0xa29   :  { %v730_v27 = vpop.permute.xlu1 %729 }
 0xa2a   :  { %v732_v50 = vsel %vm370_vm7, %v730_v27, %v5945_v32 }
 0xa2b   :  { %4492 = vmatmul.mubr.msk.f32.vlgmr.msra.gmra.mxu1 %vm620_vm8, %v732_v50 }
 0xa2c   :  { %4518 = vmatpush3.msra.mxu1 %v5660_v35  ;;  %4521 = vmatprep.mubr.msk.f32.mxu1 %vm5464_vm1, %v7357_v3 }
 0xa2d   :  { %4519 = vmatprep.subr.mxu1 %v7357_v3 }
 0xa2e   :  { %4520 = vmatpush3.msra.mxu1 %v5662_v36 }
 0xa2f   :  { %4524 = vmatprep.subr.mxu1 %v7357_v3 }
 0xa31   :  { %v922_v30 = vpop.permute.xlu0 %921 }
 0xa32   :  { %v6107_v57 = vmul.f32 %v5179_v37, %v922_v30 }
 0xa34   :  { %1004 = vrot.lane.b32.xlu1 %v6107_v57, %s5457_s25 }
 0xa35   :  { %v927_v59 = vpop.permute.xlu0 %926 }
 0xa36   :  { %v929_v60 = vsel %vm292_vm6, %v5844_v40, %v927_v59 }
 0xa37   :  { %4522 = vmatmul.mubr.msk.f32.vlgmr.msra.gmra.mxu1 %vm178_vm2, %v929_v60 }
 0xa38   :  { %4525 = vmatpush3.msra.mxu1 %v5671_v39  ;;  %4532 = vmatprep.mubr.msk.f32.mxu1 %vm5464_vm1, %v7357_v3 }
 0xa39   :  { %4526 = vmatprep.subr.mxu1 %v7357_v3 }
 0xa3a   :  { %4527 = vmatpush3.msra.mxu1 %v5678_v41 }
 0xa3b   :  { %4528 = vmatprep.subr.mxu1 %v7357_v3 }
 0xa3c   :  { %4529 = vmatpush3.msra.mxu1 %v5687_v43 }
 0xa3d   :  { %4530 = vmatprep.subr.mxu1 %v7357_v3 }
 0xa3e   :  { %4531 = vmatpush3.msra.mxu1 %v5695_v44 }
 0xa3f   :  { %4570 = vmatprep.subr.mxu1 %v7357_v3 }
 0xaa6   :  { %v6124_v36 = vpop.permute.xlu1 %1004 }
 0xaa7   :  { %4533 = vmatmul.mubr.msk.f32.vlgmr.msra.gmra.mxu1 %vm370_vm7, %v6124_v36 }
 0xaa8   :  { %4571 = vmatpush3.msra.mxu1 %v5833_v28  ;;  %4574 = vmatprep.mubr.msk.f32.mxu1 %vm5464_vm1, %v7357_v3 }
 0xaa9   :  { %4572 = vmatprep.subr.mxu1 %v7357_v3 }
 0xaaa   :  { %4573 = vmatpush3.msra.mxu1 %v5840_v31 }
 0xaab   :  { %4577 = vmatprep.subr.mxu1 %v7357_v3 }
 0xaeb   :  { %v6134_v32 = vpop.f32.mrf.mxu1 }
 0xaec   :  { %7361 = vst [vmem:[#allocation35_spill] sm:$0xff] %v6134_v32 }
 0xaed   :  { %v4493_v37 = vpop.f32.mrf.mxu1 }
 0xaf7   :  { %v999_v38 = vpop.f32.mrf.mxu1 }
 0xaf9   :  { %v4523_v27 = vpop.f32.mrf.mxu1 }
 0xb67   :  { %v1074_v50 = vpop.f32.mrf.mxu1 }
 0xb68   :  { %v1075_v30 = vadd.f32 %v1074_v50, %v5823_v13 }
 0xb69   :  { %v4534_v59 = vpop.f32.mrf.mxu1 }
 0xb6a   :  { %v1078_v60 = vadd.f32 %v1075_v30, %v999_v38 }
 0xb6c   :  { %5184 = vtanh.f32 %v1078_v60 }
 0xb79   :  { %v5185_v40 = vpop.eup %5184 }
 0xb7a   :  { %4568 = vmatmul.mubr.f32.vlgmr.msra.gmra.mxu0 %v5185_v40 }
 0xb7b   :  { %4605 = vmatpush3.msra.mxu0 %v6029_v0  ;;  %4620 = vmatprep.mubr.msk.f32.mxu0 %vm5464_vm1, %v7357_v3 }
 0xb7c   :  { %4606 = vmatprep.subr.mxu0 %v7357_v3 }
 0xb7d   :  { %4607 = vmatpush3.msra.mxu0 %v6034_v63 }
 0xb7e   :  { %4608 = vmatprep.subr.mxu0 %v7357_v3 }
 0xb7f   :  { %4609 = vmatpush3.msra.mxu0 %v6041_v5 }
 0xb80   :  { %4610 = vmatprep.subr.mxu0 %v7357_v3 }
 0xb81   :  { %4611 = vmatpush3.msra.mxu0 %v6048_v61 }
 0xb82   :  { %4612 = vmatprep.subr.mxu0 %v7357_v3 }
 0xb83   :  { %4613 = vmatpush3.msra.mxu0 %v6055_v42 }
 0xb84   :  { %4614 = vmatprep.subr.mxu0 %v7357_v3 }
 0xb85   :  { %4615 = vmatpush3.msra.mxu0 %v6062_v48 }
 0xb86   :  { %4616 = vmatprep.subr.mxu0 %v7357_v3 }
 0xb87   :  { %4617 = vmatpush3.msra.mxu0 %v6069_v14 }
 0xb88   :  { %4618 = vmatprep.subr.mxu0 %v7357_v3 }
 0xb89   :  { %4619 = vmatpush3.msra.mxu0 %v6078_v29 }
 0xb8a   :  { %4646 = vmatprep.subr.mxu0 %v7357_v3 }
 0xc3a   :  { %v1146_v40 = vpop.f32.mrf.mxu0 }
 0xc3b   :  { %v1150_v37 = vsel %vm99_vm5, %v1146_v40, -inf }
 0xc3c   :  { %1151 = vmax.xlane.f32.xlu0 %v1150_v37  ;;  %v4569_v38 = vpop.f32.mrf.mxu0 }
 0xcc5   :  { %v1152_v27 = vpop.xlane.xlu0 %1151 }
 0xcc6   :  { %v1153_v50 = vsub.f32 %v1146_v40, %v1152_v27 }
 0xcc8   :  { %v1154_v30 = vmul.f32 1.442695, %v1153_v50 }
 0xcca   :  { %5186 = vpow2.f32 %v1154_v30 }
 0xccb   :  { %5188 = vtanh.f32 %v6087_v58 }
 0xcd7   :  { %v5187_v59 = vpop.eup %5186 }
 0xcd8   :  { %v1156_v60 = vsel %vm99_vm5, %v5187_v59, 0.0  ;;  %v5189_v32 = vpop.eup %5188 }
 0xcd9   :  { %1157 = vadd.xlane.f32.xlu1 %v1156_v60 }
 0xcea   :  { %724 = vrot.lane.b32.xlu1 %v5189_v32, %s5467_s23 }
 0xd62   :  { %v1158_v29 = vpop.xlane.xlu1 %1157 }
 0xd63   :  { %5190 = vrcp.f32 %v1158_v29 }
 0xd66   :  { %v725_v14 = vpop.permute.xlu1 %724 }
 0xd67   :  { %v727_v48 = vmul.f32 %v6021_v62, %v725_v14 }
 0xd69   :  { %1250 = vrot.lane.b32.xlu1 %v727_v48, %s5469_s21 }
 0xd6d   :  { %1442 = vrot.lane.b32.xlu1 %v6107_v57, %s5468_s14 }
 0xd70   :  { %v5191_v40 = vpop.eup %5190 }
 0xd71   :  { %v1160_v37 = vmul.f32 %v5191_v40, %v1158_v29 }
 0xd73   :  { %v1161_v38 = vsub.f32 2.0, %v1160_v37 }
 0xd75   :  { %v1162_v27 = vmul.f32 %v5191_v40, %v1161_v38 }
 0xd77   :  { %v6163_v50 = vmul.f32 %v5187_v59, %v1162_v27 }
 0xd79   :  { %7362 = vst [vmem:[#allocation36_spill] sm:$0xff] %v6163_v50  ;;  %1166 = vrot.lane.b32.xlu0 %v6163_v50, %s5462_s17 }
 0xddb   :  { %v1251_v57 = vpop.permute.xlu1 %1250 }
 0xdeb   :  { %v1167_v32 = vpop.permute.xlu0 %1166 }
 0xdec   :  { %v1169_v30 = vsel %vm292_vm6, %v6163_v50, %v1167_v32 }
 0xded   :  { %v1170_v62 = vmul.f32 %v1169_v30, %v5851_v45 }
 0xdef   :  { %4575 = vmatmul.mubr.msk.f32.vlgmr.msra.gmra.mxu1 %vm178_vm2, %v1170_v62 }
 0xdf0   :  { %4578 = vmatpush3.msra.mxu1 %v5862_v15  ;;  %4601 = vmatprep.mubr.msk.f32.mxu1 %vm5464_vm1, %v7357_v3 }
 0xdf1   :  { %4579 = vmatprep.subr.mxu1 %v7357_v3 }
 0xdf2   :  { %4580 = vmatpush3.msra.mxu1 %v5867_v46 }
 0xdf3   :  { %4581 = vmatprep.subr.mxu1 %v7357_v3 }
 0xdf4   :  { %4582 = vmatpush3.msra.mxu1 %v5874_v16 }
 0xdf5   :  { %4583 = vmatprep.subr.mxu1 %v7357_v3 }
 0xdf6   :  { %4584 = vmatpush3.msra.mxu1 %v5881_v17 }
 0xdf7   :  { %4585 = vmatprep.subr.mxu1 %v7357_v3 }
 0xdf8   :  { %4586 = vmatpush3.msra.mxu1 %v5888_v19 }
 0xdf9   :  { %4587 = vmatprep.subr.mxu1 %v7357_v3 }
 0xdfa   :  { %4588 = vmatpush3.msra.mxu1 %v5895_v20 }
 0xdfb   :  { %4589 = vmatprep.subr.mxu1 %v7357_v3 }
 0xdfc   :  { %4590 = vmatpush3.msra.mxu1 %v5902_v21 }
 0xdfd   :  { %4591 = vmatprep.subr.mxu1 %v7357_v3 }
 0xdfe   :  { %4592 = vmatpush3.msra.mxu1 %v5909_v22 }
 0xdff   :  { %4593 = vmatprep.subr.mxu1 %v7357_v3 }
 0xe00   :  { %4594 = vmatpush3.msra.mxu1 %v5916_v23 }
 0xe01   :  { %4595 = vmatprep.subr.mxu1 %v7357_v3 }
 0xe02   :  { %4596 = vmatpush3.msra.mxu1 %v5923_v24 }
 0xe03   :  { %4597 = vmatprep.subr.mxu1 %v7357_v3 }
 0xe04   :  { %4598 = vmatpush3.msra.mxu1 %v5930_v25 }
 0xe05   :  { %4599 = vmatprep.subr.mxu1 %v7357_v3 }
 0xe06   :  { %4600 = vmatpush3.msra.mxu1 %v5939_v26 }
 0xe07   :  { %4623 = vmatprep.subr.mxu1 %v7357_v3 }
 0xeaf   :  { %v1240_v48 = vpop.f32.mrf.mxu1 }
 0xeb0   :  { %1246 = vrot.lane.b32.xlu0 %v1240_v48, %s5457_s25 }
 0xeb1   :  { %v4576_v14 = vpop.f32.mrf.mxu1 }
 0xeb4   :  { %1439 = vrot.lane.b32.xlu0 %v1240_v48, %s5465_s22 }
 0xf22   :  { %v6199_v29 = vpop.permute.xlu0 %1246 }
 0xf23   :  { %v1253_v59 = vsel %vm370_vm7, %v6124_v36, %v6199_v29 }
 0xf24   :  { %v1254_v60 = vsel %vm620_vm8, %v1253_v59, %v1251_v57 }
 0xf25   :  { %4602 = vmatmul.mubr.msk.f32.vlgmr.msra.gmra.mxu1 %vm626_vm9, %v1254_v60 }
 0xf26   :  { %4624 = vmatpush3.msra.mxu1 %v5567_v1  ;;  %4643 = vmatprep.mubr.msk.f32.mxu1 %vm5464_vm1, %v7357_v3  ;;  %v1438_v1 = vld [vmem:[#allocation9 + $0x4] sm:$0x3] }
 0xf27   :  { %4625 = vmatprep.subr.mxu1 %v7357_v3 }
 0xf28   :  { %4626 = vmatpush3.msra.mxu1 %v5572_v2  ;;  %v1440_v2 = vpop.permute.xlu0 %1439 }
 0xf29   :  { %4627 = vmatprep.subr.mxu1 %v7357_v3 }
 0xf2a   :  { %4628 = vmatpush3.msra.mxu1 %v5580_v4  ;;  %v1445_v4 = vsel %vm178_vm2, %v1438_v1, %v1440_v2 }
 0xf2b   :  { %4629 = vmatprep.subr.mxu1 %v7357_v3 }
 0xf2c   :  { %4630 = vmatpush3.msra.mxu1 %v5587_v6  ;;  %v1443_v6 = vpop.permute.xlu1 %1442 }
 0xf2d   :  { %4631 = vmatprep.subr.mxu1 %v7357_v3 }
 0xf2e   :  { %4632 = vmatpush3.msra.mxu1 %v5594_v7  ;;  %v1446_v7 = vsel %vm180_vm3, %v1445_v4, %v1443_v6  ;;  %v6262_v6 = vadd.f32 %v6163_v50, %v6094_v34 }
 0xf2f   :  { %4633 = vmatprep.subr.mxu1 %v7357_v3 }
 0xf30   :  { %4634 = vmatpush3.msra.mxu1 %v5601_v8 }
 0xf31   :  { %4635 = vmatprep.subr.mxu1 %v7357_v3 }
 0xf32   :  { %4636 = vmatpush3.msra.mxu1 %v5608_v9 }
 0xf33   :  { %4637 = vmatprep.subr.mxu1 %v7357_v3 }
 0xf34   :  { %4638 = vmatpush3.msra.mxu1 %v5615_v10 }
 0xf35   :  { %4639 = vmatprep.subr.mxu1 %v7357_v3 }
 0xf36   :  { %4640 = vmatpush3.msra.mxu1 %v5622_v11 }
 0xf37   :  { %4641 = vmatprep.subr.mxu1 %v7357_v3 }
 0xf38   :  { %4642 = vmatpush3.msra.mxu1 %v5629_v12 }
 0xf39   :  { %4644 = vmatmul.mubr.msk.f32.vlgmr.msra.gmra.mxu1 %vm186_vm4, %v1446_v7  ;;  %4653 = vmatprep.subr.mxu1 %v7357_v3 }
 0xf3a   :  { %4654 = vmatpush3.msra.mxu1 %v5671_v39  ;;  %4661 = vmatprep.mubr.msk.f32.mxu1 %vm5464_vm1, %v7357_v3 }
 0xf3b   :  { %4655 = vmatprep.subr.mxu1 %v7357_v3 }
 0xf3c   :  { %4656 = vmatpush3.msra.mxu1 %v5678_v41 }
 0xf3d   :  { %4657 = vmatprep.subr.mxu1 %v7357_v3 }
 0xf3e   :  { %4658 = vmatpush3.msra.mxu1 %v5687_v43 }
 0xf3f   :  { %4659 = vmatprep.subr.mxu1 %v7357_v3 }
 0xf40   :  { %4660 = vmatpush3.msra.mxu1 %v5695_v44 }
 0xf41   :  { %4664 = vmatprep.subr.mxu1 %v7357_v3 }
 0xfe5   :  { %v1324_v8 = vpop.f32.mrf.mxu1 }
 0xfe6   :  { %v1325_v39 = vadd.f32 %v6014_v33, %v1324_v8 }
 0xfe7   :  { %v4603_v9 = vpop.f32.mrf.mxu1 }
 0xfe8   :  { %v3965_v44 = vmul.f32 -1.442695, %v1325_v39  ;;  %v6276_v9 = vld [vmem:[#allocation15] sm:$0xff] }
 0xff9   :  { %v1516_v10 = vpop.f32.mrf.mxu1 }
 0xffa   :  { %v1517_v11 = vadd.f32 %v5643_v18, %v1516_v10 }
 0xffb   :  { %v4645_v12 = vpop.f32.mrf.mxu1 }
 0xffc   :  { %5192 = vtanh.f32 %v1517_v11  ;;  %v3968_v36 = vmul.f32 -1.442695, %v1517_v11 }
 0xffd   :  { %5194 = vtanh.f32 %v1325_v39 }
 0xffe   :  { %5196 = vpow2.f32 %v3968_v36 }
 0xfff   :  { %5198 = vpow2.f32 %v3965_v44 }
0x1009   :  { %v5193_v41 = vpop.eup %5192 }
0x100a   :  { %1529 = vrot.lane.b32.xlu0 %v5193_v41, %s5467_s23  ;;  %v5195_v43 = vpop.eup %5194 }
0x100b   :  { %v5197_v40 = vpop.eup %5196 }
0x100c   :  { %v1523_v37 = vadd.f32 1.0, %v5197_v40  ;;  %v5199_v38 = vpop.eup %5198 }
0x100d   :  { %v1331_v27 = vadd.f32 1.0, %v5199_v38 }
0x100e   :  { %1337 = vrot.lane.b32.xlu0 %v5195_v43, %s5467_s23  ;;  %5200 = vrcp.f32 %v1523_v37 }
0x100f   :  { %5202 = vrcp.f32 %v1331_v27 }
0x101b   :  { %v5201_v18 = vpop.eup %5200 }
0x101c   :  { %v6246_v62 = vpop.eup %5202  ;;  %v1527_v57 = vmul.f32 %v5201_v18, %v6083_v47 }
0x101d   :  { %v1335_v1 = vmul.f32 %v6246_v62, %v6087_v58 }
0x107c   :  { %v1530_v32 = vpop.permute.xlu0 %1529 }
0x107d   :  { %v1532_v30 = vmul.f32 %v5201_v18, %v1530_v32 }
0x107f   :  { %1534 = vrot.lane.b32.xlu1 %v1532_v30, %s5457_s25 }
0x1080   :  { %v1338_v48 = vpop.permute.xlu0 %1337 }
0x1081   :  { %v1340_v14 = vmul.f32 %v6246_v62, %v1338_v48 }
0x1083   :  { %1342 = vrot.lane.b32.xlu1 %v1340_v14, %s5457_s25 }
0x10f1   :  { %v1535_v59 = vpop.permute.xlu1 %1534 }
0x10f2   :  { %v6251_v60 = vadd.f32 %v1535_v59, %v1527_v57 }
0x10f4   :  { %5204 = vtanh.f32 %v6251_v60 }
0x10f5   :  { %v1343_v2 = vpop.permute.xlu1 %1342 }
0x10f6   :  { %v6256_v4 = vadd.f32 %v1343_v2, %v1335_v1 }
0x10f8   :  { %1353 = vrot.lane.b32.xlu1 %v6256_v4, %s5469_s21 }
0x10fc   :  { %1545 = vrot.lane.b32.xlu1 %v6262_v6, %s5462_s17 }
0x1101   :  { %v5205_v47 = vpop.eup %5204 }
0x1102   :  { %1540 = vrot.lane.b32.xlu0 %v5205_v47, %s5467_s23 }
0x116a   :  { %v1354_v7 = vpop.permute.xlu1 %1353 }
0x116b   :  { %v1356_v58 = vsel %vm370_vm7, %v1354_v7, %v6199_v29 }
0x116c   :  { %4621 = vmatmul.mubr.msk.f32.vlgmr.msra.gmra.mxu0 %vm620_vm8, %v1356_v58 }
0x116d   :  { %4647 = vmatpush3.msra.mxu0 %v5660_v35  ;;  %4650 = vmatprep.mubr.msk.f32.mxu0 %vm5464_vm1, %v7357_v3 }
0x116e   :  { %4648 = vmatprep.subr.mxu0 %v7357_v3  ;;  %v1546_v34 = vpop.permute.xlu1 %1545 }
0x116f   :  { %v1548_v8 = vsel %vm292_vm6, %v6163_v50, %v1546_v34  ;;  %4649 = vmatpush3.msra.mxu0 %v6276_v9 }
0x1170   :  { %4651 = vmatmul.mubr.msk.f32.vlgmr.msra.gmra.mxu0 %vm178_vm2, %v1548_v8  ;;  %4699 = vmatprep.subr.mxu0 %v7357_v3 }
0x1171   :  { %4700 = vmatpush3.msra.mxu0 %v5833_v28  ;;  %4703 = vmatprep.mubr.msk.f32.mxu0 %vm5464_vm1, %v7357_v3  ;;  %v7370_v28 = vld [vmem:[#allocation29_spill] sm:$0xff] }
0x1172   :  { %4701 = vmatprep.subr.mxu0 %v7357_v3 }
0x1173   :  { %4702 = vmatpush3.msra.mxu0 %v5840_v31  ;;  %v7371_v31 = vld [vmem:[#allocation30_spill] sm:$0xff] }
0x1174   :  { %v1541_v35 = vpop.permute.xlu0 %1540  ;;  %4706 = vmatprep.subr.mxu0 %v7357_v3 }
0x1175   :  { %v6287_v29 = vmul.f32 %v5201_v18, %v1541_v35 }
0x1177   :  { %1623 = vrot.lane.b32.xlu0 %v6287_v29, %s5457_s25 }
0x11e9   :  { %v6291_v10 = vpop.permute.xlu0 %1623 }
0x11ea   :  { %4662 = vmatmul.mubr.msk.f32.vlgmr.msra.gmra.mxu1 %vm370_vm7, %v6291_v10 }
0x11eb   :  { %4665 = vmatpush3.msra.mxu1 %v5708_v49  ;;  %4696 = vmatprep.mubr.msk.f32.mxu1 %vm5464_vm1, %v7357_v3  ;;  %v7363_v49 = vld [vmem:[#allocation22_spill] sm:$0xff] }
0x11ec   :  { %4666 = vmatprep.subr.mxu1 %v7357_v3 }
0x11ed   :  { %4667 = vmatpush3.msra.mxu1 %v5717_v51  ;;  %v7364_v51 = vld [vmem:[#allocation23_spill] sm:$0xff] }
0x11ee   :  { %4668 = vmatprep.subr.mxu1 %v7357_v3 }
0x11ef   :  { %4669 = vmatpush3.msra.mxu1 %v5726_v52  ;;  %v7365_v52 = vld [vmem:[#allocation24_spill] sm:$0xff] }
0x11f0   :  { %4670 = vmatprep.subr.mxu1 %v7357_v3 }
0x11f1   :  { %4671 = vmatpush3.msra.mxu1 %v5733_v53  ;;  %v7366_v53 = vld [vmem:[#allocation25_spill] sm:$0xff] }
0x11f2   :  { %4672 = vmatprep.subr.mxu1 %v7357_v3 }
0x11f3   :  { %4673 = vmatpush3.msra.mxu1 %v5740_v54  ;;  %v7367_v54 = vld [vmem:[#allocation26_spill] sm:$0xff] }
0x11f4   :  { %4674 = vmatprep.subr.mxu1 %v7357_v3 }
0x11f5   :  { %4675 = vmatpush3.msra.mxu1 %v5747_v55  ;;  %v7368_v55 = vld [vmem:[#allocation27_spill] sm:$0xff] }
0x11f6   :  { %4676 = vmatprep.subr.mxu1 %v7357_v3 }
0x11f7   :  { %4677 = vmatpush3.msra.mxu1 %v5756_v56  ;;  %v7369_v56 = vld [vmem:[#allocation28_spill] sm:$0xff] }
0x11f8   :  { %4678 = vmatprep.subr.mxu1 %v7357_v3 }
0x11f9   :  { %4679 = vmatpush3.msra.mxu1 %v7363_v49 }
0x11fa   :  { %4680 = vmatprep.subr.mxu1 %v7357_v3 }
0x11fb   :  { %4681 = vmatpush3.msra.mxu1 %v7364_v51  ;;  %v6463_v51 = vld [vmem:[%s7305_s7 + $0x8] sm:$0xff] }
0x11fc   :  { %4682 = vmatprep.subr.mxu1 %v7357_v3 }
0x11fd   :  { %4683 = vmatpush3.msra.mxu1 %v7365_v52 }
0x11fe   :  { %4684 = vmatprep.subr.mxu1 %v7357_v3 }
0x11ff   :  { %4685 = vmatpush3.msra.mxu1 %v7366_v53 }
0x1200   :  { %4686 = vmatprep.subr.mxu1 %v7357_v3 }
0x1201   :  { %4687 = vmatpush3.msra.mxu1 %v7367_v54  ;;  %v6471_v54 = vld [vmem:[%s7305_s7] sm:$0xff] }
0x1202   :  { %4688 = vmatprep.subr.mxu1 %v7357_v3 }
0x1203   :  { %4689 = vmatpush3.msra.mxu1 %v7368_v55  ;;  %v6479_v55 = vld [vmem:[%s7304_s6 + $0x78] sm:$0xff] }
0x1204   :  { %4690 = vmatprep.subr.mxu1 %v7357_v3 }
0x1205   :  { %4691 = vmatpush3.msra.mxu1 %v7369_v56  ;;  %v6488_v56 = vld [vmem:[%s7304_s6 + $0x70] sm:$0xff] }
0x1206   :  { %4692 = vmatprep.subr.mxu1 %v7357_v3 }
0x1207   :  { %4693 = vmatpush3.msra.mxu1 %v7370_v28  ;;  %v6495_v28 = vld [vmem:[%s7304_s6 + $0x68] sm:$0xff] }
0x1208   :  { %4694 = vmatprep.subr.mxu1 %v7357_v3 }
0x1209   :  { %4695 = vmatpush3.msra.mxu1 %v7371_v31  ;;  %v6502_v31 = vld [vmem:[%s7304_s6 + $0x60] sm:$0xff] }
0x120a   :  { %4733 = vmatprep.subr.mxu1 %v7357_v3 }
0x122c   :  { %v6329_v11 = vpop.f32.mrf.mxu0 }
0x122d   :  { %7372 = vst [vmem:[#allocation22_spill] sm:$0xff] %v6329_v11 }
0x122e   :  { %v4622_v12 = vpop.f32.mrf.mxu0 }
0x122f   :  { %v6509_v12 = vld [vmem:[%s7304_s6 + $0x58] sm:$0xff] }
0x1230   :  { %v1618_v39 = vpop.f32.mrf.mxu0 }
0x1232   :  { %v4652_v41 = vpop.f32.mrf.mxu0 }
0x1233   :  { %v6523_v41 = vld [vmem:[%s7304_s6 + $0x48] sm:$0xff] }
0x12aa   :  { %v1693_v43 = vpop.f32.mrf.mxu1 }
0x12ab   :  { %v1694_v36 = vadd.f32 %v1693_v43, %v5823_v13  ;;  %v7373_v13 = vld [vmem:[#allocation32_spill] sm:$0xff]  ;;  %v6530_v43 = vld [vmem:[%s7304_s6 + $0x40] sm:$0xff] }
0x12ac   :  { %v4663_v44 = vpop.f32.mrf.mxu1 }
0x12ad   :  { %v1697_v40 = vadd.f32 %v1694_v36, %v1618_v39  ;;  %v6516_v39 = vld [vmem:[%s7304_s6 + $0x50] sm:$0xff]  ;;  %v6537_v36 = vld [vmem:[%s7304_s6 + $0x38] sm:$0xff] }
0x12ae   :  { %v6544_v44 = vld [vmem:[%s7304_s6 + $0x30] sm:$0xff] }
0x12af   :  { %5206 = vtanh.f32 %v1697_v40  ;;  %7377 = vst [vmem:[#allocation24_spill] sm:$0xff] %v6544_v44  ;;  %v6551_v40 = vld [vmem:[%s7304_s6 + $0x28] sm:$0xff] }
0x12b0   :  { %7378 = vst [vmem:[#allocation25_spill] sm:$0xff] %v6551_v40 }
0x12bc   :  { %v5207_v37 = vpop.eup %5206 }
0x12bd   :  { %4697 = vmatmul.mubr.f32.vlgmr.msra.gmra.mxu1 %v5207_v37  ;;  %v6558_v37 = vld [vmem:[%s7304_s6 + $0x20] sm:$0xff] }
0x12be   :  { %4734 = vmatpush3.msra.mxu1 %v6029_v0  ;;  %4749 = vmatprep.mubr.msk.f32.mxu1 %vm5464_vm1, %v7357_v3  ;;  %v7374_v0 = vld [vmem:[#allocation33_spill] sm:$0xff]  ;;  %7379 = vst [vmem:[#allocation26_spill] sm:$0xff] %v6558_v37 }
0x12bf   :  { %4735 = vmatprep.subr.mxu1 %v7357_v3 }
0x12c0   :  { %4736 = vmatpush3.msra.mxu1 %v6034_v63  ;;  %v7375_v63 = vld [vmem:[#allocation34_spill] sm:$0xff] }
0x12c1   :  { %4737 = vmatprep.subr.mxu1 %v7357_v3 }
0x12c2   :  { %4738 = vmatpush3.msra.mxu1 %v6041_v5 }
0x12c3   :  { %4739 = vmatprep.subr.mxu1 %v7357_v3 }
0x12c4   :  { %4740 = vmatpush3.msra.mxu1 %v6048_v61 }
0x12c5   :  { %4741 = vmatprep.subr.mxu1 %v7357_v3 }
0x12c6   :  { %4742 = vmatpush3.msra.mxu1 %v6055_v42 }
0x12c7   :  { %4743 = vmatprep.subr.mxu1 %v7357_v3 }
0x12c8   :  { %4744 = vmatpush3.msra.mxu1 %v7373_v13  ;;  %v6565_v13 = vld [vmem:[%s7304_s6 + $0x18] sm:$0xff] }
0x12c9   :  { %4745 = vmatprep.subr.mxu1 %v7357_v3  ;;  %7380 = vst [vmem:[#allocation27_spill] sm:$0xff] %v6565_v13 }
0x12ca   :  { %4746 = vmatpush3.msra.mxu1 %v7374_v0  ;;  %v6572_v0 = vld [vmem:[%s7304_s6 + $0x10] sm:$0xff] }
0x12cb   :  { %4747 = vmatprep.subr.mxu1 %v7357_v3  ;;  %7381 = vst [vmem:[#allocation28_spill] sm:$0xff] %v6572_v0 }
0x12cc   :  { %4748 = vmatpush3.msra.mxu1 %v7375_v63  ;;  %v6579_v63 = vld [vmem:[%s7304_s6 + $0x8] sm:$0xff] }
0x12cd   :  { %4775 = vmatprep.subr.mxu1 %v7357_v3  ;;  %7382 = vst [vmem:[#allocation29_spill] sm:$0xff] %v6579_v63 }
0x137d   :  { %v1765_v5 = vpop.f32.mrf.mxu1 }
0x137e   :  { %v1769_v61 = vsel %vm99_vm5, %v1765_v5, -inf }
0x137f   :  { %1770 = vmax.xlane.f32.xlu0 %v1769_v61  ;;  %v4698_v38 = vpop.f32.mrf.mxu1 }
0x1408   :  { %v1771_v42 = vpop.xlane.xlu0 %1770 }
0x1409   :  { %v1772_v27 = vsub.f32 %v1765_v5, %v1771_v42  ;;  %v6586_v5 = vld [vmem:[%s7304_s6] sm:$0xff] }
0x140a   :  { %7383 = vst [vmem:[#allocation30_spill] sm:$0xff] %v6586_v5 }
0x140b   :  { %v1773_v18 = vmul.f32 1.442695, %v1772_v27  ;;  %v6593_v27 = vld [vmem:[%s7308_s10] ss:$0 sm:$0xff] }
0x140c   :  { %7384 = vst [vmem:[#allocation32_spill] sm:$0xff] %v6593_v27 }
0x140d   :  { %5208 = vpow2.f32 %v1773_v18 }
0x140e   :  { %5210 = vtanh.f32 %v6256_v4 }
0x141a   :  { %v5209_v32 = vpop.eup %5208 }
0x141b   :  { %v1775_v30 = vsel %vm99_vm5, %v5209_v32, 0.0  ;;  %v5211_v48 = vpop.eup %5210 }
0x141c   :  { %1776 = vadd.xlane.f32.xlu1 %v1775_v30 }
0x142d   :  { %1348 = vrot.lane.b32.xlu1 %v5211_v48, %s5467_s23 }
0x14a5   :  { %v1777_v14 = vpop.xlane.xlu1 %1776 }
0x14a6   :  { %5212 = vrcp.f32 %v1777_v14 }
0x14a9   :  { %v1349_v57 = vpop.permute.xlu1 %1348 }
0x14aa   :  { %v1351_v59 = vmul.f32 %v6246_v62, %v1349_v57 }
0x14ac   :  { %1869 = vrot.lane.b32.xlu1 %v1351_v59, %s5469_s21 }
0x14b0   :  { %2061 = vrot.lane.b32.xlu1 %v6287_v29, %s5468_s14  ;;  %v6448_v29 = vld [vmem:[%s7305_s7 + $0x18] sm:$0xff] }
0x14b3   :  { %v5213_v1 = vpop.eup %5212 }
0x14b4   :  { %v1779_v2 = vmul.f32 %v5213_v1, %v1777_v14 }
0x14b6   :  { %v1780_v47 = vsub.f32 2.0, %v1779_v2 }
0x14b8   :  { %v1781_v7 = vmul.f32 %v5213_v1, %v1780_v47 }
0x14ba   :  { %v6358_v58 = vmul.f32 %v5209_v32, %v1781_v7 }
0x14bc   :  { %7376 = vst [vmem:[#allocation23_spill] sm:$0xff] %v6358_v58  ;;  %1785 = vrot.lane.b32.xlu0 %v6358_v58, %s5462_s17 }
0x152e   :  { %v1786_v34 = vpop.permute.xlu0 %1785 }
0x152f   :  { %v1788_v8 = vsel %vm292_vm6, %v6358_v58, %v1786_v34 }
0x1530   :  { %v1789_v62 = vmul.f32 %v1788_v8, %v5851_v45 }
0x1532   :  { %4704 = vmatmul.mubr.msk.f32.vlgmr.msra.gmra.mxu0 %vm178_vm2, %v1789_v62 }
0x1533   :  { %4707 = vmatpush3.msra.mxu0 %v5862_v15  ;;  %4730 = vmatprep.mubr.msk.f32.mxu0 %vm5464_vm1, %v7357_v3 }
0x1534   :  { %4708 = vmatprep.subr.mxu0 %v7357_v3 }
0x1535   :  { %4709 = vmatpush3.msra.mxu0 %v5867_v46 }
0x1536   :  { %4710 = vmatprep.subr.mxu0 %v7357_v3 }
0x1537   :  { %4711 = vmatpush3.msra.mxu0 %v5874_v16  ;;  %v1870_v16 = vpop.permute.xlu1 %1869 }
0x1538   :  { %4712 = vmatprep.subr.mxu0 %v7357_v3 }
0x1539   :  { %4713 = vmatpush3.msra.mxu0 %v5881_v17 }
0x153a   :  { %4714 = vmatprep.subr.mxu0 %v7357_v3 }
0x153b   :  { %4715 = vmatpush3.msra.mxu0 %v5888_v19  ;;  %v2062_v52 = vpop.permute.xlu1 %2061 }
0x153c   :  { %4716 = vmatprep.subr.mxu0 %v7357_v3 }
0x153d   :  { %4717 = vmatpush3.msra.mxu0 %v5895_v20  ;;  %v6404_v20 = vld [vmem:[%s7305_s7 + $0x48] sm:$0xff] }
0x153e   :  { %4718 = vmatprep.subr.mxu0 %v7357_v3 }
0x153f   :  { %4719 = vmatpush3.msra.mxu0 %v5902_v21  ;;  %v6413_v21 = vld [vmem:[%s7305_s7 + $0x40] sm:$0xff] }
0x1540   :  { %4720 = vmatprep.subr.mxu0 %v7357_v3 }
0x1541   :  { %4721 = vmatpush3.msra.mxu0 %v5909_v22  ;;  %v6420_v22 = vld [vmem:[%s7305_s7 + $0x38] sm:$0xff] }
0x1542   :  { %4722 = vmatprep.subr.mxu0 %v7357_v3 }
0x1543   :  { %4723 = vmatpush3.msra.mxu0 %v5916_v23  ;;  %v6427_v23 = vld [vmem:[%s7305_s7 + $0x30] sm:$0xff] }
0x1544   :  { %4724 = vmatprep.subr.mxu0 %v7357_v3 }
0x1545   :  { %4725 = vmatpush3.msra.mxu0 %v5923_v24  ;;  %v6434_v24 = vld [vmem:[%s7305_s7 + $0x28] sm:$0xff] }
0x1546   :  { %4726 = vmatprep.subr.mxu0 %v7357_v3 }
0x1547   :  { %4727 = vmatpush3.msra.mxu0 %v5930_v25  ;;  %v6441_v25 = vld [vmem:[%s7305_s7 + $0x20] sm:$0xff] }
0x1548   :  { %4728 = vmatprep.subr.mxu0 %v7357_v3 }
0x1549   :  { %4729 = vmatpush3.msra.mxu0 %v5939_v26  ;;  %v2057_v26 = vld [vmem:[#allocation9 + $0x6] sm:$0x3] }
0x154a   :  { %4752 = vmatprep.subr.mxu0 %v7357_v3 }
0x15f2   :  { %v1859_v45 = vpop.f32.mrf.mxu0 }
0x15f3   :  { %1865 = vrot.lane.b32.xlu0 %v1859_v45, %s5457_s25 }
0x15f4   :  { %v4705_v15 = vpop.f32.mrf.mxu0 }
0x15f7   :  { %2058 = vrot.lane.b32.xlu0 %v1859_v45, %s5465_s22 }
0x1665   :  { %v6394_v46 = vpop.permute.xlu0 %1865 }
0x1666   :  { %v1872_v17 = vsel %vm370_vm7, %v6291_v10, %v6394_v46  ;;  %v6455_v10 = vld [vmem:[%s7305_s7 + $0x10] sm:$0xff] }
0x1667   :  { %v1873_v19 = vsel %vm620_vm8, %v1872_v17, %v1870_v16 }
0x1668   :  { %4731 = vmatmul.mubr.msk.f32.vlgmr.msra.gmra.mxu0 %vm626_vm9, %v1873_v19 }
0x1669   :  { %4753 = vmatpush3.msra.mxu0 %v6404_v20  ;;  %4772 = vmatprep.mubr.msk.f32.mxu0 %vm5464_vm1, %v7357_v3  ;;  %v2059_v35 = vpop.permute.xlu0 %2058 }
0x166a   :  { %4754 = vmatprep.subr.mxu0 %v7357_v3  ;;  %v2064_v49 = vsel %vm178_vm2, %v2057_v26, %v2059_v35 }
0x166b   :  { %4755 = vmatpush3.msra.mxu0 %v6413_v21  ;;  %v2065_v53 = vsel %vm180_vm3, %v2064_v49, %v2062_v52 }
0x166c   :  { %4756 = vmatprep.subr.mxu0 %v7357_v3 }
0x166d   :  { %4757 = vmatpush3.msra.mxu0 %v6420_v22 }
0x166e   :  { %4758 = vmatprep.subr.mxu0 %v7357_v3 }
0x166f   :  { %4759 = vmatpush3.msra.mxu0 %v6427_v23 }
0x1670   :  { %4760 = vmatprep.subr.mxu0 %v7357_v3 }
0x1671   :  { %4761 = vmatpush3.msra.mxu0 %v6434_v24 }
0x1672   :  { %4762 = vmatprep.subr.mxu0 %v7357_v3 }
0x1673   :  { %4763 = vmatpush3.msra.mxu0 %v6441_v25 }
0x1674   :  { %4764 = vmatprep.subr.mxu0 %v7357_v3 }
0x1675   :  { %4765 = vmatpush3.msra.mxu0 %v6448_v29 }
0x1676   :  { %4766 = vmatprep.subr.mxu0 %v7357_v3 }
0x1677   :  { %4767 = vmatpush3.msra.mxu0 %v6455_v10 }
0x1678   :  { %4768 = vmatprep.subr.mxu0 %v7357_v3 }
0x1679   :  { %4769 = vmatpush3.msra.mxu0 %v6463_v51 }
0x167a   :  { %4770 = vmatprep.subr.mxu0 %v7357_v3 }
0x167b   :  { %4771 = vmatpush3.msra.mxu0 %v6471_v54 }
0x167c   :  { %4773 = vmatmul.mubr.msk.f32.vlgmr.msra.gmra.mxu0 %vm186_vm4, %v2065_v53  ;;  %4793 = vmatprep.subr.mxu0 %v7357_v3 }
0x167d   :  { %4794 = vmatpush3.msra.mxu0 %v6479_v55  ;;  %4825 = vmatprep.mubr.msk.f32.mxu0 %vm5464_vm1, %v7357_v3 }
0x167e   :  { %4795 = vmatprep.subr.mxu0 %v7357_v3 }
0x167f   :  { %4796 = vmatpush3.msra.mxu0 %v6488_v56 }
0x1680   :  { %4797 = vmatprep.subr.mxu0 %v7357_v3 }
0x1681   :  { %4798 = vmatpush3.msra.mxu0 %v6495_v28 }
0x1682   :  { %4799 = vmatprep.subr.mxu0 %v7357_v3 }
0x1683   :  { %4800 = vmatpush3.msra.mxu0 %v6502_v31 }
0x1684   :  { %4801 = vmatprep.subr.mxu0 %v7357_v3 }
0x1685   :  { %4802 = vmatpush3.msra.mxu0 %v6509_v12 }
0x1686   :  { %4803 = vmatprep.subr.mxu0 %v7357_v3 }
0x1687   :  { %4804 = vmatpush3.msra.mxu0 %v6516_v39 }
0x1688   :  { %4805 = vmatprep.subr.mxu0 %v7357_v3 }
0x1689   :  { %4806 = vmatpush3.msra.mxu0 %v6523_v41 }
0x168a   :  { %4807 = vmatprep.subr.mxu0 %v7357_v3 }
0x168b   :  { %4808 = vmatpush3.msra.mxu0 %v6530_v43 }
0x168c   :  { %4809 = vmatprep.subr.mxu0 %v7357_v3 }
0x168d   :  { %4810 = vmatpush3.msra.mxu0 %v6537_v36 }
0x168e   :  { %4811 = vmatprep.subr.mxu0 %v7357_v3 }
0x168f   :  { %4812 = vmatpush3.msra.mxu0 %v6544_v44 }
0x1690   :  { %4813 = vmatprep.subr.mxu0 %v7357_v3 }
0x1691   :  { %4814 = vmatpush3.msra.mxu0 %v6551_v40 }
0x1692   :  { %4815 = vmatprep.subr.mxu0 %v7357_v3 }
0x1693   :  { %4816 = vmatpush3.msra.mxu0 %v6558_v37 }
0x1694   :  { %4817 = vmatprep.subr.mxu0 %v7357_v3 }
0x1695   :  { %4818 = vmatpush3.msra.mxu0 %v6565_v13 }
0x1696   :  { %4819 = vmatprep.subr.mxu0 %v7357_v3 }
0x1697   :  { %4820 = vmatpush3.msra.mxu0 %v6572_v0 }
0x1698   :  { %4821 = vmatprep.subr.mxu0 %v7357_v3 }
0x1699   :  { %4822 = vmatpush3.msra.mxu0 %v6579_v63 }
0x169a   :  { %4823 = vmatprep.subr.mxu0 %v7357_v3 }
0x169b   :  { %4824 = vmatpush3.msra.mxu0 %v6586_v5 }
0x169c   :  { %4862 = vmatprep.subr.mxu0 %v7357_v3 }
0x1728   :  { %v1943_v61 = vpop.f32.mrf.mxu0 }
0x1729   :  { %v1944_v30 = vadd.f32 %v6014_v33, %v1943_v61  ;;  %v6624_v61 = vld [vmem:[#allocation15 + $0x8] sm:$0xff] }
0x172a   :  { %v4732_v38 = vpop.f32.mrf.mxu0 }
0x172b   :  { %v3973_v59 = vmul.f32 -1.442695, %v1944_v30 }
0x173c   :  { %v2135_v42 = vpop.f32.mrf.mxu0 }
0x173d   :  { %v2136_v18 = vadd.f32 %v6593_v27, %v2135_v42 }
0x173e   :  { %v4774_v32 = vpop.f32.mrf.mxu0 }
0x173f   :  { %5214 = vtanh.f32 %v2136_v18  ;;  %v3976_v57 = vmul.f32 -1.442695, %v2136_v18  ;;  %v6642_v18 = vld [vmem:[%s7303_s5 + $0x18] sm:$0xff]  ;;  %v6651_v32 = vld [vmem:[%s7303_s5 + $0x10] sm:$0xff] }
0x1740   :  { %5216 = vtanh.f32 %v1944_v30  ;;  %v6658_v30 = vld [vmem:[%s7303_s5 + $0x8] sm:$0xff] }
0x1741   :  { %5218 = vpow2.f32 %v3976_v57  ;;  %v6676_v57 = vld [vmem:[%s7299_s1 + $0x8] sm:$0xff] }
0x1742   :  { %5220 = vpow2.f32 %v3973_v59  ;;  %v6685_v59 = vld [vmem:[%s7299_s1] sm:$0xff] }
0x174c   :  { %v5215_v48 = vpop.eup %5214 }
0x174d   :  { %2148 = vrot.lane.b32.xlu0 %v5215_v48, %s5467_s23  ;;  %v5217_v14 = vpop.eup %5216  ;;  %v6665_v48 = vld [vmem:[%s7303_s5] sm:$0xff] }
0x174e   :  { %v5219_v1 = vpop.eup %5218 }
0x174f   :  { %v2142_v2 = vadd.f32 1.0, %v5219_v1  ;;  %v5221_v47 = vpop.eup %5220 }
0x1750   :  { %v1950_v7 = vadd.f32 1.0, %v5221_v47 }
0x1751   :  { %1956 = vrot.lane.b32.xlu0 %v5217_v14, %s5467_s23  ;;  %5222 = vrcp.f32 %v2142_v2 }
0x1752   :  { %5224 = vrcp.f32 %v1950_v7 }
0x175e   :  { %v5223_v34 = vpop.eup %5222 }
0x175f   :  { %v6600_v62 = vpop.eup %5224  ;;  %v2146_v16 = vmul.f32 %v5223_v34, %v6251_v60  ;;  %v6617_v60 = vadd.f32 %v6358_v58, %v6262_v6 }
0x1760   :  { %v1954_v26 = vmul.f32 %v6600_v62, %v6256_v4 }
0x17bf   :  { %v2149_v33 = vpop.permute.xlu0 %2148 }
0x17c0   :  { %v2151_v8 = vmul.f32 %v5223_v34, %v2149_v33  ;;  %v6691_v33 = vld [vmem:[#allocation14] sm:$0x3] }
0x17c2   :  { %2153 = vrot.lane.b32.xlu1 %v2151_v8, %s5457_s25 }
0x17c3   :  { %v1957_v45 = vpop.permute.xlu0 %1956 }
0x17c4   :  { %v1959_v15 = vmul.f32 %v6600_v62, %v1957_v45 }
0x17c6   :  { %1961 = vrot.lane.b32.xlu1 %v1959_v15, %s5457_s25 }
0x1834   :  { %v2154_v17 = vpop.permute.xlu1 %2153 }
0x1835   :  { %v6605_v19 = vadd.f32 %v2154_v17, %v2146_v16  ;;  %v6697_v17 = vld [vmem:[%s7307_s9 + $0x38] sm:$0xff] }
0x1837   :  { %5226 = vtanh.f32 %v6605_v19 }
0x1838   :  { %v1962_v35 = vpop.permute.xlu1 %1961 }
0x1839   :  { %v6610_v49 = vadd.f32 %v1962_v35, %v1954_v26  ;;  %v6706_v26 = vld [vmem:[%s7307_s9 + $0x30] sm:$0xff]  ;;  %v6713_v35 = vld [vmem:[%s7307_s9 + $0x28] sm:$0xff] }
0x183b   :  { %1972 = vrot.lane.b32.xlu1 %v6610_v49, %s5469_s21 }
0x1844   :  { %v5227_v52 = vpop.eup %5226 }
0x1845   :  { %2159 = vrot.lane.b32.xlu0 %v5227_v52, %s5467_s23  ;;  %v6720_v52 = vld [vmem:[%s7307_s9 + $0x20] sm:$0xff] }
0x1849   :  { %2164 = vrot.lane.b32.xlu0 %v6617_v60, %s5462_s17 }
0x18ad   :  { %v1973_v53 = vpop.permute.xlu1 %1972 }
0x18ae   :  { %v1975_v4 = vsel %vm370_vm7, %v1973_v53, %v6394_v46  ;;  %v6727_v53 = vld [vmem:[%s7307_s9 + $0x18] sm:$0xff] }
0x18af   :  { %4750 = vmatmul.mubr.msk.f32.vlgmr.msra.gmra.mxu1 %vm620_vm8, %v1975_v4  ;;  %v6734_v4 = vld [vmem:[%s7307_s9 + $0x10] sm:$0xff] }
0x18b0   :  { %4776 = vmatpush3.msra.mxu1 %v6624_v61  ;;  %4779 = vmatprep.mubr.msk.f32.mxu1 %vm5464_vm1, %v7357_v3 }
0x18b1   :  { %4777 = vmatprep.subr.mxu1 %v7357_v3 }
0x18b2   :  { %4778 = vmatpush3.msra.mxu1 %v6276_v9 }
0x18b3   :  { %4782 = vmatprep.subr.mxu1 %v7357_v3 }
0x18b7   :  { %v2160_v6 = vpop.permute.xlu0 %2159 }
0x18b8   :  { %v6632_v38 = vmul.f32 %v5223_v34, %v2160_v6  ;;  %v6741_v6 = vld [vmem:[%s7307_s9 + $0x8] sm:$0xff] }
0x18ba   :  { %2242 = vrot.lane.b32.xlu1 %v6632_v38, %s5457_s25 }
0x18bb   :  { %v2165_v46 = vpop.permute.xlu0 %2164 }
0x18bc   :  { %v2167_v42 = vsel %vm292_vm6, %v6358_v58, %v2165_v46  ;;  %v6748_v46 = vld [vmem:[%s7307_s9] sm:$0xff] }
0x18bd   :  { %4780 = vmatmul.mubr.msk.f32.vlgmr.msra.gmra.mxu1 %vm178_vm2, %v2167_v42 }
0x18be   :  { %4783 = vmatpush3.msra.mxu1 %v6642_v18  ;;  %4790 = vmatprep.mubr.msk.f32.mxu1 %vm5464_vm1, %v7357_v3 }
0x18bf   :  { %4784 = vmatprep.subr.mxu1 %v7357_v3 }
0x18c0   :  { %4785 = vmatpush3.msra.mxu1 %v6651_v32 }
0x18c1   :  { %4786 = vmatprep.subr.mxu1 %v7357_v3 }
0x18c2   :  { %4787 = vmatpush3.msra.mxu1 %v6658_v30 }
0x18c3   :  { %4788 = vmatprep.subr.mxu1 %v7357_v3 }
0x18c4   :  { %4789 = vmatpush3.msra.mxu1 %v6665_v48 }
0x18c5   :  { %4828 = vmatprep.subr.mxu1 %v7357_v3 }
0x192c   :  { %v6669_v14 = vpop.permute.xlu1 %2242 }
0x192d   :  { %4791 = vmatmul.mubr.msk.f32.vlgmr.msra.gmra.mxu1 %vm370_vm7, %v6669_v14 }
0x192e   :  { %4829 = vmatpush3.msra.mxu1 %v6676_v57  ;;  %4832 = vmatprep.mubr.msk.f32.mxu1 %vm5464_vm1, %v7357_v3 }
0x192f   :  { %4830 = vmatprep.subr.mxu1 %v7357_v3 }
0x1930   :  { %4831 = vmatpush3.msra.mxu1 %v6685_v59 }
0x1931   :  { %4835 = vmatprep.subr.mxu1 %v7357_v3 }
0x196f   :  { %v6689_v1 = vpop.f32.mrf.mxu1 }
0x1970   :  { %7385 = vst [vmem:[#allocation33_spill] sm:$0xff] %v6689_v1 }
0x1971   :  { %v4751_v2 = vpop.f32.mrf.mxu1 }
0x197d   :  { %v2237_v47 = vpop.f32.mrf.mxu1 }
0x197f   :  { %v4781_v7 = vpop.f32.mrf.mxu1 }
0x19ed   :  { %v2312_v34 = vpop.f32.mrf.mxu1 }
0x19ee   :  { %v2313_v8 = vadd.f32 %v6691_v33, %v2312_v34 }
0x19ef   :  { %v4792_v45 = vpop.f32.mrf.mxu1 }
0x19f0   :  { %v2316_v15 = vadd.f32 %v2313_v8, %v2237_v47 }
0x19f2   :  { %5228 = vtanh.f32 %v2316_v15 }
0x19ff   :  { %v5229_v16 = vpop.eup %5228 }
0x1a00   :  { %4826 = vmatmul.mubr.f32.vlgmr.msra.gmra.mxu0 %v5229_v16 }
0x1a01   :  { %4863 = vmatpush3.msra.mxu0 %v6697_v17  ;;  %4878 = vmatprep.mubr.msk.f32.mxu0 %vm5464_vm1, %v7357_v3 }
0x1a02   :  { %4864 = vmatprep.subr.mxu0 %v7357_v3 }
0x1a03   :  { %4865 = vmatpush3.msra.mxu0 %v6706_v26 }
0x1a04   :  { %4866 = vmatprep.subr.mxu0 %v7357_v3 }
0x1a05   :  { %4867 = vmatpush3.msra.mxu0 %v6713_v35 }
0x1a06   :  { %4868 = vmatprep.subr.mxu0 %v7357_v3 }
0x1a07   :  { %4869 = vmatpush3.msra.mxu0 %v6720_v52 }
0x1a08   :  { %4870 = vmatprep.subr.mxu0 %v7357_v3 }
0x1a09   :  { %4871 = vmatpush3.msra.mxu0 %v6727_v53 }
0x1a0a   :  { %4872 = vmatprep.subr.mxu0 %v7357_v3 }
0x1a0b   :  { %4873 = vmatpush3.msra.mxu0 %v6734_v4 }
0x1a0c   :  { %4874 = vmatprep.subr.mxu0 %v7357_v3 }
0x1a0d   :  { %4875 = vmatpush3.msra.mxu0 %v6741_v6 }
0x1a0e   :  { %4876 = vmatprep.subr.mxu0 %v7357_v3 }
0x1a0f   :  { %4877 = vmatpush3.msra.mxu0 %v6748_v46 }
0x1a10   :  { %4904 = vmatprep.subr.mxu0 %v7357_v3 }
0x1ac0   :  { %v2384_v42 = vpop.f32.mrf.mxu0 }
0x1ac1   :  { %v2388_v2 = vsel %vm99_vm5, %v2384_v42, -inf }
0x1ac2   :  { %2389 = vmax.xlane.f32.xlu0 %v2388_v2  ;;  %v4827_v47 = vpop.f32.mrf.mxu0 }
0x1b4b   :  { %v2390_v7 = vpop.xlane.xlu0 %2389 }
0x1b4c   :  { %v2391_v34 = vsub.f32 %v2384_v42, %v2390_v7 }
0x1b4e   :  { %v2392_v8 = vmul.f32 1.442695, %v2391_v34 }
0x1b50   :  { %5230 = vpow2.f32 %v2392_v8 }
0x1b51   :  { %5232 = vtanh.f32 %v6610_v49 }
0x1b5d   :  { %v5231_v45 = vpop.eup %5230 }
0x1b5e   :  { %v2394_v15 = vsel %vm99_vm5, %v5231_v45, 0.0  ;;  %v5233_v16 = vpop.eup %5232 }
0x1b5f   :  { %2395 = vadd.xlane.f32.xlu1 %v2394_v15 }
0x1b70   :  { %1967 = vrot.lane.b32.xlu1 %v5233_v16, %s5467_s23  ;;  %v6766_v16 = vld [vmem:[#allocation12] sm:$0x3] }
0x1be8   :  { %v2396_v11 = vpop.xlane.xlu1 %2395 }
0x1be9   :  { %5234 = vrcp.f32 %v2396_v11 }
0x1bec   :  { %v1968_v1 = vpop.permute.xlu1 %1967 }
0x1bed   :  { %v1970_v50 = vmul.f32 %v6600_v62, %v1968_v1  ;;  %v6782_v62 = vld [vmem:[%s7306_s8 + $0x50] sm:$0xff]  ;;  %v6796_v1 = vld [vmem:[%s7306_s8 + $0x40] sm:$0xff] }
0x1bef   :  { %2488 = vrot.lane.b32.xlu1 %v1970_v50, %s5469_s21 }
0x1bf3   :  { %2680 = vrot.lane.b32.xlu1 %v6632_v38, %s5468_s14  ;;  %v6789_v38 = vld [vmem:[%s7306_s8 + $0x48] sm:$0xff] }
0x1bf6   :  { %v5235_v42 = vpop.eup %5234 }
0x1bf7   :  { %v2398_v2 = vmul.f32 %v5235_v42, %v2396_v11  ;;  %v6773_v11 = vld [vmem:[%s7306_s8 + $0x58] sm:$0xff] }
0x1bf9   :  { %v2399_v47 = vsub.f32 2.0, %v2398_v2  ;;  %v6817_v2 = vld [vmem:[%s7306_s8 + $0x28] sm:$0xff] }
0x1bfa   :  { %7386 = vst [vmem:[#allocation34_spill] sm:$0xff] %v6817_v2 }
0x1bfb   :  { %v2400_v7 = vmul.f32 %v5235_v42, %v2399_v47  ;;  %v6810_v42 = vld [vmem:[%s7306_s8 + $0x30] sm:$0xff]  ;;  %v6824_v47 = vld [vmem:[%s7306_s8 + $0x20] sm:$0xff] }
0x1bfc   :  { %7387 = vst [vmem:[#allocation37_spill] sm:$0xff] %v6824_v47 }
0x1bfd   :  { %v6760_v34 = vmul.f32 %v5231_v45, %v2400_v7  ;;  %v6803_v45 = vld [vmem:[%s7306_s8 + $0x38] sm:$0xff] }
0x1bfe   :  { %v6831_v7 = vld [vmem:[%s7306_s8 + $0x18] sm:$0xff] }
0x1bff   :  { %2404 = vrot.lane.b32.xlu0 %v6760_v34, %s5462_s17  ;;  %7388 = vst [vmem:[#allocation38_spill] sm:$0xff] %v6831_v7 }
0x1c71   :  { %v2405_v8 = vpop.permute.xlu0 %2404 }
0x1c72   :  { %v2407_v15 = vsel %vm292_vm6, %v6760_v34, %v2405_v8  ;;  %v6838_v8 = vld [vmem:[%s7306_s8 + $0x10] sm:$0xff] }
0x1c73   :  { %v2408_v50 = vmul.f32 %v6766_v16, %v2407_v15  ;;  %7389 = vst [vmem:[#allocation39_spill] sm:$0xff] %v6838_v8  ;;  %v6845_v15 = vld [vmem:[%s7306_s8 + $0x8] sm:$0xff] }
0x1c74   :  { %7390 = vst [vmem:[#allocation40_spill] sm:$0xff] %v6845_v15 }
0x1c75   :  { %4833 = vmatmul.mubr.msk.f32.vlgmr.msra.gmra.mxu1 %vm178_vm2, %v2408_v50  ;;  %v6852_v50 = vld [vmem:[%s7306_s8] sm:$0xff] }
0x1c76   :  { %4836 = vmatpush3.msra.mxu1 %v6773_v11  ;;  %4859 = vmatprep.mubr.msk.f32.mxu1 %vm5464_vm1, %v7357_v3 }
0x1c77   :  { %4837 = vmatprep.subr.mxu1 %v7357_v3 }
0x1c78   :  { %4838 = vmatpush3.msra.mxu1 %v6782_v62 }
0x1c79   :  { %4839 = vmatprep.subr.mxu1 %v7357_v3 }
0x1c7a   :  { %4840 = vmatpush3.msra.mxu1 %v6789_v38 }
0x1c7b   :  { %4841 = vmatprep.subr.mxu1 %v7357_v3 }
0x1c7c   :  { %4842 = vmatpush3.msra.mxu1 %v6796_v1 }
0x1c7d   :  { %4843 = vmatprep.subr.mxu1 %v7357_v3 }
0x1c7e   :  { %4844 = vmatpush3.msra.mxu1 %v6803_v45 }
0x1c7f   :  { %4845 = vmatprep.subr.mxu1 %v7357_v3 }
0x1c80   :  { %4846 = vmatpush3.msra.mxu1 %v6810_v42 }
0x1c81   :  { %4847 = vmatprep.subr.mxu1 %v7357_v3 }
0x1c82   :  { %4848 = vmatpush3.msra.mxu1 %v6817_v2 }
0x1c83   :  { %4849 = vmatprep.subr.mxu1 %v7357_v3 }
0x1c84   :  { %4850 = vmatpush3.msra.mxu1 %v6824_v47 }
0x1c85   :  { %4851 = vmatprep.subr.mxu1 %v7357_v3 }
0x1c86   :  { %4852 = vmatpush3.msra.mxu1 %v6831_v7 }
0x1c87   :  { %4853 = vmatprep.subr.mxu1 %v7357_v3 }
0x1c88   :  { %4854 = vmatpush3.msra.mxu1 %v6838_v8 }
0x1c89   :  { %4855 = vmatprep.subr.mxu1 %v7357_v3 }
0x1c8a   :  { %4856 = vmatpush3.msra.mxu1 %v6845_v15  ;;  %v2489_v15 = vpop.permute.xlu1 %2488 }
0x1c8b   :  { %4857 = vmatprep.subr.mxu1 %v7357_v3 }
0x1c8c   :  { %4858 = vmatpush3.msra.mxu1 %v6852_v50 }
0x1c8d   :  { %4881 = vmatprep.subr.mxu1 %v7357_v3 }
0x1d35   :  { %v2478_v58 = vpop.f32.mrf.mxu1 }
0x1d36   :  { %2484 = vrot.lane.b32.xlu0 %v2478_v58, %s5457_s25 }
0x1d37   :  { %v4834_v8 = vpop.f32.mrf.mxu1 }
0x1d3a   :  { %2677 = vrot.lane.b32.xlu0 %v2478_v58, %s5465_s22  ;;  %v2676_v58 = vld [vmem:[#allocation9 + $0x8] sm:$0x3] }
0x1da8   :  { %v6858_v7 = vpop.permute.xlu0 %2484 }
0x1da9   :  { %v2491_v47 = vsel %vm370_vm7, %v6669_v14, %v6858_v7 }
0x1daa   :  { %v2492_v2 = vsel %vm620_vm8, %v2491_v47, %v2489_v15  ;;  %v2681_v47 = vpop.permute.xlu1 %2680 }
0x1dab   :  { %4860 = vmatmul.mubr.msk.f32.vlgmr.msra.gmra.mxu1 %vm626_vm9, %v2492_v2 }
0x1dac   :  { %4882 = vmatpush3.msra.mxu1 %v6404_v20  ;;  %4901 = vmatprep.mubr.msk.f32.mxu1 %vm5464_vm1, %v7357_v3  ;;  %v2678_v14 = vpop.permute.xlu0 %2677 }
0x1dad   :  { %4883 = vmatprep.subr.mxu1 %v7357_v3  ;;  %v2683_v2 = vsel %vm178_vm2, %v2676_v58, %v2678_v14 }
0x1dae   :  { %4884 = vmatpush3.msra.mxu1 %v6413_v21  ;;  %v2684_v8 = vsel %vm180_vm3, %v2683_v2, %v2681_v47 }
0x1daf   :  { %4885 = vmatprep.subr.mxu1 %v7357_v3 }
0x1db0   :  { %4886 = vmatpush3.msra.mxu1 %v6420_v22 }
0x1db1   :  { %4887 = vmatprep.subr.mxu1 %v7357_v3 }
0x1db2   :  { %4888 = vmatpush3.msra.mxu1 %v6427_v23 }
0x1db3   :  { %4889 = vmatprep.subr.mxu1 %v7357_v3 }
0x1db4   :  { %4890 = vmatpush3.msra.mxu1 %v6434_v24 }
0x1db5   :  { %4891 = vmatprep.subr.mxu1 %v7357_v3 }
0x1db6   :  { %4892 = vmatpush3.msra.mxu1 %v6441_v25 }
0x1db7   :  { %4893 = vmatprep.subr.mxu1 %v7357_v3 }
0x1db8   :  { %4894 = vmatpush3.msra.mxu1 %v6448_v29 }
0x1db9   :  { %4895 = vmatprep.subr.mxu1 %v7357_v3 }
0x1dba   :  { %4896 = vmatpush3.msra.mxu1 %v6455_v10 }
0x1dbb   :  { %4897 = vmatprep.subr.mxu1 %v7357_v3 }
0x1dbc   :  { %4898 = vmatpush3.msra.mxu1 %v6463_v51 }
0x1dbd   :  { %4899 = vmatprep.subr.mxu1 %v7357_v3 }
0x1dbe   :  { %4900 = vmatpush3.msra.mxu1 %v6471_v54 }
0x1dbf   :  { %4902 = vmatmul.mubr.msk.f32.vlgmr.msra.gmra.mxu1 %vm186_vm4, %v2684_v8  ;;  %4922 = vmatprep.subr.mxu1 %v7357_v3  ;;  %v6928_v8 = vld [vmem:[%s7308_s10 + $0x1] ss:$0 sm:$0xff] }
0x1dc0   :  { %4923 = vmatpush3.msra.mxu1 %v6479_v55  ;;  %4954 = vmatprep.mubr.msk.f32.mxu1 %vm5464_vm1, %v7357_v3  ;;  %7391 = vst [vmem:[#allocation41_spill] sm:$0xff] %v6928_v8 }
0x1dc1   :  { %4924 = vmatprep.subr.mxu1 %v7357_v3 }
0x1dc2   :  { %4925 = vmatpush3.msra.mxu1 %v6488_v56 }
0x1dc3   :  { %4926 = vmatprep.subr.mxu1 %v7357_v3 }
0x1dc4   :  { %4927 = vmatpush3.msra.mxu1 %v6495_v28 }
0x1dc5   :  { %4928 = vmatprep.subr.mxu1 %v7357_v3 }
0x1dc6   :  { %4929 = vmatpush3.msra.mxu1 %v6502_v31 }
0x1dc7   :  { %4930 = vmatprep.subr.mxu1 %v7357_v3 }
0x1dc8   :  { %4931 = vmatpush3.msra.mxu1 %v6509_v12 }
0x1dc9   :  { %4932 = vmatprep.subr.mxu1 %v7357_v3 }
0x1dca   :  { %4933 = vmatpush3.msra.mxu1 %v6516_v39 }
0x1dcb   :  { %4934 = vmatprep.subr.mxu1 %v7357_v3 }
0x1dcc   :  { %4935 = vmatpush3.msra.mxu1 %v6523_v41 }
0x1dcd   :  { %4936 = vmatprep.subr.mxu1 %v7357_v3 }
0x1dce   :  { %4937 = vmatpush3.msra.mxu1 %v6530_v43 }
0x1dcf   :  { %4938 = vmatprep.subr.mxu1 %v7357_v3 }
0x1dd0   :  { %4939 = vmatpush3.msra.mxu1 %v6537_v36 }
0x1dd1   :  { %4940 = vmatprep.subr.mxu1 %v7357_v3 }
0x1dd2   :  { %4941 = vmatpush3.msra.mxu1 %v6544_v44 }
0x1dd3   :  { %4942 = vmatprep.subr.mxu1 %v7357_v3 }
0x1dd4   :  { %4943 = vmatpush3.msra.mxu1 %v6551_v40 }
0x1dd5   :  { %4944 = vmatprep.subr.mxu1 %v7357_v3 }
0x1dd6   :  { %4945 = vmatpush3.msra.mxu1 %v6558_v37 }
0x1dd7   :  { %4946 = vmatprep.subr.mxu1 %v7357_v3 }
0x1dd8   :  { %4947 = vmatpush3.msra.mxu1 %v6565_v13 }
0x1dd9   :  { %4948 = vmatprep.subr.mxu1 %v7357_v3 }
0x1dda   :  { %4949 = vmatpush3.msra.mxu1 %v6572_v0 }
0x1ddb   :  { %4950 = vmatprep.subr.mxu1 %v7357_v3 }
0x1ddc   :  { %4951 = vmatpush3.msra.mxu1 %v6579_v63 }
0x1ddd   :  { %4952 = vmatprep.subr.mxu1 %v7357_v3 }
0x1dde   :  { %4953 = vmatpush3.msra.mxu1 %v6586_v5 }
0x1ddf   :  { %4991 = vmatprep.subr.mxu1 %v7357_v3 }
0x1e6b   :  { %v2562_v15 = vpop.f32.mrf.mxu1 }
0x1e6c   :  { %v2563_v0 = vadd.f32 %v6928_v8, %v2562_v15 }
0x1e6d   :  { %v4861_v58 = vpop.f32.mrf.mxu1 }
0x1e6e   :  { %v3981_v13 = vmul.f32 -1.442695, %v2563_v0 }
0x1e7f   :  { %v2754_v14 = vpop.f32.mrf.mxu1 }
0x1e80   :  { %v2755_v2 = vadd.f32 %v6593_v27, %v2754_v14 }
0x1e81   :  { %v4903_v47 = vpop.f32.mrf.mxu1 }
0x1e82   :  { %5236 = vtanh.f32 %v2755_v2  ;;  %v3984_v58 = vmul.f32 -1.442695, %v2755_v2 }
0x1e83   :  { %5238 = vtanh.f32 %v2563_v0 }
0x1e84   :  { %5240 = vpow2.f32 %v3984_v58 }
0x1e85   :  { %5242 = vpow2.f32 %v3981_v13 }
0x1e8f   :  { %v5237_v63 = vpop.eup %5236 }
0x1e90   :  { %2767 = vrot.lane.b32.xlu0 %v5237_v63, %s5467_s23  ;;  %v5239_v5 = vpop.eup %5238 }
0x1e91   :  { %v5241_v14 = vpop.eup %5240 }
0x1e92   :  { %v2761_v47 = vadd.f32 1.0, %v5241_v14  ;;  %v5243_v27 = vpop.eup %5242 }
0x1e93   :  { %v2569_v37 = vadd.f32 1.0, %v5243_v27 }
0x1e94   :  { %2575 = vrot.lane.b32.xlu0 %v5239_v5, %s5467_s23  ;;  %5244 = vrcp.f32 %v2761_v47 }
0x1e95   :  { %5246 = vrcp.f32 %v2569_v37 }
0x1ea1   :  { %v5245_v40 = vpop.eup %5244 }
0x1ea2   :  { %v6934_v44 = vpop.eup %5246  ;;  %v2765_v13 = vmul.f32 %v5245_v40, %v6605_v19  ;;  %v6951_v19 = vadd.f32 %v6760_v34, %v6617_v60 }
0x1ea3   :  { %v2573_v37 = vmul.f32 %v6934_v44, %v6610_v49 }
0x1f02   :  { %v2768_v15 = vpop.permute.xlu0 %2767 }
0x1f03   :  { %v2770_v8 = vmul.f32 %v5245_v40, %v2768_v15 }
0x1f05   :  { %2772 = vrot.lane.b32.xlu1 %v2770_v8, %s5457_s25 }
0x1f06   :  { %v2576_v63 = vpop.permute.xlu0 %2575 }
0x1f07   :  { %v2578_v5 = vmul.f32 %v6934_v44, %v2576_v63 }
0x1f09   :  { %2580 = vrot.lane.b32.xlu1 %v2578_v5, %s5457_s25 }
0x1f77   :  { %v2773_v0 = vpop.permute.xlu1 %2772 }
0x1f78   :  { %v6939_v2 = vadd.f32 %v2773_v0, %v2765_v13 }
0x1f7a   :  { %5248 = vtanh.f32 %v6939_v2 }
0x1f7b   :  { %v2581_v27 = vpop.permute.xlu1 %2580 }
0x1f7c   :  { %v6944_v58 = vadd.f32 %v2581_v27, %v2573_v37 }
0x1f7e   :  { %2591 = vrot.lane.b32.xlu1 %v6944_v58, %s5469_s21 }
0x1f87   :  { %v5249_v8 = vpop.eup %5248 }
0x1f88   :  { %2778 = vrot.lane.b32.xlu0 %v5249_v8, %s5467_s23 }
0x1f8c   :  { %2783 = vrot.lane.b32.xlu0 %v6951_v19, %s5462_s17 }
0x1ff0   :  { %v2592_v14 = vpop.permute.xlu1 %2591 }
0x1ff1   :  { %v2594_v49 = vsel %vm370_vm7, %v2592_v14, %v6858_v7 }
0x1ff2   :  { %4879 = vmatmul.mubr.msk.f32.vlgmr.msra.gmra.mxu0 %vm620_vm8, %v2594_v49 }
0x1ff3   :  { %4905 = vmatpush3.msra.mxu0 %v6624_v61  ;;  %4908 = vmatprep.mubr.msk.f32.mxu0 %vm5464_vm1, %v7357_v3 }
0x1ff4   :  { %4906 = vmatprep.subr.mxu0 %v7357_v3 }
0x1ff5   :  { %4907 = vmatpush3.msra.mxu0 %v6276_v9 }
0x1ff6   :  { %4911 = vmatprep.subr.mxu0 %v7357_v3 }
0x1ffa   :  { %v2779_v60 = vpop.permute.xlu0 %2778 }
0x1ffb   :  { %v6964_v47 = vmul.f32 %v5245_v40, %v2779_v60 }
0x1ffd   :  { %2861 = vrot.lane.b32.xlu1 %v6964_v47, %s5457_s25 }
0x1ffe   :  { %v2784_v7 = vpop.permute.xlu0 %2783 }
0x1fff   :  { %v2786_v15 = vsel %vm292_vm6, %v6760_v34, %v2784_v7 }
0x2000   :  { %4909 = vmatmul.mubr.msk.f32.vlgmr.msra.gmra.mxu0 %vm178_vm2, %v2786_v15 }
0x2001   :  { %4912 = vmatpush3.msra.mxu0 %v6642_v18  ;;  %4919 = vmatprep.mubr.msk.f32.mxu0 %vm5464_vm1, %v7357_v3 }
0x2002   :  { %4913 = vmatprep.subr.mxu0 %v7357_v3 }
0x2003   :  { %4914 = vmatpush3.msra.mxu0 %v6651_v32 }
0x2004   :  { %4915 = vmatprep.subr.mxu0 %v7357_v3 }
0x2005   :  { %4916 = vmatpush3.msra.mxu0 %v6658_v30 }
0x2006   :  { %4917 = vmatprep.subr.mxu0 %v7357_v3 }
0x2007   :  { %4918 = vmatpush3.msra.mxu0 %v6665_v48 }
0x2008   :  { %4957 = vmatprep.subr.mxu0 %v7357_v3 }
0x206f   :  { %v6981_v9 = vpop.permute.xlu1 %2861 }
0x2070   :  { %4920 = vmatmul.mubr.msk.f32.vlgmr.msra.gmra.mxu0 %vm370_vm7, %v6981_v9 }
0x2071   :  { %4958 = vmatpush3.msra.mxu0 %v6676_v57  ;;  %4961 = vmatprep.mubr.msk.f32.mxu0 %vm5464_vm1, %v7357_v3 }
0x2072   :  { %4959 = vmatprep.subr.mxu0 %v7357_v3 }
0x2073   :  { %4960 = vmatpush3.msra.mxu0 %v6685_v59 }
0x2074   :  { %4964 = vmatprep.subr.mxu0 %v7357_v3 }
0x20b2   :  { %v6991_v40 = vpop.f32.mrf.mxu0 }
0x20b4   :  { %v4880_v63 = vpop.f32.mrf.mxu0 }
0x20c0   :  { %v2856_v5 = vpop.f32.mrf.mxu0 }
0x20c2   :  { %v4910_v13 = vpop.f32.mrf.mxu0 }
0x2130   :  { %v2931_v0 = vpop.f32.mrf.mxu0 }
0x2131   :  { %v2932_v37 = vadd.f32 %v6691_v33, %v2931_v0 }
0x2132   :  { %v4921_v27 = vpop.f32.mrf.mxu0 }
0x2133   :  { %v2935_v8 = vadd.f32 %v2932_v37, %v2856_v5 }
0x2135   :  { %5250 = vtanh.f32 %v2935_v8 }
0x2142   :  { %v5251_v14 = vpop.eup %5250 }
0x2143   :  { %4955 = vmatmul.mubr.f32.vlgmr.msra.gmra.mxu1 %v5251_v14 }
0x2144   :  { %4992 = vmatpush3.msra.mxu1 %v6697_v17  ;;  %5007 = vmatprep.mubr.msk.f32.mxu1 %vm5464_vm1, %v7357_v3 }
0x2145   :  { %4993 = vmatprep.subr.mxu1 %v7357_v3 }
0x2146   :  { %4994 = vmatpush3.msra.mxu1 %v6706_v26 }
0x2147   :  { %4995 = vmatprep.subr.mxu1 %v7357_v3 }
0x2148   :  { %4996 = vmatpush3.msra.mxu1 %v6713_v35 }
0x2149   :  { %4997 = vmatprep.subr.mxu1 %v7357_v3 }
0x214a   :  { %4998 = vmatpush3.msra.mxu1 %v6720_v52 }
0x214b   :  { %4999 = vmatprep.subr.mxu1 %v7357_v3 }
0x214c   :  { %5000 = vmatpush3.msra.mxu1 %v6727_v53 }
0x214d   :  { %5001 = vmatprep.subr.mxu1 %v7357_v3 }
0x214e   :  { %5002 = vmatpush3.msra.mxu1 %v6734_v4 }
0x214f   :  { %5003 = vmatprep.subr.mxu1 %v7357_v3 }
0x2150   :  { %5004 = vmatpush3.msra.mxu1 %v6741_v6 }
0x2151   :  { %5005 = vmatprep.subr.mxu1 %v7357_v3 }
0x2152   :  { %5006 = vmatpush3.msra.mxu1 %v6748_v46 }
0x2153   :  { %5033 = vmatprep.subr.mxu1 %v7357_v3 }
0x2203   :  { %v3003_v49 = vpop.f32.mrf.mxu1 }
0x2204   :  { %v3007_v60 = vsel %vm99_vm5, %v3003_v49, -inf }
0x2205   :  { %3008 = vmax.xlane.f32.xlu0 %v3007_v60  ;;  %v4956_v7 = vpop.f32.mrf.mxu1 }
0x228e   :  { %v3009_v15 = vpop.xlane.xlu0 %3008 }
0x228f   :  { %v3010_v63 = vsub.f32 %v3003_v49, %v3009_v15 }
0x2291   :  { %v3011_v5 = vmul.f32 1.442695, %v3010_v63 }
0x2293   :  { %5252 = vpow2.f32 %v3011_v5 }
0x2294   :  { %5254 = vtanh.f32 %v6944_v58 }
0x22a0   :  { %v5253_v13 = vpop.eup %5252 }
0x22a1   :  { %v3013_v0 = vsel %vm99_vm5, %v5253_v13, 0.0  ;;  %v5255_v37 = vpop.eup %5254 }
0x22a2   :  { %3014 = vadd.xlane.f32.xlu1 %v3013_v0 }
0x22b3   :  { %2586 = vrot.lane.b32.xlu1 %v5255_v37, %s5467_s23  ;;  %v7394_v37 = vld [vmem:[#allocation38_spill] sm:$0xff] }
0x232b   :  { %v3015_v27 = vpop.xlane.xlu1 %3014 }
0x232c   :  { %5256 = vrcp.f32 %v3015_v27 }
0x232f   :  { %v2587_v8 = vpop.permute.xlu1 %2586 }
0x2330   :  { %v2589_v14 = vmul.f32 %v6934_v44, %v2587_v8  ;;  %v7396_v8 = vld [vmem:[#allocation40_spill] sm:$0xff] }
0x2332   :  { %3107 = vrot.lane.b32.xlu1 %v2589_v14, %s5469_s21 }
0x2336   :  { %3299 = vrot.lane.b32.xlu1 %v6964_v47, %s5468_s14  ;;  %v7392_v47 = vld [vmem:[#allocation34_spill] sm:$0xff] }
0x2339   :  { %v5257_v49 = vpop.eup %5256 }
0x233a   :  { %v3017_v60 = vmul.f32 %v5257_v49, %v3015_v27  ;;  %v7395_v27 = vld [vmem:[#allocation39_spill] sm:$0xff] }
0x233c   :  { %v3018_v7 = vsub.f32 2.0, %v3017_v60 }
0x233e   :  { %v3019_v15 = vmul.f32 %v5257_v49, %v3018_v7 }
0x2340   :  { %v7020_v63 = vmul.f32 %v5253_v13, %v3019_v15  ;;  %v7393_v13 = vld [vmem:[#allocation37_spill] sm:$0xff] }
0x2342   :  { %3023 = vrot.lane.b32.xlu0 %v7020_v63, %s5462_s17 }
0x23a4   :  { %v3108_v7 = vpop.permute.xlu1 %3107 }
0x23b4   :  { %v3024_v5 = vpop.permute.xlu0 %3023 }
0x23b5   :  { %v3026_v0 = vsel %vm292_vm6, %v7020_v63, %v3024_v5 }
0x23b6   :  { %v3027_v44 = vmul.f32 %v6766_v16, %v3026_v0 }
0x23b8   :  { %4962 = vmatmul.mubr.msk.f32.vlgmr.msra.gmra.mxu0 %vm178_vm2, %v3027_v44 }
0x23b9   :  { %4965 = vmatpush3.msra.mxu0 %v6773_v11  ;;  %4988 = vmatprep.mubr.msk.f32.mxu0 %vm5464_vm1, %v7357_v3 }
0x23ba   :  { %4966 = vmatprep.subr.mxu0 %v7357_v3 }
0x23bb   :  { %4967 = vmatpush3.msra.mxu0 %v6782_v62 }
0x23bc   :  { %4968 = vmatprep.subr.mxu0 %v7357_v3 }
0x23bd   :  { %4969 = vmatpush3.msra.mxu0 %v6789_v38 }
0x23be   :  { %4970 = vmatprep.subr.mxu0 %v7357_v3 }
0x23bf   :  { %4971 = vmatpush3.msra.mxu0 %v6796_v1 }
0x23c0   :  { %4972 = vmatprep.subr.mxu0 %v7357_v3 }
0x23c1   :  { %4973 = vmatpush3.msra.mxu0 %v6803_v45 }
0x23c2   :  { %4974 = vmatprep.subr.mxu0 %v7357_v3 }
0x23c3   :  { %4975 = vmatpush3.msra.mxu0 %v6810_v42 }
0x23c4   :  { %4976 = vmatprep.subr.mxu0 %v7357_v3 }
0x23c5   :  { %4977 = vmatpush3.msra.mxu0 %v7392_v47 }
0x23c6   :  { %4978 = vmatprep.subr.mxu0 %v7357_v3 }
0x23c7   :  { %4979 = vmatpush3.msra.mxu0 %v7393_v13 }
0x23c8   :  { %4980 = vmatprep.subr.mxu0 %v7357_v3 }
0x23c9   :  { %4981 = vmatpush3.msra.mxu0 %v7394_v37 }
0x23ca   :  { %4982 = vmatprep.subr.mxu0 %v7357_v3 }
0x23cb   :  { %4983 = vmatpush3.msra.mxu0 %v7395_v27 }
0x23cc   :  { %4984 = vmatprep.subr.mxu0 %v7357_v3 }
0x23cd   :  { %4985 = vmatpush3.msra.mxu0 %v7396_v8 }
0x23ce   :  { %4986 = vmatprep.subr.mxu0 %v7357_v3 }
0x23cf   :  { %4987 = vmatpush3.msra.mxu0 %v6852_v50 }
0x23d0   :  { %5010 = vmatprep.subr.mxu0 %v7357_v3 }
0x2478   :  { %v3097_v14 = vpop.f32.mrf.mxu0 }
0x2479   :  { %3103 = vrot.lane.b32.xlu0 %v3097_v14, %s5457_s25 }
0x247a   :  { %v4963_v49 = vpop.f32.mrf.mxu0 }
0x247d   :  { %3296 = vrot.lane.b32.xlu0 %v3097_v14, %s5465_s22 }
0x24eb   :  { %v7056_v60 = vpop.permute.xlu0 %3103 }
0x24ec   :  { %v3110_v15 = vsel %vm370_vm7, %v6981_v9, %v7056_v60 }
0x24ed   :  { %v3111_v5 = vsel %vm620_vm8, %v3110_v15, %v3108_v7 }
0x24ee   :  { %4989 = vmatmul.mubr.msk.f32.vlgmr.msra.gmra.mxu0 %vm626_vm9, %v3111_v5 }
0x24ef   :  { %5011 = vmatpush3.msra.mxu0 %v6404_v20  ;;  %5030 = vmatprep.mubr.msk.f32.mxu0 %vm5464_vm1, %v7357_v3  ;;  %v3295_v20 = vld [vmem:[#allocation9 + $0xa] sm:$0x3] }
0x24f0   :  { %5012 = vmatprep.subr.mxu0 %v7357_v3 }
0x24f1   :  { %5013 = vmatpush3.msra.mxu0 %v6413_v21  ;;  %v3297_v21 = vpop.permute.xlu0 %3296 }
0x24f2   :  { %5014 = vmatprep.subr.mxu0 %v7357_v3 }
0x24f3   :  { %5015 = vmatpush3.msra.mxu0 %v6420_v22  ;;  %v3302_v22 = vsel %vm178_vm2, %v3295_v20, %v3297_v21 }
0x24f4   :  { %5016 = vmatprep.subr.mxu0 %v7357_v3 }
0x24f5   :  { %5017 = vmatpush3.msra.mxu0 %v6427_v23  ;;  %v3300_v23 = vpop.permute.xlu1 %3299 }
0x24f6   :  { %5018 = vmatprep.subr.mxu0 %v7357_v3 }
0x24f7   :  { %5019 = vmatpush3.msra.mxu0 %v6434_v24  ;;  %v3303_v24 = vsel %vm180_vm3, %v3302_v22, %v3300_v23 }
0x24f8   :  { %5020 = vmatprep.subr.mxu0 %v7357_v3 }
0x24f9   :  { %5021 = vmatpush3.msra.mxu0 %v6441_v25  ;;  %v7397_v25 = vld [vmem:[#allocation24_spill] sm:$0xff] }
0x24fa   :  { %5022 = vmatprep.subr.mxu0 %v7357_v3 }
0x24fb   :  { %5023 = vmatpush3.msra.mxu0 %v6448_v29  ;;  %v7398_v29 = vld [vmem:[#allocation25_spill] sm:$0xff] }
0x24fc   :  { %5024 = vmatprep.subr.mxu0 %v7357_v3 }
0x24fd   :  { %5025 = vmatpush3.msra.mxu0 %v6455_v10  ;;  %v7399_v10 = vld [vmem:[#allocation26_spill] sm:$0xff] }
0x24fe   :  { %5026 = vmatprep.subr.mxu0 %v7357_v3 }
0x24ff   :  { %5027 = vmatpush3.msra.mxu0 %v6463_v51  ;;  %v7400_v51 = vld [vmem:[#allocation27_spill] sm:$0xff] }
0x2500   :  { %5028 = vmatprep.subr.mxu0 %v7357_v3 }
0x2501   :  { %5029 = vmatpush3.msra.mxu0 %v6471_v54  ;;  %v7401_v54 = vld [vmem:[#allocation28_spill] sm:$0xff] }
0x2502   :  { %5031 = vmatmul.mubr.msk.f32.vlgmr.msra.gmra.mxu0 %vm186_vm4, %v3303_v24  ;;  %5051 = vmatprep.subr.mxu0 %v7357_v3 }
0x2503   :  { %5052 = vmatpush3.msra.mxu0 %v6479_v55  ;;  %5083 = vmatprep.mubr.msk.f32.mxu0 %vm5464_vm1, %v7357_v3  ;;  %v7402_v55 = vld [vmem:[#allocation29_spill] sm:$0xff] }
0x2504   :  { %5053 = vmatprep.subr.mxu0 %v7357_v3 }
0x2505   :  { %5054 = vmatpush3.msra.mxu0 %v6488_v56  ;;  %v7403_v56 = vld [vmem:[#allocation30_spill] sm:$0xff] }
0x2506   :  { %5055 = vmatprep.subr.mxu0 %v7357_v3 }
0x2507   :  { %5056 = vmatpush3.msra.mxu0 %v6495_v28 }
0x2508   :  { %5057 = vmatprep.subr.mxu0 %v7357_v3 }
0x2509   :  { %5058 = vmatpush3.msra.mxu0 %v6502_v31 }
0x250a   :  { %5059 = vmatprep.subr.mxu0 %v7357_v3 }
0x250b   :  { %5060 = vmatpush3.msra.mxu0 %v6509_v12 }
0x250c   :  { %5061 = vmatprep.subr.mxu0 %v7357_v3 }
0x250d   :  { %5062 = vmatpush3.msra.mxu0 %v6516_v39  ;;  %v7404_v39 = vld [vmem:[#allocation32_spill] sm:$0xff] }
0x250e   :  { %5063 = vmatprep.subr.mxu0 %v7357_v3 }
0x250f   :  { %5064 = vmatpush3.msra.mxu0 %v6523_v41 }
0x2510   :  { %5065 = vmatprep.subr.mxu0 %v7357_v3 }
0x2511   :  { %5066 = vmatpush3.msra.mxu0 %v6530_v43 }
0x2512   :  { %5067 = vmatprep.subr.mxu0 %v7357_v3 }
0x2513   :  { %5068 = vmatpush3.msra.mxu0 %v6537_v36  ;;  %v7405_v36 = vld [vmem:[#allocation41_spill] sm:$0xff] }
0x2514   :  { %5069 = vmatprep.subr.mxu0 %v7357_v3 }
0x2515   :  { %5070 = vmatpush3.msra.mxu0 %v7397_v25 }
0x2516   :  { %5071 = vmatprep.subr.mxu0 %v7357_v3 }
0x2517   :  { %5072 = vmatpush3.msra.mxu0 %v7398_v29 }
0x2518   :  { %5073 = vmatprep.subr.mxu0 %v7357_v3 }
0x2519   :  { %5074 = vmatpush3.msra.mxu0 %v7399_v10 }
0x251a   :  { %5075 = vmatprep.subr.mxu0 %v7357_v3 }
0x251b   :  { %5076 = vmatpush3.msra.mxu0 %v7400_v51 }
0x251c   :  { %5077 = vmatprep.subr.mxu0 %v7357_v3 }
0x251d   :  { %5078 = vmatpush3.msra.mxu0 %v7401_v54 }
0x251e   :  { %5079 = vmatprep.subr.mxu0 %v7357_v3 }
0x251f   :  { %5080 = vmatpush3.msra.mxu0 %v7402_v55 }
0x2520   :  { %5081 = vmatprep.subr.mxu0 %v7357_v3 }
0x2521   :  { %5082 = vmatpush3.msra.mxu0 %v7403_v56 }
0x2522   :  { %5120 = vmatprep.subr.mxu0 %v7357_v3 }
0x25ae   :  { %v3181_v28 = vpop.f32.mrf.mxu0 }
0x25af   :  { %v3182_v9 = vadd.f32 %v7405_v36, %v3181_v28 }
0x25b0   :  { %v4990_v31 = vpop.f32.mrf.mxu0 }
0x25b1   :  { %v3989_v49 = vmul.f32 -1.442695, %v3182_v9 }
0x25c2   :  { %v3373_v12 = vpop.f32.mrf.mxu0 }
0x25c3   :  { %v3374_v41 = vadd.f32 %v7404_v39, %v3373_v12  ;;  %v5346_v39 = vld [vmem:[#allocation15] sm:$0xff] }
0x25c4   :  { %v5032_v43 = vpop.f32.mrf.mxu0 }
0x25c5   :  { %5258 = vtanh.f32 %v3374_v41  ;;  %v3992_v14 = vmul.f32 -1.442695, %v3374_v41 }
0x25c6   :  { %5260 = vtanh.f32 %v3182_v9 }
0x25c7   :  { %5262 = vpow2.f32 %v3992_v14 }
0x25c8   :  { %5264 = vpow2.f32 %v3989_v49 }
0x25d2   :  { %v5259_v0 = vpop.eup %5258 }
0x25d3   :  { %3386 = vrot.lane.b32.xlu0 %v5259_v0, %s5467_s23  ;;  %v5261_v44 = vpop.eup %5260 }
0x25d4   :  { %v5263_v7 = vpop.eup %5262 }
0x25d5   :  { %v3380_v15 = vadd.f32 1.0, %v5263_v7  ;;  %v5265_v5 = vpop.eup %5264 }
0x25d6   :  { %v3188_v20 = vadd.f32 1.0, %v5265_v5 }
0x25d7   :  { %3194 = vrot.lane.b32.xlu0 %v5261_v44, %s5467_s23  ;;  %5266 = vrcp.f32 %v3380_v15 }
0x25d8   :  { %5268 = vrcp.f32 %v3188_v20 }
0x25e4   :  { %v5267_v21 = vpop.eup %5266 }
0x25e5   :  { %v7127_v24 = vpop.eup %5268  ;;  %v3384_v10 = vmul.f32 %v5267_v21, %v6939_v2  ;;  %v7144_v2 = vadd.f32 %v7020_v63, %v6951_v19 }
0x25e6   :  { %v3192_v55 = vmul.f32 %v7127_v24, %v6944_v58 }
0x2645   :  { %v3387_v22 = vpop.permute.xlu0 %3386 }
0x2646   :  { %v3389_v23 = vmul.f32 %v5267_v21, %v3387_v22 }
0x2648   :  { %3391 = vrot.lane.b32.xlu1 %v3389_v23, %s5457_s25 }
0x2649   :  { %v3195_v25 = vpop.permute.xlu0 %3194 }
0x264a   :  { %v3197_v29 = vmul.f32 %v7127_v24, %v3195_v25 }
0x264c   :  { %3199 = vrot.lane.b32.xlu1 %v3197_v29, %s5457_s25 }
0x26ba   :  { %v3392_v51 = vpop.permute.xlu1 %3391 }
0x26bb   :  { %v7132_v54 = vadd.f32 %v3392_v51, %v3384_v10 }
0x26bd   :  { %5270 = vtanh.f32 %v7132_v54 }
0x26be   :  { %v3200_v56 = vpop.permute.xlu1 %3199 }
0x26bf   :  { %v7137_v28 = vadd.f32 %v3200_v56, %v3192_v55 }
0x26c1   :  { %3210 = vrot.lane.b32.xlu1 %v7137_v28, %s5469_s21 }
0x26ca   :  { %v5271_v31 = vpop.eup %5270 }
0x26cb   :  { %3397 = vrot.lane.b32.xlu0 %v5271_v31, %s5467_s23 }
0x26cf   :  { %3402 = vrot.lane.b32.xlu0 %v7144_v2, %s5462_s17 }
0x2733   :  { %v3211_v12 = vpop.permute.xlu1 %3210 }
0x2734   :  { %v3213_v58 = vsel %vm370_vm7, %v3211_v12, %v7056_v60 }
0x2735   :  { %5008 = vmatmul.mubr.msk.f32.vlgmr.msra.gmra.mxu1 %vm620_vm8, %v3213_v58  ;;  %v7408_v58 = vld [vmem:[#allocation36_spill] sm:$0xff] }
0x2736   :  { %5034 = vmatpush3.msra.mxu1 %v6624_v61  ;;  %5037 = vmatprep.mubr.msk.f32.mxu1 %vm5464_vm1, %v7357_v3 }
0x2737   :  { %5035 = vmatprep.subr.mxu1 %v7357_v3 }
0x2738   :  { %5036 = vmatpush3.msra.mxu1 %v5346_v39 }
0x2739   :  { %5040 = vmatprep.subr.mxu1 %v7357_v3 }
0x273d   :  { %v3398_v19 = vpop.permute.xlu0 %3397 }
0x273e   :  { %v3400_v41 = vmul.f32 %v5267_v21, %v3398_v19 }
0x2740   :  { %3480 = vrot.lane.b32.xlu1 %v3400_v41, %s5457_s25 }
0x2741   :  { %v3403_v43 = vpop.permute.xlu0 %3402 }
0x2742   :  { %v3405_v60 = vsel %vm292_vm6, %v7020_v63, %v3403_v43 }
0x2743   :  { %5038 = vmatmul.mubr.msk.f32.vlgmr.msra.gmra.mxu1 %vm178_vm2, %v3405_v60  ;;  %v7410_v60 = vld [vmem:[#allocation33_spill] sm:$0xff] }
0x2744   :  { %5041 = vmatpush3.msra.mxu1 %v6642_v18  ;;  %5048 = vmatprep.mubr.msk.f32.mxu1 %vm5464_vm1, %v7357_v3 }
0x2745   :  { %5042 = vmatprep.subr.mxu1 %v7357_v3 }
0x2746   :  { %5043 = vmatpush3.msra.mxu1 %v6651_v32 }
0x2747   :  { %5044 = vmatprep.subr.mxu1 %v7357_v3 }
0x2748   :  { %5045 = vmatpush3.msra.mxu1 %v6658_v30 }
0x2749   :  { %5046 = vmatprep.subr.mxu1 %v7357_v3 }
0x274a   :  { %5047 = vmatpush3.msra.mxu1 %v6665_v48 }
0x274b   :  { %5086 = vmatprep.subr.mxu1 %v7357_v3 }
0x27b2   :  { %v7170_v61 = vpop.permute.xlu1 %3480 }
0x27b3   :  { %3914 = vst.msk [vmem:[#allocation2] sm:$0x3] %vm94_vm0, %v7170_v61  ;;  %5049 = vmatmul.mubr.msk.f32.vlgmr.msra.gmra.mxu1 %vm370_vm7, %v7170_v61 }
0x27b4   :  { %5087 = vmatpush3.msra.mxu1 %v6676_v57  ;;  %5090 = vmatprep.mubr.msk.f32.mxu1 %vm5464_vm1, %v7357_v3 }
0x27b5   :  { %5088 = vmatprep.subr.mxu1 %v7357_v3 }
0x27b6   :  { %5089 = vmatpush3.msra.mxu1 %v6685_v59 }
0x27b7   :  { %5093 = vmatprep.subr.mxu1 %v7357_v3 }
0x27f5   :  { %v7182_v18 = vpop.f32.mrf.mxu1 }
0x27f7   :  { %v5009_v32 = vpop.f32.mrf.mxu1 }
0x2803   :  { %v3475_v30 = vpop.f32.mrf.mxu1 }
0x2805   :  { %v5039_v48 = vpop.f32.mrf.mxu1 }
0x2873   :  { %v3550_v9 = vpop.f32.mrf.mxu1 }
0x2874   :  { %v3551_v0 = vadd.f32 %v6691_v33, %v3550_v9 }
0x2875   :  { %v5050_v44 = vpop.f32.mrf.mxu1 }
0x2876   :  { %v3554_v14 = vadd.f32 %v3551_v0, %v3475_v30 }
0x2878   :  { %5272 = vtanh.f32 %v3554_v14 }
0x2885   :  { %v5273_v57 = vpop.eup %5272 }
0x2886   :  { %5084 = vmatmul.mubr.f32.vlgmr.msra.gmra.mxu0 %v5273_v57 }
0x2887   :  { %5121 = vmatpush3.msra.mxu0 %v6697_v17  ;;  %5136 = vmatprep.mubr.msk.f32.mxu0 %vm5464_vm1, %v7357_v3 }
0x2888   :  { %5122 = vmatprep.subr.mxu0 %v7357_v3 }
0x2889   :  { %5123 = vmatpush3.msra.mxu0 %v6706_v26 }
0x288a   :  { %5124 = vmatprep.subr.mxu0 %v7357_v3 }
0x288b   :  { %5125 = vmatpush3.msra.mxu0 %v6713_v35 }
0x288c   :  { %5126 = vmatprep.subr.mxu0 %v7357_v3 }
0x288d   :  { %5127 = vmatpush3.msra.mxu0 %v6720_v52 }
0x288e   :  { %5128 = vmatprep.subr.mxu0 %v7357_v3 }
0x288f   :  { %5129 = vmatpush3.msra.mxu0 %v6727_v53 }
0x2890   :  { %5130 = vmatprep.subr.mxu0 %v7357_v3 }
0x2891   :  { %5131 = vmatpush3.msra.mxu0 %v6734_v4 }
0x2892   :  { %5132 = vmatprep.subr.mxu0 %v7357_v3 }
0x2893   :  { %5133 = vmatpush3.msra.mxu0 %v6741_v6 }
0x2894   :  { %5134 = vmatprep.subr.mxu0 %v7357_v3 }
0x2895   :  { %5135 = vmatpush3.msra.mxu0 %v6748_v46 }
0x2946   :  { %v3622_v59 = vpop.f32.mrf.mxu0 }
0x2947   :  { %v3626_v33 = vsel %vm99_vm5, %v3622_v59, -inf }
0x2948   :  { %3627 = vmax.xlane.f32.xlu0 %v3626_v33  ;;  %v5085_v17 = vpop.f32.mrf.mxu0 }
0x2949   :  { %v7411_v17 = vld [vmem:[#allocation22_spill] sm:$0xff] }
0x29d1   :  { %v3628_v26 = vpop.xlane.xlu0 %3627 }
0x29d2   :  { %v3629_v35 = vsub.f32 %v3622_v59, %v3628_v26 }
0x29d4   :  { %v3630_v52 = vmul.f32 1.442695, %v3629_v35 }
0x29d6   :  { %5274 = vpow2.f32 %v3630_v52 }
0x29d7   :  { %5276 = vtanh.f32 %v7137_v28 }
0x29e3   :  { %v5275_v53 = vpop.eup %5274 }
0x29e4   :  { %v3632_v4 = vsel %vm99_vm5, %v5275_v53, 0.0  ;;  %v5277_v6 = vpop.eup %5276 }
0x29e5   :  { %3633 = vadd.xlane.f32.xlu1 %v3632_v4 }
0x29f6   :  { %3205 = vrot.lane.b32.xlu1 %v5277_v6, %s5467_s23 }
0x2a6e   :  { %v3634_v49 = vpop.xlane.xlu1 %3633 }
0x2a6f   :  { %5278 = vrcp.f32 %v3634_v49 }
0x2a72   :  { %v3206_v46 = vpop.permute.xlu1 %3205 }
0x2a73   :  { %v3208_v7 = vmul.f32 %v7127_v24, %v3206_v46 }
0x2a75   :  { %3726 = vrot.lane.b32.xlu1 %v3208_v7, %s5469_s21 }
0x2a7c   :  { %v5279_v15 = vpop.eup %5278 }
0x2a7d   :  { %v3636_v5 = vmul.f32 %v5279_v15, %v3634_v49 }
0x2a7f   :  { %v3637_v20 = vsub.f32 2.0, %v3636_v5 }
0x2a81   :  { %v3638_v21 = vmul.f32 %v5279_v15, %v3637_v20 }
0x2a83   :  { %v7208_v22 = vmul.f32 %v5275_v53, %v3638_v21 }
0x2a85   :  { %v3640_v23 = vadd.f32 %v7208_v22, %v7144_v2  ;;  %3926 = vst.msk [vmem:[#allocation6] sm:$0x3] %vm99_vm5, %v7208_v22  ;;  %3642 = vrot.lane.b32.xlu0 %v7208_v22, %s5462_s17  ;;  %s5470_s17 = smov 17   ;;  %v7407_v2 = vld [vmem:[#allocation23_spill] sm:$0xff] }
0x2a87   :  { %3927 = vst.msk [vmem:[#allocation7] sm:$0x3] %vm99_vm5, %v3640_v23 }
0x2af7   :  { %v3643_v24 = vpop.permute.xlu0 %3642 }
0x2af8   :  { %v3645_v25 = vsel %vm292_vm6, %v7208_v22, %v3643_v24 }
0x2af9   :  { %v3646_v29 = vmul.f32 %v6766_v16, %v3645_v25 }
0x2afb   :  { %5091 = vmatmul.mubr.msk.f32.vlgmr.msra.gmra.mxu1 %vm178_vm2, %v3646_v29 }
0x2afc   :  { %5094 = vmatpush3.msra.mxu1 %v6773_v11  ;;  %5117 = vmatprep.mubr.msk.f32.mxu1 %vm5464_vm1, %v7357_v3 }
0x2afd   :  { %5095 = vmatprep.subr.mxu1 %v7357_v3 }
0x2afe   :  { %5096 = vmatpush3.msra.mxu1 %v6782_v62 }
0x2aff   :  { %5097 = vmatprep.subr.mxu1 %v7357_v3 }
0x2b00   :  { %5098 = vmatpush3.msra.mxu1 %v6789_v38  ;;  %v3727_v38 = vpop.permute.xlu1 %3726 }
0x2b01   :  { %5099 = vmatprep.subr.mxu1 %v7357_v3 }
0x2b02   :  { %5100 = vmatpush3.msra.mxu1 %v6796_v1 }
0x2b03   :  { %5101 = vmatprep.subr.mxu1 %v7357_v3 }
0x2b04   :  { %5102 = vmatpush3.msra.mxu1 %v6803_v45 }
0x2b05   :  { %5103 = vmatprep.subr.mxu1 %v7357_v3 }
0x2b06   :  { %5104 = vmatpush3.msra.mxu1 %v6810_v42 }
0x2b07   :  { %5105 = vmatprep.subr.mxu1 %v7357_v3 }
0x2b08   :  { %5106 = vmatpush3.msra.mxu1 %v7392_v47 }
0x2b09   :  { %5107 = vmatprep.subr.mxu1 %v7357_v3 }
0x2b0a   :  { %5108 = vmatpush3.msra.mxu1 %v7393_v13 }
0x2b0b   :  { %5109 = vmatprep.subr.mxu1 %v7357_v3 }
0x2b0c   :  { %5110 = vmatpush3.msra.mxu1 %v7394_v37 }
0x2b0d   :  { %5111 = vmatprep.subr.mxu1 %v7357_v3 }
0x2b0e   :  { %5112 = vmatpush3.msra.mxu1 %v7395_v27 }
0x2b0f   :  { %5113 = vmatprep.subr.mxu1 %v7357_v3 }
0x2b10   :  { %5114 = vmatpush3.msra.mxu1 %v7396_v8 }
0x2b11   :  { %5115 = vmatprep.subr.mxu1 %v7357_v3 }
0x2b12   :  { %5116 = vmatpush3.msra.mxu1 %v6852_v50 }
0x2bbb   :  { %v3716_v16 = vpop.f32.mrf.mxu1 }
0x2bbc   :  { %3928 = vst.msk [vmem:[#allocation8] sm:$0x3] %vm94_vm0, %v3716_v16  ;;  %3722 = vrot.lane.b32.xlu0 %v3716_v16, %s5457_s25 }
0x2bbd   :  { %v5092_v11 = vpop.f32.mrf.mxu1 }
0x2c2e   :  { %v3723_v62 = vpop.permute.xlu0 %3722 }
0x2c2f   :  { %v3729_v1 = vsel %vm370_vm7, %v7170_v61, %v3723_v62 }
0x2c30   :  { %v3730_v45 = vsel %vm620_vm8, %v3729_v1, %v3727_v38 }
0x2c31   :  { %5118 = vmatmul.mubr.msk.f32.vlgmr.msra.gmra.mxu1 %vm626_vm9, %v3730_v45 }
0x2cf1   :  { %v3800_v42 = vpop.f32.mrf.mxu1 }
0x2cf2   :  { %v3801_v3 = vadd.f32 %v7405_v36, %v3800_v42  ;;  %v7406_v36 = vld [vmem:[#allocation31_spill] sm:$0xff] }
0x2cf3   :  { %v5119_v47 = vpop.f32.mrf.mxu1 }
0x2cf4   :  { %5280 = vtanh.f32 %v3801_v3  ;;  %v3997_v13 = vmul.f32 -1.442695, %v3801_v3 }
0x2cf6   :  { %5282 = vpow2.f32 %v3997_v13 }
0x2d01   :  { %v5281_v50 = vpop.eup %5280 }
0x2d02   :  { %3813 = vrot.lane.b32.xlu0 %v5281_v50, %s5467_s23 }
0x2d03   :  { %v5283_v37 = vpop.eup %5282 }
0x2d04   :  { %v3807_v27 = vadd.f32 1.0, %v5283_v37 }
0x2d06   :  { %5284 = vrcp.f32 %v3807_v27 }
0x2d13   :  { %v5285_v8 = vpop.eup %5284 }
0x2d14   :  { %v3811_v55 = vmul.f32 %v5285_v8, %v7137_v28  ;;  %v3957_v28 = vld [vmem:[%s7308_s10 + $0x2] ss:$0 sm:$0xff]  ;;  %s5471_s10 = smov [#allocation17]  }
0x2d15   :  { %v2046_v61 = vadd.f32 %v3957_v28, %v7410_v60  ;;  %v3284_v9 = vadd.f32 %v3957_v28, %v7182_v18  ;;  %v1427_v26 = vadd.f32 %v3957_v28, %v7411_v17  ;;  %v2665_v53 = vadd.f32 %v3957_v28, %v6991_v40 }
0x2d74   :  { %v3814_v10 = vpop.permute.xlu0 %3813 }
0x2d75   :  { %v3816_v51 = vmul.f32 %v5285_v8, %v3814_v10 }
0x2d77   :  { %3818 = vrot.lane.b32.xlu1 %v3816_v51, %s5457_s25 }
0x2de9   :  { %v3819_v56 = vpop.permute.xlu1 %3818 }
0x2dea   :  { %v3821_v31 = vadd.f32 %v3819_v56, %v3811_v55 }
0x2dec   :  { %5286 = vtanh.f32 %v3821_v31  ;;  %3829 = vrot.lane.b32.xlu0 %v3821_v31, %s5469_s21 }
0x2df0   :  { %810 = vrot.lane.b32.xlu0 %v7406_v36, %s5470_s17 }
0x2df4   :  { %2049 = vrot.lane.b32.xlu0 %v7407_v2, %s5470_s17 }
0x2df8   :  { %3287 = vrot.lane.b32.xlu0 %v7020_v63, %s5470_s17  ;;  %v7409_v63 = vld [vmem:[#allocation35_spill] sm:$0xff] }
0x2df9   :  { %v5287_v12 = vpop.eup %5286 }
0x2dfa   :  { %3824 = vrot.lane.b32.xlu1 %v5287_v12, %s5467_s23  ;;  %s3934_s23 = sshll.u32 %s5471_s10, 4  ;;  %s3935_s23 = int_to_ptr.vmem [resolvable:$true] %s3934_s23 }
0x2dfb   :  { %p5432_p7 = scmp.lt.s32.totalorder %s3935_s23, %s3935_s23 }
0x2dfc   :  { %3916 = vrot.lane.b32.xlu0 %v7132_v54, %s5469_s21  ;;  %v807_v54 = vadd.f32 %v3957_v28, %v7409_v63  ;;  %s5427_s21 = scalar_lea.vmem %s3935_s23, 192 }
0x2dfd   :  { %p5428_p6 = scmp.ne.s32.totalorder %s3935_s23, %s5427_s21  ;;  %p5433_p8 = scmp.lt.s32.totalorder %s5427_s21, %s5427_s21 }
0x2dfe   :  { %1430 = vrot.lane.b32.xlu1 %v7408_v58, %s5470_s17 }
0x2dff   :  { %p5434_p9 = por %p5433_p8, %p5432_p7 }
0x2e01   :  { %p5435_p10 = pnand %p5434_p9, %p5428_p6 }
0x2e02   :  { %2668 = vrot.lane.b32.xlu1 %v6760_v34, %s5470_s17 }
0x2e06   :  { %3906 = vrot.lane.b32.xlu1 %v7208_v22, %s5470_s17 }
0x2e5e   :  { %v3830_v39 = vpop.permute.xlu0 %3829 }
0x2e5f   :  { %v3832_v19 = vsel %vm370_vm7, %v3830_v39, %v3723_v62  ;;  %3925 = vst.msk [vmem:[#allocation5] sm:$0x3] %vm94_vm0, %v3830_v39 }
0x2e60   :  { %5137 = vmatmul.mubr.msk.f32.vlgmr.msra.gmra.mxu0 %vm620_vm8, %v3832_v19 }
0x2e62   :  { %v811_v41 = vpop.permute.xlu0 %810 }
0x2e63   :  { %v814_v34 = vsel %vm813_vm10, %v807_v54, %v811_v41 }
0x2e64   :  { %v816_v43 = vsel %vm815_vm11, %v814_v34, 0.0 }
0x2e65   :  { %817 = vst [vmem:[#allocation17] sm:$0x3] %v816_v43 }
0x2e66   :  { %v2050_v32 = vpop.permute.xlu0 %2049 }
0x2e67   :  { %v2052_v30 = vsel %vm813_vm10, %v2046_v61, %v2050_v32 }
0x2e68   :  { %v2053_v48 = vsel %vm815_vm11, %v2052_v30, 0.0 }
0x2e69   :  { %2055 = vst [vmem:[#allocation17 + $0x4] sm:$0x3] %v2053_v48 }
0x2e6a   :  { %v3288_v0 = vpop.permute.xlu0 %3287 }
0x2e6b   :  { %v3290_v44 = vsel %vm813_vm10, %v3284_v9, %v3288_v0 }
0x2e6c   :  { %v3291_v14 = vsel %vm815_vm11, %v3290_v44, 0.0  ;;  %v3825_v57 = vpop.permute.xlu1 %3824 }
0x2e6d   :  { %3293 = vst [vmem:[#allocation17 + $0x8] sm:$0x3] %v3291_v14  ;;  %v3827_v59 = vmul.f32 %v5285_v8, %v3825_v57 }
0x2e6e   :  { %v3917_v33 = vpop.permute.xlu0 %3916 }
0x2e6f   :  { %3919 = vst.msk [vmem:[#allocation3] sm:$0x3] %vm94_vm0, %v3917_v33  ;;  %3921 = vrot.lane.b32.xlu1 %v3827_v59, %s5457_s25 }
0x2e70   :  { %v1431_v35 = vpop.permute.xlu1 %1430 }
0x2e71   :  { %v1433_v52 = vsel %vm813_vm10, %v1427_v26, %v1431_v35 }
0x2e72   :  { %v1434_v18 = vsel %vm815_vm11, %v1433_v52, 0.0 }
0x2e73   :  { %1436 = vst [vmem:[#allocation17 + $0x2] sm:$0x3] %v1434_v18 }
0x2e74   :  { %v2669_v4 = vpop.permute.xlu1 %2668 }
0x2e75   :  { %v2671_v6 = vsel %vm813_vm10, %v2665_v53, %v2669_v4 }
0x2e76   :  { %v2672_v49 = vsel %vm815_vm11, %v2671_v6, 0.0 }
0x2e77   :  { %2674 = vst [vmem:[#allocation17 + $0x6] sm:$0x3] %v2672_v49 }
0x2e78   :  { %v3907_v46 = vpop.permute.xlu1 %3906 }
0x2ee1   :  { %v3922_v7 = vpop.permute.xlu1 %3921 }
0x2ee2   :  { %3924 = vst.msk [vmem:[#allocation4] sm:$0x3] %vm94_vm0, %v3922_v7 }
0x2f20   :  { %v3902_v15 = vpop.f32.mrf.mxu0 }
0x2f21   :  { %v3903_v5 = vadd.f32 %v3957_v28, %v3902_v15 }
0x2f22   :  { %v5138_v20 = vpop.f32.mrf.mxu0 }
0x2f23   :  { %v3909_v21 = vsel %vm813_vm10, %v3903_v5, %v3907_v46 }
0x2f24   :  { %v3910_v40 = vsel %vm815_vm11, %v3909_v21, 0.0 }
0x2f25   :  { %3912 = vst [vmem:[#allocation17 + $0xa] sm:$0x3] %v3910_v40 }
0x2f26   :  { %5438 = shalt.err (!%p5435_p10)
}
0x2f27   :  { %3940 = dma.vmem_to_hbm [thread:$0]  %s3935_s23, 192, %s7309_s11, [#allocation11], %s5457_s25, %s5457_s25, %s5458_s26  }
0x2f28   :  { %5453 = dma.done.wait [#allocation11], 192  }
0x2f29   :  { %5454 = vsyncadd [#allocation11], 4294967104 }
0x2f2a   :  { %3944 = vsyncpa [#allocation10], 1 }
0x2f2b   :  { %3945 = vsyncpa [#allocation13], 1 }
0x2f2c   :  { %3946 = vsyncpa [#allocation16], 1 }
0x2f2d   :  { %3947 = vsyncpa [#allocation11], 1 }

</bundles_post_ra>
